<compile_context>
chip_gen: v7x
topology: tpu7x:2x2x1
jax: 0.10.0
libtpu: 0.0.40
codegen_flags: <defaults>
</compile_context>

<pallas_src>
import numpy as np
import jax
import jax.numpy as jnp
from jax.experimental import pallas as pl
from jax.experimental.pallas import tpu as pltpu

# ----------------------------- hyper-parameters ------------------------------
d_model = 32
d_k = 16
d_v = 16
n_heads = 2
d_ff = 64
n_layers = 2
batch = 2
tgt_seq_len = 8
src_seq_len = 8
tgt_vocab_size = tgt_seq_len + 1  # keeps pos_emb(dec_inputs) lookup in range (mirrors tutorial quirk)

KV_PAD = 128        # key/value rows padded to one full vreg lane width -> dense prob stores
_EPS = 1e-5
_NEG = -1.0e9


# --------------------------- in-kernel building blocks ------------------------
def _layer_norm(y, g, b):
    mu = jnp.mean(y, axis=-1, keepdims=True)
    var = jnp.mean((y - mu) ** 2, axis=-1, keepdims=True)
    return (y - mu) * jax.lax.rsqrt(var + _EPS) * g + b


def _mha_block(x2, kv128, bias, refs, li):
    """MultiHeadAttention + Add&Norm on VMEM-resident values.

    x2    : (B*Lq, D)   queries / residual (batch folded into rows)
    kv128 : (KV_PAD, D) key/value source, rows >= B*Lk are zero padding
    bias  : (B*Lq, KV_PAD) additive mask (0 / -1e9), block-diagonal over batch,
            -1e9 on all padded key lanes.
    NOTE: 1/sqrt(d_k) is pre-folded into wq/bq on the host; no softmax max-subtract
    (masked lanes exp to exactly 0; every row has at least one unmasked key).
    Returns (y (B*Lq, D), [attn_h (B*Lq, KV_PAD) per head]).
    """
    wq, bq, wk, bk, wv, bv, wo, bo, g, be = refs
    attns = []
    o_acc = None
    for h in range(n_heads):                        # n_heads = 2, unrolled
        q_h = jnp.dot(x2, wq[li, h], preferred_element_type=jnp.float32) + bq[li, h]      # (B*Lq, d_k)
        k_h = jnp.dot(kv128, wk[li, h], preferred_element_type=jnp.float32) + bk[li, h]   # (128, d_k)
        v_h = jnp.dot(kv128, wv[li, h], preferred_element_type=jnp.float32) + bv[li, h]   # (128, d_v)

        # scores over all 128 key lanes (cross-batch / padded / masked lanes carry -1e9)
        s = jax.lax.dot_general(q_h, k_h, (((1,), (1,)), ((), ())),
                                preferred_element_type=jnp.float32) + bias                # (B*Lq, 128)
        e = jnp.exp(s)                                                                    # masked -> 0
        a = e * pl.reciprocal(jnp.sum(e, axis=-1, keepdims=True), approx=True)
        attns.append(a)

        ctx = jnp.dot(a, v_h, preferred_element_type=jnp.float32)                         # (B*Lq, d_v)
        part = jnp.dot(ctx, wo[li, h], preferred_element_type=jnp.float32)                # (B*Lq, D)
        o_acc = part if o_acc is None else o_acc + part

    y = o_acc + bo[li] + x2
    return _layer_norm(y, g[li], be[li]), attns


def _ffn_block(x2, refs, li):
    """Position-wise FFN (1x1 convs == feature-last Linear) + Add&Norm, batch-folded rows."""
    w1, b1, w2, b2, g, be = refs
    h = jnp.maximum(jnp.dot(x2, w1[li], preferred_element_type=jnp.float32) + b1[li], 0.0)
    o = jnp.dot(h, w2[li], preferred_element_type=jnp.float32) + b2[li]
    return _layer_norm(o + x2, g[li], be[li])


# ------------------------------ fused decoder kernel --------------------------
def _decoder_kernel(x_ref, enc_ref, sbias_ref, ebias_ref, *rest):
    """Whole decoder stack (all layers, all sub-layers) in one kernel invocation."""
    sa_refs = rest[0:10]         # self-attn params, stacked over (layer, head)
    ea_refs = rest[10:20]        # enc-attn params
    ff_refs = rest[20:26]        # FFN params
    out_ref = rest[26]           # (B*Lt, D)
    sattn_ref = rest[27]         # (n_layers*H, B*Lt, 128)  lane-dense
    eattn_ref = rest[28]         # (n_layers*H, B*Lt, 128)  lane-dense

    x = x_ref[...]               # (B*Lt, D)
    enc_kv = enc_ref[...]        # (128, D)  padded on the host
    sbias = sbias_ref[...]       # (B*Lt, 128)
    ebias = ebias_ref[...]       # (B*Lt, 128)

    n_rows = x.shape[0]
    zpad = jnp.zeros((KV_PAD - n_rows, d_model), jnp.float32)   # hoisted, reused every layer

    for li in range(n_layers):   # unrolled: layers are sequential dependencies
        x_kv = jnp.concatenate([x, zpad], axis=0)               # (128, D) sublane-aligned pad
        x, a_self = _mha_block(x, x_kv, sbias, sa_refs, li)
        x, a_enc = _mha_block(x, enc_kv, ebias, ea_refs, li)
        x = _ffn_block(x, ff_refs, li)
        for h in range(n_heads):
            sattn_ref[li * n_heads + h] = a_self[h]             # dense 128-lane stores
            eattn_ref[li * n_heads + h] = a_enc[h]

    out_ref[...] = x


def _decoder_pallas_call(dec_x2, enc_pad, sbias, ebias, packed, n_rows):
    inputs = [dec_x2, enc_pad, sbias, ebias] + list(packed)
    vmem = pl.BlockSpec(memory_space=pltpu.MemorySpace.VMEM)
    out_shapes = (
        jax.ShapeDtypeStruct((n_rows, d_model), jnp.float32),
        jax.ShapeDtypeStruct((n_layers * n_heads, n_rows, KV_PAD), jnp.float32),
        jax.ShapeDtypeStruct((n_layers * n_heads, n_rows, KV_PAD), jnp.float32),
    )
    fn = pl.pallas_call(
        _decoder_kernel,
        out_shape=out_shapes,
        in_specs=[vmem] * len(inputs),          # whole arrays in VMEM, no grid / no pipelining
        out_specs=(vmem, vmem, vmem),
        compiler_params=pltpu.CompilerParams(vmem_limit_bytes=32 * 1024 * 1024),
    )
    return fn(*inputs)


# ------------------------------ plain-JAX glue -------------------------------
def get_sinusoid_encoding_table(n_position, dim):
    pos = np.arange(n_position)[:, None].astype(np.float64)
    hid = np.arange(dim)[None, :]
    angle = pos / np.power(10000.0, 2 * (hid // 2) / dim)
    table = np.zeros((n_position, dim), dtype=np.float64)
    table[:, 0::2] = np.sin(angle[:, 0::2])
    table[:, 1::2] = np.cos(angle[:, 1::2])
    return jnp.asarray(table, dtype=jnp.float32)


def get_attn_pad_mask(seq_q, seq_k):
    B, Lq = seq_q.shape
    Lk = seq_k.shape[1]
    pad = (seq_k == 0)[:, None, :]                    # [B, 1, Lk]
    return jnp.broadcast_to(pad, (B, Lq, Lk))


def get_attn_subsequent_mask(seq):
    B, L = seq.shape
    sub = jnp.triu(jnp.ones((L, L), dtype=jnp.int32), k=1)
    return jnp.broadcast_to(sub[None], (B, L, L))


def _fold_bias(bias):
    """(B, Lq, Lk) additive mask -> block-diagonal (B*Lq, KV_PAD) bias.

    Cross-batch blocks and padded key lanes get -1e9 so they exp to exactly 0."""
    B, Lq, Lk = bias.shape
    same = jnp.arange(B)[:, None, None, None] == jnp.arange(B)[None, None, :, None]   # (B,1,B,1)
    big = jnp.where(same, bias[:, :, None, :], _NEG).reshape(B * Lq, B * Lk)
    pad = jnp.full((B * Lq, KV_PAD - B * Lk), _NEG, jnp.float32)
    return jnp.concatenate([big, pad], axis=-1).astype(jnp.float32)


def _extract_attn(raw, B, Lq, Lk):
    """(L*H, B*Lq, 128) kernel layout -> (L, B, H, Lq, Lk) PyTorch layout (wrapper plumbing)."""
    a = raw[:, :, :B * Lk].reshape(n_layers, n_heads, B, Lq, B, Lk)
    blocks = jnp.stack([a[:, :, b, :, b, :] for b in range(B)], axis=2)   # (L, H, B, Lq, Lk)
    return blocks.transpose(0, 2, 1, 3, 4)                                 # (L, B, H, Lq, Lk)


def init_mha_params(key):
    ks = jax.random.split(key, 4)
    s = 0.05
    return {
        'wq': jax.random.normal(ks[0], (d_model, n_heads * d_k), jnp.float32) * s,
        'bq': jnp.zeros((1, n_heads * d_k), jnp.float32),
        'wk': jax.random.normal(ks[1], (d_model, n_heads * d_k), jnp.float32) * s,
        'bk': jnp.zeros((1, n_heads * d_k), jnp.float32),
        'wv': jax.random.normal(ks[2], (d_model, n_heads * d_v), jnp.float32) * s,
        'bv': jnp.zeros((1, n_heads * d_v), jnp.float32),
        'wo': jax.random.normal(ks[3], (n_heads * d_v, d_model), jnp.float32) * s,
        'bo': jnp.zeros((1, d_model), jnp.float32),
        'gamma': jnp.ones((1, d_model), jnp.float32),
        'beta': jnp.zeros((1, d_model), jnp.float32),
    }


def init_ffn_params(key):
    ks = jax.random.split(key, 2)
    s = 0.05
    return {
        'w1': jax.random.normal(ks[0], (d_model, d_ff), jnp.float32) * s,   # conv1 weight^T
        'b1': jnp.zeros((1, d_ff), jnp.float32),
        'w2': jax.random.normal(ks[1], (d_ff, d_model), jnp.float32) * s,   # conv2 weight^T
        'b2': jnp.zeros((1, d_model), jnp.float32),
        'gamma': jnp.ones((1, d_model), jnp.float32),
        'beta': jnp.zeros((1, d_model), jnp.float32),
    }


def init_decoder_params(key):
    keys = jax.random.split(key, 1 + 3 * n_layers)
    params = {
        'tgt_emb': jax.random.normal(keys[0], (tgt_vocab_size, d_model), jnp.float32) * 0.05,
        'pos_table': get_sinusoid_encoding_table(tgt_seq_len + 1, d_model),
        'layers': [],
    }
    for l in range(n_layers):
        params['layers'].append({
            'self_attn': init_mha_params(keys[1 + 3 * l]),
            'enc_attn': init_mha_params(keys[2 + 3 * l]),
            'ffn': init_ffn_params(keys[3 + 3 * l]),
        })
    return params


def pack_decoder_params(params):
    """Pre-split per-head weights, stack over layers, fold 1/sqrt(d_k) into W_Q / b_Q."""
    scale = float(1.0 / np.sqrt(d_k))
    layers = params['layers']

    def stack(group, name):
        return jnp.stack([lp[group][name] for lp in layers], axis=0)

    packed = []
    for group in ('self_attn', 'enc_attn'):
        for wname, bname, dh, fold in (('wq', 'bq', d_k, True),
                                       ('wk', 'bk', d_k, False),
                                       ('wv', 'bv', d_v, False)):
            w = stack(group, wname)                                   # (L, D, H*dh)
            b = stack(group, bname)                                   # (L, 1, H*dh)
            if fold:
                w = w * scale
                b = b * scale
            w = w.reshape(n_layers, d_model, n_heads, dh).transpose(0, 2, 1, 3)   # (L, H, D, dh)
            b = b.reshape(n_layers, 1, n_heads, dh).transpose(0, 2, 1, 3)         # (L, H, 1, dh)
            packed.extend([w, b])
        packed.append(stack(group, 'wo').reshape(n_layers, n_heads, d_v, d_model))  # (L, H, dv, D)
        packed.append(stack(group, 'bo'))                                           # (L, 1, D)
        packed.append(stack(group, 'gamma'))
        packed.append(stack(group, 'beta'))
    for name in ('w1', 'b1', 'w2', 'b2', 'gamma', 'beta'):
        packed.append(jnp.stack([lp['ffn'][name] for lp in layers], axis=0))
    return packed


def decoder_forward(dec_inputs, enc_inputs, enc_outputs, params, packed=None):
    """
    dec_inputs : [batch, tgt_seq_len] int32 token ids
    enc_inputs : [batch, src_seq_len] int32 token ids
    enc_outputs: [batch, src_seq_len, d_model] float32
    """
    if packed is None:
        packed = pack_decoder_params(params)
    B, Lt = dec_inputs.shape
    Ls = enc_inputs.shape[1]
    assert B * Lt <= KV_PAD and B * Ls <= KV_PAD

    # embeddings (mirrors the tutorial quirk of using token ids as positions)
    dec_x = params['tgt_emb'][dec_inputs] + params['pos_table'][dec_inputs]

    # masks -> block-diagonal additive biases (0 / -1e9), built once on the host
    pad = get_attn_pad_mask(dec_inputs, dec_inputs).astype(jnp.int32)
    sub = get_attn_subsequent_mask(dec_inputs)
    self_mask = (pad + sub) > 0
    enc_mask = get_attn_pad_mask(dec_inputs, enc_inputs)
    self_bias = _fold_bias(jnp.where(self_mask, _NEG, 0.0).astype(jnp.float32))
    enc_bias = _fold_bias(jnp.where(enc_mask, _NEG, 0.0).astype(jnp.float32))

    # encoder K/V source padded to 128 rows on the host
    enc_pad = jnp.concatenate(
        [enc_outputs.reshape(B * Ls, d_model).astype(jnp.float32),
         jnp.zeros((KV_PAD - B * Ls, d_model), jnp.float32)], axis=0)

    out2, sattn_raw, eattn_raw = _decoder_pallas_call(
        dec_x.reshape(B * Lt, d_model).astype(jnp.float32),
        enc_pad, self_bias, enc_bias, packed, B * Lt)

    dec_out = out2.reshape(B, Lt, d_model)
    sattn = _extract_attn(sattn_raw, B, Lt, Lt)
    eattn = _extract_attn(eattn_raw, B, Lt, Ls)
    self_attns = [sattn[i] for i in range(n_layers)]
    enc_attns = [eattn[i] for i in range(n_layers)]
    return dec_out, self_attns, enc_attns


# --------------------------- pure-JAX reference (check) -----------------------
def _reference_forward(dec_inputs, enc_inputs, enc_outputs, params):
    dec_x = params['tgt_emb'][dec_inputs] + params['pos_table'][dec_inputs]
    pad = get_attn_pad_mask(dec_inputs, dec_inputs).astype(jnp.int32)
    sub = get_attn_subsequent_mask(dec_inputs)
    self_mask = (pad + sub) > 0
    enc_mask = get_attn_pad_mask(dec_inputs, enc_inputs)

    def ln(y, g, b):
        mu = y.mean(-1, keepdims=True)
        var = ((y - mu) ** 2).mean(-1, keepdims=True)
        return (y - mu) / jnp.sqrt(var + _EPS) * g + b

    def mha(xq, xk, mask, p):
        B, Lq, _ = xq.shape
        Lk = xk.shape[1]
        q = (jnp.einsum('bld,de->ble', xq, p['wq']) + p['bq']).reshape(B, Lq, n_heads, d_k).transpose(0, 2, 1, 3)
        k = (jnp.einsum('bld,de->ble', xk, p['wk']) + p['bk']).reshape(B, Lk, n_heads, d_k).transpose(0, 2, 1, 3)
        v = (jnp.einsum('bld,de->ble', xk, p['wv']) + p['bv']).reshape(B, Lk, n_heads, d_v).transpose(0, 2, 1, 3)
        s = jnp.einsum('bhqc,bhkc->bhqk', q, k) / np.sqrt(d_k)
        s = jnp.where(mask[:, None, :, :], _NEG, s)
        a = jax.nn.softmax(s, axis=-1)
        ctx = jnp.einsum('bhqk,bhkv->bhqv', a, v).transpose(0, 2, 1, 3).reshape(B, Lq, n_heads * d_v)
        o = jnp.einsum('blc,cd->bld', ctx, p['wo']) + p['bo']
        return ln(o + xq, p['gamma'], p['beta']), a

    def ffn(x, p):
        h = jax.nn.relu(jnp.einsum('bld,df->blf', x, p['w1']) + p['b1'])
        o = jnp.einsum('blf,fd->bld', h, p['w2']) + p['b2']
        return ln(o + x, p['gamma'], p['beta'])

    x = dec_x
    sas, eas = [], []
    for lp in params['layers']:
        x, a1 = mha(x, x, self_mask, lp['self_attn'])
        x, a2 = mha(x, enc_outputs, enc_mask, lp['enc_attn'])
        x = ffn(x, lp['ffn'])
        sas.append(a1)
        eas.append(a2)
    return x, sas, eas


# ----------------------------------- main ------------------------------------
if __name__ == "__main__":
    key = jax.random.PRNGKey(0)
    k_param, k_dec, k_enc, k_encout = jax.random.split(key, 4)

    params = init_decoder_params(k_param)
    packed = pack_decoder_params(params)

    dec_inputs = jax.random.randint(k_dec, (batch, tgt_seq_len), 1, tgt_vocab_size, dtype=jnp.int32)
    dec_inputs = dec_inputs.at[:, -1].set(0)            # padding tokens to exercise pad mask
    enc_inputs = jax.random.randint(k_enc, (batch, src_seq_len), 1, tgt_vocab_size, dtype=jnp.int32)
    enc_inputs = enc_inputs.at[:, -2:].set(0)
    enc_outputs = jax.random.normal(k_encout, (batch, src_seq_len, d_model), jnp.float32)

    dec_out, self_attns, enc_attns = decoder_forward(dec_inputs, enc_inputs, enc_outputs, params, packed)
    jax.block_until_ready(dec_out)
    for a in self_attns + enc_attns:
        jax.block_until_ready(a)

    assert dec_out.shape == (batch, tgt_seq_len, d_model)
    assert self_attns[0].shape == (batch, n_heads, tgt_seq_len, tgt_seq_len)
    assert enc_attns[0].shape == (batch, n_heads, tgt_seq_len, src_seq_len)
    assert bool(jnp.all(jnp.isfinite(dec_out)))

    # numerical check vs. pure-JAX reference (loose tolerance: approx-reciprocal softmax)
    ref_out, ref_sa, ref_ea = _reference_forward(dec_inputs, enc_inputs, enc_outputs, params)
    assert bool(jnp.allclose(dec_out, ref_out, atol=2e-2, rtol=2e-2))
    for a, r in zip(self_attns + enc_attns, ref_sa + ref_ea):
        assert bool(jnp.allclose(a, r, atol=5e-3, rtol=5e-3))

    print("KERNEL_OK")
</pallas_src>

<mosaic_0001>
module attributes {stable_mosaic.version = 11 : i64} {
  func.func @_decoder_kernel(%arg0: memref<16x32xf32, #tpu.memory_space<vmem>>, %arg1: memref<128x32xf32, #tpu.memory_space<vmem>>, %arg2: memref<16x128xf32, #tpu.memory_space<vmem>>, %arg3: memref<16x128xf32, #tpu.memory_space<vmem>>, %arg4: memref<2x2x32x16xf32, #tpu.memory_space<vmem>>, %arg5: memref<2x2x1x16xf32, #tpu.memory_space<vmem>>, %arg6: memref<2x2x32x16xf32, #tpu.memory_space<vmem>>, %arg7: memref<2x2x1x16xf32, #tpu.memory_space<vmem>>, %arg8: memref<2x2x32x16xf32, #tpu.memory_space<vmem>>, %arg9: memref<2x2x1x16xf32, #tpu.memory_space<vmem>>, %arg10: memref<2x2x16x32xf32, #tpu.memory_space<vmem>>, %arg11: memref<2x1x32xf32, #tpu.memory_space<vmem>>, %arg12: memref<2x1x32xf32, #tpu.memory_space<vmem>>, %arg13: memref<2x1x32xf32, #tpu.memory_space<vmem>>, %arg14: memref<2x2x32x16xf32, #tpu.memory_space<vmem>>, %arg15: memref<2x2x1x16xf32, #tpu.memory_space<vmem>>, %arg16: memref<2x2x32x16xf32, #tpu.memory_space<vmem>>, %arg17: memref<2x2x1x16xf32, #tpu.memory_space<vmem>>, %arg18: memref<2x2x32x16xf32, #tpu.memory_space<vmem>>, %arg19: memref<2x2x1x16xf32, #tpu.memory_space<vmem>>, %arg20: memref<2x2x16x32xf32, #tpu.memory_space<vmem>>, %arg21: memref<2x1x32xf32, #tpu.memory_space<vmem>>, %arg22: memref<2x1x32xf32, #tpu.memory_space<vmem>>, %arg23: memref<2x1x32xf32, #tpu.memory_space<vmem>>, %arg24: memref<2x32x64xf32, #tpu.memory_space<vmem>>, %arg25: memref<2x1x64xf32, #tpu.memory_space<vmem>>, %arg26: memref<2x64x32xf32, #tpu.memory_space<vmem>>, %arg27: memref<2x1x32xf32, #tpu.memory_space<vmem>>, %arg28: memref<2x1x32xf32, #tpu.memory_space<vmem>>, %arg29: memref<2x1x32xf32, #tpu.memory_space<vmem>>, %arg30: memref<16x32xf32, #tpu.memory_space<vmem>>, %arg31: memref<4x16x128xf32, #tpu.memory_space<vmem>>, %arg32: memref<4x16x128xf32, #tpu.memory_space<vmem>>) attributes {dimension_semantics = [], scalar_prefetch = 0 : i64, scratch_operands = 0 : i64, tpu.core_type = #tpu.core_type<tc>} {
    %c0 = arith.constant 0 : index
    %c0_0 = arith.constant 0 : index
    %0 = vector.load %arg0[%c0, %c0_0] : memref<16x32xf32, #tpu.memory_space<vmem>>, vector<16x32xf32>
    %c0_1 = arith.constant 0 : index
    %c0_2 = arith.constant 0 : index
    %1 = vector.load %arg1[%c0_1, %c0_2] : memref<128x32xf32, #tpu.memory_space<vmem>>, vector<128x32xf32>
    %c0_3 = arith.constant 0 : index
    %c0_4 = arith.constant 0 : index
    %2 = vector.load %arg2[%c0_3, %c0_4] : memref<16x128xf32, #tpu.memory_space<vmem>>, vector<16x128xf32>
    %c0_5 = arith.constant 0 : index
    %c0_6 = arith.constant 0 : index
    %3 = vector.load %arg3[%c0_5, %c0_6] : memref<16x128xf32, #tpu.memory_space<vmem>>, vector<16x128xf32>
    %cst = arith.constant 0.000000e+00 : f32
    %4 = vector.broadcast %cst : f32 to vector<112x32xf32>
    %5 = tpu.concatenate %0, %4 in 0 : vector<16x32xf32>, vector<112x32xf32> -> vector<128x32xf32>
    %c0_7 = arith.constant 0 : index
    %c0_8 = arith.constant 0 : index
    %c0_9 = arith.constant 0 : index
    %c0_10 = arith.constant 0 : index
    %6 = vector.load %arg4[%c0_7, %c0_8, %c0_9, %c0_10] : memref<2x2x32x16xf32, #tpu.memory_space<vmem>>, vector<1x1x32x16xf32>
    %7 = vector.shape_cast %6 : vector<1x1x32x16xf32> to vector<32x16xf32>
    %cst_11 = arith.constant dense<0.000000e+00> : vector<16x16xf32>
    %8 = tpu.matmul %0, %7, %cst_11 {dimension_numbers = #tpu.dot_dimension_numbers<[1], [0], [0], [1], [0, 0, 1, 1], [], []>} : vector<16x32xf32>, vector<32x16xf32>, vector<16x16xf32> -> vector<16x16xf32>
    %c0_12 = arith.constant 0 : index
    %c0_13 = arith.constant 0 : index
    %c0_14 = arith.constant 0 : index
    %c0_15 = arith.constant 0 : index
    %9 = vector.load %arg5[%c0_12, %c0_13, %c0_14, %c0_15] : memref<2x2x1x16xf32, #tpu.memory_space<vmem>>, vector<1x1x1x16xf32>
    %10 = vector.shape_cast %9 : vector<1x1x1x16xf32> to vector<1x16xf32>
    %11 = vector.broadcast %10 : vector<1x16xf32> to vector<16x16xf32>
    %12 = arith.addf %8, %11 : vector<16x16xf32>
    %c0_16 = arith.constant 0 : index
    %c0_17 = arith.constant 0 : index
    %c0_18 = arith.constant 0 : index
    %c0_19 = arith.constant 0 : index
    %13 = vector.load %arg6[%c0_16, %c0_17, %c0_18, %c0_19] : memref<2x2x32x16xf32, #tpu.memory_space<vmem>>, vector<1x1x32x16xf32>
    %14 = vector.shape_cast %13 : vector<1x1x32x16xf32> to vector<32x16xf32>
    %cst_20 = arith.constant dense<0.000000e+00> : vector<128x16xf32>
    %15 = tpu.matmul %5, %14, %cst_20 {dimension_numbers = #tpu.dot_dimension_numbers<[1], [0], [0], [1], [0, 0, 1, 1], [], []>} : vector<128x32xf32>, vector<32x16xf32>, vector<128x16xf32> -> vector<128x16xf32>
    %c0_21 = arith.constant 0 : index
    %c0_22 = arith.constant 0 : index
    %c0_23 = arith.constant 0 : index
    %c0_24 = arith.constant 0 : index
    %16 = vector.load %arg7[%c0_21, %c0_22, %c0_23, %c0_24] : memref<2x2x1x16xf32, #tpu.memory_space<vmem>>, vector<1x1x1x16xf32>
    %17 = vector.shape_cast %16 : vector<1x1x1x16xf32> to vector<1x16xf32>
    %18 = vector.broadcast %17 : vector<1x16xf32> to vector<128x16xf32>
    %19 = arith.addf %15, %18 : vector<128x16xf32>
    %c0_25 = arith.constant 0 : index
    %c0_26 = arith.constant 0 : index
    %c0_27 = arith.constant 0 : index
    %c0_28 = arith.constant 0 : index
    %20 = vector.load %arg8[%c0_25, %c0_26, %c0_27, %c0_28] : memref<2x2x32x16xf32, #tpu.memory_space<vmem>>, vector<1x1x32x16xf32>
    %21 = vector.shape_cast %20 : vector<1x1x32x16xf32> to vector<32x16xf32>
    %cst_29 = arith.constant dense<0.000000e+00> : vector<128x16xf32>
    %22 = tpu.matmul %5, %21, %cst_29 {dimension_numbers = #tpu.dot_dimension_numbers<[1], [0], [0], [1], [0, 0, 1, 1], [], []>} : vector<128x32xf32>, vector<32x16xf32>, vector<128x16xf32> -> vector<128x16xf32>
    %c0_30 = arith.constant 0 : index
    %c0_31 = arith.constant 0 : index
    %c0_32 = arith.constant 0 : index
    %c0_33 = arith.constant 0 : index
    %23 = vector.load %arg9[%c0_30, %c0_31, %c0_32, %c0_33] : memref<2x2x1x16xf32, #tpu.memory_space<vmem>>, vector<1x1x1x16xf32>
    %24 = vector.shape_cast %23 : vector<1x1x1x16xf32> to vector<1x16xf32>
    %25 = vector.broadcast %24 : vector<1x16xf32> to vector<128x16xf32>
    %26 = arith.addf %22, %25 : vector<128x16xf32>
    %cst_34 = arith.constant dense<0.000000e+00> : vector<16x128xf32>
    %27 = tpu.matmul %12, %19, %cst_34 {dimension_numbers = #tpu.dot_dimension_numbers<[1], [1], [0], [0], [0, 0, 1, 0], [], []>} : vector<16x16xf32>, vector<128x16xf32>, vector<16x128xf32> -> vector<16x128xf32>
    %28 = arith.addf %27, %2 : vector<16x128xf32>
    %29 = math.exp %28 : vector<16x128xf32>
    %cst_35 = arith.constant dense<0.000000e+00> : vector<16xf32>
    %30 = vector.multi_reduction <add>, %29, %cst_35 [1] : vector<16x128xf32> to vector<16xf32>
    %31 = vector.shape_cast %30 : vector<16xf32> to vector<16x1xf32>
    %32 = tpu.reciprocal %31 {approx = true} : vector<16x1xf32> -> vector<16x1xf32>
    %33 = vector.broadcast %32 : vector<16x1xf32> to vector<16x128xf32>
    %34 = arith.mulf %29, %33 : vector<16x128xf32>
    %cst_36 = arith.constant dense<0.000000e+00> : vector<16x16xf32>
    %35 = tpu.matmul %34, %26, %cst_36 {dimension_numbers = #tpu.dot_dimension_numbers<[1], [0], [0], [1], [0, 0, 1, 1], [], []>} : vector<16x128xf32>, vector<128x16xf32>, vector<16x16xf32> -> vector<16x16xf32>
    %c0_37 = arith.constant 0 : index
    %c0_38 = arith.constant 0 : index
    %c0_39 = arith.constant 0 : index
    %c0_40 = arith.constant 0 : index
    %36 = vector.load %arg10[%c0_37, %c0_38, %c0_39, %c0_40] : memref<2x2x16x32xf32, #tpu.memory_space<vmem>>, vector<1x1x16x32xf32>
    %37 = vector.shape_cast %36 : vector<1x1x16x32xf32> to vector<16x32xf32>
    %cst_41 = arith.constant dense<0.000000e+00> : vector<16x32xf32>
    %38 = tpu.matmul %35, %37, %cst_41 {dimension_numbers = #tpu.dot_dimension_numbers<[1], [0], [0], [1], [0, 0, 1, 1], [], []>} : vector<16x16xf32>, vector<16x32xf32>, vector<16x32xf32> -> vector<16x32xf32>
    %c0_42 = arith.constant 0 : index
    %c1 = arith.constant 1 : index
    %c0_43 = arith.constant 0 : index
    %c0_44 = arith.constant 0 : index
    %39 = vector.load %arg4[%c0_42, %c1, %c0_43, %c0_44] : memref<2x2x32x16xf32, #tpu.memory_space<vmem>>, vector<1x1x32x16xf32>
    %40 = vector.shape_cast %39 : vector<1x1x32x16xf32> to vector<32x16xf32>
    %cst_45 = arith.constant dense<0.000000e+00> : vector<16x16xf32>
    %41 = tpu.matmul %0, %40, %cst_45 {dimension_numbers = #tpu.dot_dimension_numbers<[1], [0], [0], [1], [0, 0, 1, 1], [], []>} : vector<16x32xf32>, vector<32x16xf32>, vector<16x16xf32> -> vector<16x16xf32>
    %c0_46 = arith.constant 0 : index
    %c1_47 = arith.constant 1 : index
    %c0_48 = arith.constant 0 : index
    %c0_49 = arith.constant 0 : index
    %42 = vector.load %arg5[%c0_46, %c1_47, %c0_48, %c0_49] : memref<2x2x1x16xf32, #tpu.memory_space<vmem>>, vector<1x1x1x16xf32>
    %43 = vector.shape_cast %42 : vector<1x1x1x16xf32> to vector<1x16xf32>
    %44 = vector.broadcast %43 : vector<1x16xf32> to vector<16x16xf32>
    %45 = arith.addf %41, %44 : vector<16x16xf32>
    %c0_50 = arith.constant 0 : index
    %c1_51 = arith.constant 1 : index
    %c0_52 = arith.constant 0 : index
    %c0_53 = arith.constant 0 : index
    %46 = vector.load %arg6[%c0_50, %c1_51, %c0_52, %c0_53] : memref<2x2x32x16xf32, #tpu.memory_space<vmem>>, vector<1x1x32x16xf32>
    %47 = vector.shape_cast %46 : vector<1x1x32x16xf32> to vector<32x16xf32>
    %cst_54 = arith.constant dense<0.000000e+00> : vector<128x16xf32>
    %48 = tpu.matmul %5, %47, %cst_54 {dimension_numbers = #tpu.dot_dimension_numbers<[1], [0], [0], [1], [0, 0, 1, 1], [], []>} : vector<128x32xf32>, vector<32x16xf32>, vector<128x16xf32> -> vector<128x16xf32>
    %c0_55 = arith.constant 0 : index
    %c1_56 = arith.constant 1 : index
    %c0_57 = arith.constant 0 : index
    %c0_58 = arith.constant 0 : index
    %49 = vector.load %arg7[%c0_55, %c1_56, %c0_57, %c0_58] : memref<2x2x1x16xf32, #tpu.memory_space<vmem>>, vector<1x1x1x16xf32>
    %50 = vector.shape_cast %49 : vector<1x1x1x16xf32> to vector<1x16xf32>
    %51 = vector.broadcast %50 : vector<1x16xf32> to vector<128x16xf32>
    %52 = arith.addf %48, %51 : vector<128x16xf32>
    %c0_59 = arith.constant 0 : index
    %c1_60 = arith.constant 1 : index
    %c0_61 = arith.constant 0 : index
    %c0_62 = arith.constant 0 : index
    %53 = vector.load %arg8[%c0_59, %c1_60, %c0_61, %c0_62] : memref<2x2x32x16xf32, #tpu.memory_space<vmem>>, vector<1x1x32x16xf32>
    %54 = vector.shape_cast %53 : vector<1x1x32x16xf32> to vector<32x16xf32>
    %cst_63 = arith.constant dense<0.000000e+00> : vector<128x16xf32>
    %55 = tpu.matmul %5, %54, %cst_63 {dimension_numbers = #tpu.dot_dimension_numbers<[1], [0], [0], [1], [0, 0, 1, 1], [], []>} : vector<128x32xf32>, vector<32x16xf32>, vector<128x16xf32> -> vector<128x16xf32>
    %c0_64 = arith.constant 0 : index
    %c1_65 = arith.constant 1 : index
    %c0_66 = arith.constant 0 : index
    %c0_67 = arith.constant 0 : index
    %56 = vector.load %arg9[%c0_64, %c1_65, %c0_66, %c0_67] : memref<2x2x1x16xf32, #tpu.memory_space<vmem>>, vector<1x1x1x16xf32>
    %57 = vector.shape_cast %56 : vector<1x1x1x16xf32> to vector<1x16xf32>
    %58 = vector.broadcast %57 : vector<1x16xf32> to vector<128x16xf32>
    %59 = arith.addf %55, %58 : vector<128x16xf32>
    %cst_68 = arith.constant dense<0.000000e+00> : vector<16x128xf32>
    %60 = tpu.matmul %45, %52, %cst_68 {dimension_numbers = #tpu.dot_dimension_numbers<[1], [1], [0], [0], [0, 0, 1, 0], [], []>} : vector<16x16xf32>, vector<128x16xf32>, vector<16x128xf32> -> vector<16x128xf32>
    %61 = arith.addf %60, %2 : vector<16x128xf32>
    %62 = math.exp %61 : vector<16x128xf32>
    %cst_69 = arith.constant dense<0.000000e+00> : vector<16xf32>
    %63 = vector.multi_reduction <add>, %62, %cst_69 [1] : vector<16x128xf32> to vector<16xf32>
    %64 = vector.shape_cast %63 : vector<16xf32> to vector<16x1xf32>
    %65 = tpu.reciprocal %64 {approx = true} : vector<16x1xf32> -> vector<16x1xf32>
    %66 = vector.broadcast %65 : vector<16x1xf32> to vector<16x128xf32>
    %67 = arith.mulf %62, %66 : vector<16x128xf32>
    %cst_70 = arith.constant dense<0.000000e+00> : vector<16x16xf32>
    %68 = tpu.matmul %67, %59, %cst_70 {dimension_numbers = #tpu.dot_dimension_numbers<[1], [0], [0], [1], [0, 0, 1, 1], [], []>} : vector<16x128xf32>, vector<128x16xf32>, vector<16x16xf32> -> vector<16x16xf32>
    %c0_71 = arith.constant 0 : index
    %c1_72 = arith.constant 1 : index
    %c0_73 = arith.constant 0 : index
    %c0_74 = arith.constant 0 : index
    %69 = vector.load %arg10[%c0_71, %c1_72, %c0_73, %c0_74] : memref<2x2x16x32xf32, #tpu.memory_space<vmem>>, vector<1x1x16x32xf32>
    %70 = vector.shape_cast %69 : vector<1x1x16x32xf32> to vector<16x32xf32>
    %cst_75 = arith.constant dense<0.000000e+00> : vector<16x32xf32>
    %71 = tpu.matmul %68, %70, %cst_75 {dimension_numbers = #tpu.dot_dimension_numbers<[1], [0], [0], [1], [0, 0, 1, 1], [], []>} : vector<16x16xf32>, vector<16x32xf32>, vector<16x32xf32> -> vector<16x32xf32>
    %72 = arith.addf %38, %71 : vector<16x32xf32>
    %c0_76 = arith.constant 0 : index
    %c0_77 = arith.constant 0 : index
    %c0_78 = arith.constant 0 : index
    %73 = vector.load %arg11[%c0_76, %c0_77, %c0_78] : memref<2x1x32xf32, #tpu.memory_space<vmem>>, vector<1x1x32xf32>
    %74 = vector.shape_cast %73 : vector<1x1x32xf32> to vector<1x32xf32>
    %75 = vector.broadcast %74 : vector<1x32xf32> to vector<16x32xf32>
    %76 = arith.addf %72, %75 : vector<16x32xf32>
    %77 = arith.addf %76, %0 : vector<16x32xf32>
    %c0_79 = arith.constant 0 : index
    %c0_80 = arith.constant 0 : index
    %c0_81 = arith.constant 0 : index
    %78 = vector.load %arg12[%c0_79, %c0_80, %c0_81] : memref<2x1x32xf32, #tpu.memory_space<vmem>>, vector<1x1x32xf32>
    %79 = vector.shape_cast %78 : vector<1x1x32xf32> to vector<1x32xf32>
    %c0_82 = arith.constant 0 : index
    %c0_83 = arith.constant 0 : index
    %c0_84 = arith.constant 0 : index
    %80 = vector.load %arg13[%c0_82, %c0_83, %c0_84] : memref<2x1x32xf32, #tpu.memory_space<vmem>>, vector<1x1x32xf32>
    %81 = vector.shape_cast %80 : vector<1x1x32xf32> to vector<1x32xf32>
    %cst_85 = arith.constant dense<0.000000e+00> : vector<16xf32>
    %82 = vector.multi_reduction <add>, %77, %cst_85 [1] : vector<16x32xf32> to vector<16xf32>
    %83 = vector.shape_cast %82 : vector<16xf32> to vector<16x1xf32>
    %cst_86 = arith.constant 3.200000e+01 : f32
    %84 = vector.broadcast %cst_86 : f32 to vector<16x1xf32>
    %85 = arith.divf %83, %84 : vector<16x1xf32>
    %86 = vector.broadcast %85 : vector<16x1xf32> to vector<16x32xf32>
    %87 = arith.subf %77, %86 : vector<16x32xf32>
    %88 = arith.mulf %87, %87 : vector<16x32xf32>
    %cst_87 = arith.constant dense<0.000000e+00> : vector<16xf32>
    %89 = vector.multi_reduction <add>, %88, %cst_87 [1] : vector<16x32xf32> to vector<16xf32>
    %90 = vector.shape_cast %89 : vector<16xf32> to vector<16x1xf32>
    %cst_88 = arith.constant 3.200000e+01 : f32
    %91 = vector.broadcast %cst_88 : f32 to vector<16x1xf32>
    %92 = arith.divf %90, %91 : vector<16x1xf32>
    %93 = vector.broadcast %85 : vector<16x1xf32> to vector<16x32xf32>
    %94 = arith.subf %77, %93 : vector<16x32xf32>
    %cst_89 = arith.constant 9.99999974E-6 : f32
    %95 = vector.broadcast %cst_89 : f32 to vector<16x1xf32>
    %96 = arith.addf %92, %95 : vector<16x1xf32>
    %97 = math.rsqrt %96 : vector<16x1xf32>
    %98 = vector.broadcast %97 : vector<16x1xf32> to vector<16x32xf32>
    %99 = arith.mulf %94, %98 : vector<16x32xf32>
    %100 = vector.broadcast %79 : vector<1x32xf32> to vector<16x32xf32>
    %101 = arith.mulf %99, %100 : vector<16x32xf32>
    %102 = vector.broadcast %81 : vector<1x32xf32> to vector<16x32xf32>
    %103 = arith.addf %101, %102 : vector<16x32xf32>
    %c0_90 = arith.constant 0 : index
    %c0_91 = arith.constant 0 : index
    %c0_92 = arith.constant 0 : index
    %c0_93 = arith.constant 0 : index
    %104 = vector.load %arg14[%c0_90, %c0_91, %c0_92, %c0_93] : memref<2x2x32x16xf32, #tpu.memory_space<vmem>>, vector<1x1x32x16xf32>
    %105 = vector.shape_cast %104 : vector<1x1x32x16xf32> to vector<32x16xf32>
    %cst_94 = arith.constant dense<0.000000e+00> : vector<16x16xf32>
    %106 = tpu.matmul %103, %105, %cst_94 {dimension_numbers = #tpu.dot_dimension_numbers<[1], [0], [0], [1], [0, 0, 1, 1], [], []>} : vector<16x32xf32>, vector<32x16xf32>, vector<16x16xf32> -> vector<16x16xf32>
    %c0_95 = arith.constant 0 : index
    %c0_96 = arith.constant 0 : index
    %c0_97 = arith.constant 0 : index
    %c0_98 = arith.constant 0 : index
    %107 = vector.load %arg15[%c0_95, %c0_96, %c0_97, %c0_98] : memref<2x2x1x16xf32, #tpu.memory_space<vmem>>, vector<1x1x1x16xf32>
    %108 = vector.shape_cast %107 : vector<1x1x1x16xf32> to vector<1x16xf32>
    %109 = vector.broadcast %108 : vector<1x16xf32> to vector<16x16xf32>
    %110 = arith.addf %106, %109 : vector<16x16xf32>
    %c0_99 = arith.constant 0 : index
    %c0_100 = arith.constant 0 : index
    %c0_101 = arith.constant 0 : index
    %c0_102 = arith.constant 0 : index
    %111 = vector.load %arg16[%c0_99, %c0_100, %c0_101, %c0_102] : memref<2x2x32x16xf32, #tpu.memory_space<vmem>>, vector<1x1x32x16xf32>
    %112 = vector.shape_cast %111 : vector<1x1x32x16xf32> to vector<32x16xf32>
    %cst_103 = arith.constant dense<0.000000e+00> : vector<128x16xf32>
    %113 = tpu.matmul %1, %112, %cst_103 {dimension_numbers = #tpu.dot_dimension_numbers<[1], [0], [0], [1], [0, 0, 1, 1], [], []>} : vector<128x32xf32>, vector<32x16xf32>, vector<128x16xf32> -> vector<128x16xf32>
    %c0_104 = arith.constant 0 : index
    %c0_105 = arith.constant 0 : index
    %c0_106 = arith.constant 0 : index
    %c0_107 = arith.constant 0 : index
    %114 = vector.load %arg17[%c0_104, %c0_105, %c0_106, %c0_107] : memref<2x2x1x16xf32, #tpu.memory_space<vmem>>, vector<1x1x1x16xf32>
    %115 = vector.shape_cast %114 : vector<1x1x1x16xf32> to vector<1x16xf32>
    %116 = vector.broadcast %115 : vector<1x16xf32> to vector<128x16xf32>
    %117 = arith.addf %113, %116 : vector<128x16xf32>
    %c0_108 = arith.constant 0 : index
    %c0_109 = arith.constant 0 : index
    %c0_110 = arith.constant 0 : index
    %c0_111 = arith.constant 0 : index
    %118 = vector.load %arg18[%c0_108, %c0_109, %c0_110, %c0_111] : memref<2x2x32x16xf32, #tpu.memory_space<vmem>>, vector<1x1x32x16xf32>
    %119 = vector.shape_cast %118 : vector<1x1x32x16xf32> to vector<32x16xf32>
    %cst_112 = arith.constant dense<0.000000e+00> : vector<128x16xf32>
    %120 = tpu.matmul %1, %119, %cst_112 {dimension_numbers = #tpu.dot_dimension_numbers<[1], [0], [0], [1], [0, 0, 1, 1], [], []>} : vector<128x32xf32>, vector<32x16xf32>, vector<128x16xf32> -> vector<128x16xf32>
    %c0_113 = arith.constant 0 : index
    %c0_114 = arith.constant 0 : index
    %c0_115 = arith.constant 0 : index
    %c0_116 = arith.constant 0 : index
    %121 = vector.load %arg19[%c0_113, %c0_114, %c0_115, %c0_116] : memref<2x2x1x16xf32, #tpu.memory_space<vmem>>, vector<1x1x1x16xf32>
    %122 = vector.shape_cast %121 : vector<1x1x1x16xf32> to vector<1x16xf32>
    %123 = vector.broadcast %122 : vector<1x16xf32> to vector<128x16xf32>
    %124 = arith.addf %120, %123 : vector<128x16xf32>
    %cst_117 = arith.constant dense<0.000000e+00> : vector<16x128xf32>
    %125 = tpu.matmul %110, %117, %cst_117 {dimension_numbers = #tpu.dot_dimension_numbers<[1], [1], [0], [0], [0, 0, 1, 0], [], []>} : vector<16x16xf32>, vector<128x16xf32>, vector<16x128xf32> -> vector<16x128xf32>
    %126 = arith.addf %125, %3 : vector<16x128xf32>
    %127 = math.exp %126 : vector<16x128xf32>
    %cst_118 = arith.constant dense<0.000000e+00> : vector<16xf32>
    %128 = vector.multi_reduction <add>, %127, %cst_118 [1] : vector<16x128xf32> to vector<16xf32>
    %129 = vector.shape_cast %128 : vector<16xf32> to vector<16x1xf32>
    %130 = tpu.reciprocal %129 {approx = true} : vector<16x1xf32> -> vector<16x1xf32>
    %131 = vector.broadcast %130 : vector<16x1xf32> to vector<16x128xf32>
    %132 = arith.mulf %127, %131 : vector<16x128xf32>
    %cst_119 = arith.constant dense<0.000000e+00> : vector<16x16xf32>
    %133 = tpu.matmul %132, %124, %cst_119 {dimension_numbers = #tpu.dot_dimension_numbers<[1], [0], [0], [1], [0, 0, 1, 1], [], []>} : vector<16x128xf32>, vector<128x16xf32>, vector<16x16xf32> -> vector<16x16xf32>
    %c0_120 = arith.constant 0 : index
    %c0_121 = arith.constant 0 : index
    %c0_122 = arith.constant 0 : index
    %c0_123 = arith.constant 0 : index
    %134 = vector.load %arg20[%c0_120, %c0_121, %c0_122, %c0_123] : memref<2x2x16x32xf32, #tpu.memory_space<vmem>>, vector<1x1x16x32xf32>
    %135 = vector.shape_cast %134 : vector<1x1x16x32xf32> to vector<16x32xf32>
    %cst_124 = arith.constant dense<0.000000e+00> : vector<16x32xf32>
    %136 = tpu.matmul %133, %135, %cst_124 {dimension_numbers = #tpu.dot_dimension_numbers<[1], [0], [0], [1], [0, 0, 1, 1], [], []>} : vector<16x16xf32>, vector<16x32xf32>, vector<16x32xf32> -> vector<16x32xf32>
    %c0_125 = arith.constant 0 : index
    %c1_126 = arith.constant 1 : index
    %c0_127 = arith.constant 0 : index
    %c0_128 = arith.constant 0 : index
    %137 = vector.load %arg14[%c0_125, %c1_126, %c0_127, %c0_128] : memref<2x2x32x16xf32, #tpu.memory_space<vmem>>, vector<1x1x32x16xf32>
    %138 = vector.shape_cast %137 : vector<1x1x32x16xf32> to vector<32x16xf32>
    %cst_129 = arith.constant dense<0.000000e+00> : vector<16x16xf32>
    %139 = tpu.matmul %103, %138, %cst_129 {dimension_numbers = #tpu.dot_dimension_numbers<[1], [0], [0], [1], [0, 0, 1, 1], [], []>} : vector<16x32xf32>, vector<32x16xf32>, vector<16x16xf32> -> vector<16x16xf32>
    %c0_130 = arith.constant 0 : index
    %c1_131 = arith.constant 1 : index
    %c0_132 = arith.constant 0 : index
    %c0_133 = arith.constant 0 : index
    %140 = vector.load %arg15[%c0_130, %c1_131, %c0_132, %c0_133] : memref<2x2x1x16xf32, #tpu.memory_space<vmem>>, vector<1x1x1x16xf32>
    %141 = vector.shape_cast %140 : vector<1x1x1x16xf32> to vector<1x16xf32>
    %142 = vector.broadcast %141 : vector<1x16xf32> to vector<16x16xf32>
    %143 = arith.addf %139, %142 : vector<16x16xf32>
    %c0_134 = arith.constant 0 : index
    %c1_135 = arith.constant 1 : index
    %c0_136 = arith.constant 0 : index
    %c0_137 = arith.constant 0 : index
    %144 = vector.load %arg16[%c0_134, %c1_135, %c0_136, %c0_137] : memref<2x2x32x16xf32, #tpu.memory_space<vmem>>, vector<1x1x32x16xf32>
    %145 = vector.shape_cast %144 : vector<1x1x32x16xf32> to vector<32x16xf32>
    %cst_138 = arith.constant dense<0.000000e+00> : vector<128x16xf32>
    %146 = tpu.matmul %1, %145, %cst_138 {dimension_numbers = #tpu.dot_dimension_numbers<[1], [0], [0], [1], [0, 0, 1, 1], [], []>} : vector<128x32xf32>, vector<32x16xf32>, vector<128x16xf32> -> vector<128x16xf32>
    %c0_139 = arith.constant 0 : index
    %c1_140 = arith.constant 1 : index
    %c0_141 = arith.constant 0 : index
    %c0_142 = arith.constant 0 : index
    %147 = vector.load %arg17[%c0_139, %c1_140, %c0_141, %c0_142] : memref<2x2x1x16xf32, #tpu.memory_space<vmem>>, vector<1x1x1x16xf32>
    %148 = vector.shape_cast %147 : vector<1x1x1x16xf32> to vector<1x16xf32>
    %149 = vector.broadcast %148 : vector<1x16xf32> to vector<128x16xf32>
    %150 = arith.addf %146, %149 : vector<128x16xf32>
    %c0_143 = arith.constant 0 : index
    %c1_144 = arith.constant 1 : index
    %c0_145 = arith.constant 0 : index
    %c0_146 = arith.constant 0 : index
    %151 = vector.load %arg18[%c0_143, %c1_144, %c0_145, %c0_146] : memref<2x2x32x16xf32, #tpu.memory_space<vmem>>, vector<1x1x32x16xf32>
    %152 = vector.shape_cast %151 : vector<1x1x32x16xf32> to vector<32x16xf32>
    %cst_147 = arith.constant dense<0.000000e+00> : vector<128x16xf32>
    %153 = tpu.matmul %1, %152, %cst_147 {dimension_numbers = #tpu.dot_dimension_numbers<[1], [0], [0], [1], [0, 0, 1, 1], [], []>} : vector<128x32xf32>, vector<32x16xf32>, vector<128x16xf32> -> vector<128x16xf32>
    %c0_148 = arith.constant 0 : index
    %c1_149 = arith.constant 1 : index
    %c0_150 = arith.constant 0 : index
    %c0_151 = arith.constant 0 : index
    %154 = vector.load %arg19[%c0_148, %c1_149, %c0_150, %c0_151] : memref<2x2x1x16xf32, #tpu.memory_space<vmem>>, vector<1x1x1x16xf32>
    %155 = vector.shape_cast %154 : vector<1x1x1x16xf32> to vector<1x16xf32>
    %156 = vector.broadcast %155 : vector<1x16xf32> to vector<128x16xf32>
    %157 = arith.addf %153, %156 : vector<128x16xf32>
    %cst_152 = arith.constant dense<0.000000e+00> : vector<16x128xf32>
    %158 = tpu.matmul %143, %150, %cst_152 {dimension_numbers = #tpu.dot_dimension_numbers<[1], [1], [0], [0], [0, 0, 1, 0], [], []>} : vector<16x16xf32>, vector<128x16xf32>, vector<16x128xf32> -> vector<16x128xf32>
    %159 = arith.addf %158, %3 : vector<16x128xf32>
    %160 = math.exp %159 : vector<16x128xf32>
    %cst_153 = arith.constant dense<0.000000e+00> : vector<16xf32>
    %161 = vector.multi_reduction <add>, %160, %cst_153 [1] : vector<16x128xf32> to vector<16xf32>
    %162 = vector.shape_cast %161 : vector<16xf32> to vector<16x1xf32>
    %163 = tpu.reciprocal %162 {approx = true} : vector<16x1xf32> -> vector<16x1xf32>
    %164 = vector.broadcast %163 : vector<16x1xf32> to vector<16x128xf32>
    %165 = arith.mulf %160, %164 : vector<16x128xf32>
    %cst_154 = arith.constant dense<0.000000e+00> : vector<16x16xf32>
    %166 = tpu.matmul %165, %157, %cst_154 {dimension_numbers = #tpu.dot_dimension_numbers<[1], [0], [0], [1], [0, 0, 1, 1], [], []>} : vector<16x128xf32>, vector<128x16xf32>, vector<16x16xf32> -> vector<16x16xf32>
    %c0_155 = arith.constant 0 : index
    %c1_156 = arith.constant 1 : index
    %c0_157 = arith.constant 0 : index
    %c0_158 = arith.constant 0 : index
    %167 = vector.load %arg20[%c0_155, %c1_156, %c0_157, %c0_158] : memref<2x2x16x32xf32, #tpu.memory_space<vmem>>, vector<1x1x16x32xf32>
    %168 = vector.shape_cast %167 : vector<1x1x16x32xf32> to vector<16x32xf32>
    %cst_159 = arith.constant dense<0.000000e+00> : vector<16x32xf32>
    %169 = tpu.matmul %166, %168, %cst_159 {dimension_numbers = #tpu.dot_dimension_numbers<[1], [0], [0], [1], [0, 0, 1, 1], [], []>} : vector<16x16xf32>, vector<16x32xf32>, vector<16x32xf32> -> vector<16x32xf32>
    %170 = arith.addf %136, %169 : vector<16x32xf32>
    %c0_160 = arith.constant 0 : index
    %c0_161 = arith.constant 0 : index
    %c0_162 = arith.constant 0 : index
    %171 = vector.load %arg21[%c0_160, %c0_161, %c0_162] : memref<2x1x32xf32, #tpu.memory_space<vmem>>, vector<1x1x32xf32>
    %172 = vector.shape_cast %171 : vector<1x1x32xf32> to vector<1x32xf32>
    %173 = vector.broadcast %172 : vector<1x32xf32> to vector<16x32xf32>
    %174 = arith.addf %170, %173 : vector<16x32xf32>
    %175 = arith.addf %174, %103 : vector<16x32xf32>
    %c0_163 = arith.constant 0 : index
    %c0_164 = arith.constant 0 : index
    %c0_165 = arith.constant 0 : index
    %176 = vector.load %arg22[%c0_163, %c0_164, %c0_165] : memref<2x1x32xf32, #tpu.memory_space<vmem>>, vector<1x1x32xf32>
    %177 = vector.shape_cast %176 : vector<1x1x32xf32> to vector<1x32xf32>
    %c0_166 = arith.constant 0 : index
    %c0_167 = arith.constant 0 : index
    %c0_168 = arith.constant 0 : index
    %178 = vector.load %arg23[%c0_166, %c0_167, %c0_168] : memref<2x1x32xf32, #tpu.memory_space<vmem>>, vector<1x1x32xf32>
    %179 = vector.shape_cast %178 : vector<1x1x32xf32> to vector<1x32xf32>
    %cst_169 = arith.constant dense<0.000000e+00> : vector<16xf32>
    %180 = vector.multi_reduction <add>, %175, %cst_169 [1] : vector<16x32xf32> to vector<16xf32>
    %181 = vector.shape_cast %180 : vector<16xf32> to vector<16x1xf32>
    %cst_170 = arith.constant 3.200000e+01 : f32
    %182 = vector.broadcast %cst_170 : f32 to vector<16x1xf32>
    %183 = arith.divf %181, %182 : vector<16x1xf32>
    %184 = vector.broadcast %183 : vector<16x1xf32> to vector<16x32xf32>
    %185 = arith.subf %175, %184 : vector<16x32xf32>
    %186 = arith.mulf %185, %185 : vector<16x32xf32>
    %cst_171 = arith.constant dense<0.000000e+00> : vector<16xf32>
    %187 = vector.multi_reduction <add>, %186, %cst_171 [1] : vector<16x32xf32> to vector<16xf32>
    %188 = vector.shape_cast %187 : vector<16xf32> to vector<16x1xf32>
    %cst_172 = arith.constant 3.200000e+01 : f32
    %189 = vector.broadcast %cst_172 : f32 to vector<16x1xf32>
    %190 = arith.divf %188, %189 : vector<16x1xf32>
    %191 = vector.broadcast %183 : vector<16x1xf32> to vector<16x32xf32>
    %192 = arith.subf %175, %191 : vector<16x32xf32>
    %cst_173 = arith.constant 9.99999974E-6 : f32
    %193 = vector.broadcast %cst_173 : f32 to vector<16x1xf32>
    %194 = arith.addf %190, %193 : vector<16x1xf32>
    %195 = math.rsqrt %194 : vector<16x1xf32>
    %196 = vector.broadcast %195 : vector<16x1xf32> to vector<16x32xf32>
    %197 = arith.mulf %192, %196 : vector<16x32xf32>
    %198 = vector.broadcast %177 : vector<1x32xf32> to vector<16x32xf32>
    %199 = arith.mulf %197, %198 : vector<16x32xf32>
    %200 = vector.broadcast %179 : vector<1x32xf32> to vector<16x32xf32>
    %201 = arith.addf %199, %200 : vector<16x32xf32>
    %c0_174 = arith.constant 0 : index
    %c0_175 = arith.constant 0 : index
    %c0_176 = arith.constant 0 : index
    %202 = vector.load %arg24[%c0_174, %c0_175, %c0_176] : memref<2x32x64xf32, #tpu.memory_space<vmem>>, vector<1x32x64xf32>
    %203 = vector.shape_cast %202 : vector<1x32x64xf32> to vector<32x64xf32>
    %cst_177 = arith.constant dense<0.000000e+00> : vector<16x64xf32>
    %204 = tpu.matmul %201, %203, %cst_177 {dimension_numbers = #tpu.dot_dimension_numbers<[1], [0], [0], [1], [0, 0, 1, 1], [], []>} : vector<16x32xf32>, vector<32x64xf32>, vector<16x64xf32> -> vector<16x64xf32>
    %c0_178 = arith.constant 0 : index
    %c0_179 = arith.constant 0 : index
    %c0_180 = arith.constant 0 : index
    %205 = vector.load %arg25[%c0_178, %c0_179, %c0_180] : memref<2x1x64xf32, #tpu.memory_space<vmem>>, vector<1x1x64xf32>
    %206 = vector.shape_cast %205 : vector<1x1x64xf32> to vector<1x64xf32>
    %207 = vector.broadcast %206 : vector<1x64xf32> to vector<16x64xf32>
    %208 = arith.addf %204, %207 : vector<16x64xf32>
    %cst_181 = arith.constant 0.000000e+00 : f32
    %209 = vector.broadcast %cst_181 : f32 to vector<16x64xf32>
    %210 = arith.maximumf %208, %209 : vector<16x64xf32>
    %c0_182 = arith.constant 0 : index
    %c0_183 = arith.constant 0 : index
    %c0_184 = arith.constant 0 : index
    %211 = vector.load %arg26[%c0_182, %c0_183, %c0_184] : memref<2x64x32xf32, #tpu.memory_space<vmem>>, vector<1x64x32xf32>
    %212 = vector.shape_cast %211 : vector<1x64x32xf32> to vector<64x32xf32>
    %cst_185 = arith.constant dense<0.000000e+00> : vector<16x32xf32>
    %213 = tpu.matmul %210, %212, %cst_185 {dimension_numbers = #tpu.dot_dimension_numbers<[1], [0], [0], [1], [0, 0, 1, 1], [], []>} : vector<16x64xf32>, vector<64x32xf32>, vector<16x32xf32> -> vector<16x32xf32>
    %c0_186 = arith.constant 0 : index
    %c0_187 = arith.constant 0 : index
    %c0_188 = arith.constant 0 : index
    %214 = vector.load %arg27[%c0_186, %c0_187, %c0_188] : memref<2x1x32xf32, #tpu.memory_space<vmem>>, vector<1x1x32xf32>
    %215 = vector.shape_cast %214 : vector<1x1x32xf32> to vector<1x32xf32>
    %216 = vector.broadcast %215 : vector<1x32xf32> to vector<16x32xf32>
    %217 = arith.addf %213, %216 : vector<16x32xf32>
    %218 = arith.addf %217, %201 : vector<16x32xf32>
    %c0_189 = arith.constant 0 : index
    %c0_190 = arith.constant 0 : index
    %c0_191 = arith.constant 0 : index
    %219 = vector.load %arg28[%c0_189, %c0_190, %c0_191] : memref<2x1x32xf32, #tpu.memory_space<vmem>>, vector<1x1x32xf32>
    %220 = vector.shape_cast %219 : vector<1x1x32xf32> to vector<1x32xf32>
    %c0_192 = arith.constant 0 : index
    %c0_193 = arith.constant 0 : index
    %c0_194 = arith.constant 0 : index
    %221 = vector.load %arg29[%c0_192, %c0_193, %c0_194] : memref<2x1x32xf32, #tpu.memory_space<vmem>>, vector<1x1x32xf32>
    %222 = vector.shape_cast %221 : vector<1x1x32xf32> to vector<1x32xf32>
    %cst_195 = arith.constant dense<0.000000e+00> : vector<16xf32>
    %223 = vector.multi_reduction <add>, %218, %cst_195 [1] : vector<16x32xf32> to vector<16xf32>
    %224 = vector.shape_cast %223 : vector<16xf32> to vector<16x1xf32>
    %cst_196 = arith.constant 3.200000e+01 : f32
    %225 = vector.broadcast %cst_196 : f32 to vector<16x1xf32>
    %226 = arith.divf %224, %225 : vector<16x1xf32>
    %227 = vector.broadcast %226 : vector<16x1xf32> to vector<16x32xf32>
    %228 = arith.subf %218, %227 : vector<16x32xf32>
    %229 = arith.mulf %228, %228 : vector<16x32xf32>
    %cst_197 = arith.constant dense<0.000000e+00> : vector<16xf32>
    %230 = vector.multi_reduction <add>, %229, %cst_197 [1] : vector<16x32xf32> to vector<16xf32>
    %231 = vector.shape_cast %230 : vector<16xf32> to vector<16x1xf32>
    %cst_198 = arith.constant 3.200000e+01 : f32
    %232 = vector.broadcast %cst_198 : f32 to vector<16x1xf32>
    %233 = arith.divf %231, %232 : vector<16x1xf32>
    %234 = vector.broadcast %226 : vector<16x1xf32> to vector<16x32xf32>
    %235 = arith.subf %218, %234 : vector<16x32xf32>
    %cst_199 = arith.constant 9.99999974E-6 : f32
    %236 = vector.broadcast %cst_199 : f32 to vector<16x1xf32>
    %237 = arith.addf %233, %236 : vector<16x1xf32>
    %238 = math.rsqrt %237 : vector<16x1xf32>
    %239 = vector.broadcast %238 : vector<16x1xf32> to vector<16x32xf32>
    %240 = arith.mulf %235, %239 : vector<16x32xf32>
    %241 = vector.broadcast %220 : vector<1x32xf32> to vector<16x32xf32>
    %242 = arith.mulf %240, %241 : vector<16x32xf32>
    %243 = vector.broadcast %222 : vector<1x32xf32> to vector<16x32xf32>
    %244 = arith.addf %242, %243 : vector<16x32xf32>
    %c0_200 = arith.constant 0 : index
    %c0_201 = arith.constant 0 : index
    %c0_202 = arith.constant 0 : index
    %245 = vector.load %arg31[%c0_200, %c0_201, %c0_202] : memref<4x16x128xf32, #tpu.memory_space<vmem>>, vector<1x16x128xf32>
    %246 = vector.shape_cast %245 : vector<1x16x128xf32> to vector<16x128xf32>
    %247 = vector.shape_cast %34 : vector<16x128xf32> to vector<1x16x128xf32>
    tpu.vector_store %arg31[%c0_200, %c0_201, %c0_202], %247 {strides = array<i32>} : memref<4x16x128xf32, #tpu.memory_space<vmem>>, vector<1x16x128xf32>,
    %c0_203 = arith.constant 0 : index
    %c0_204 = arith.constant 0 : index
    %c0_205 = arith.constant 0 : index
    %248 = vector.load %arg32[%c0_203, %c0_204, %c0_205] : memref<4x16x128xf32, #tpu.memory_space<vmem>>, vector<1x16x128xf32>
    %249 = vector.shape_cast %248 : vector<1x16x128xf32> to vector<16x128xf32>
    %250 = vector.shape_cast %132 : vector<16x128xf32> to vector<1x16x128xf32>
    tpu.vector_store %arg32[%c0_203, %c0_204, %c0_205], %250 {strides = array<i32>} : memref<4x16x128xf32, #tpu.memory_space<vmem>>, vector<1x16x128xf32>,
    %c1_206 = arith.constant 1 : index
    %c0_207 = arith.constant 0 : index
    %c0_208 = arith.constant 0 : index
    %251 = vector.load %arg31[%c1_206, %c0_207, %c0_208] : memref<4x16x128xf32, #tpu.memory_space<vmem>>, vector<1x16x128xf32>
    %252 = vector.shape_cast %251 : vector<1x16x128xf32> to vector<16x128xf32>
    %253 = vector.shape_cast %67 : vector<16x128xf32> to vector<1x16x128xf32>
    tpu.vector_store %arg31[%c1_206, %c0_207, %c0_208], %253 {strides = array<i32>} : memref<4x16x128xf32, #tpu.memory_space<vmem>>, vector<1x16x128xf32>,
    %c1_209 = arith.constant 1 : index
    %c0_210 = arith.constant 0 : index
    %c0_211 = arith.constant 0 : index
    %254 = vector.load %arg32[%c1_209, %c0_210, %c0_211] : memref<4x16x128xf32, #tpu.memory_space<vmem>>, vector<1x16x128xf32>
    %255 = vector.shape_cast %254 : vector<1x16x128xf32> to vector<16x128xf32>
    %256 = vector.shape_cast %165 : vector<16x128xf32> to vector<1x16x128xf32>
    tpu.vector_store %arg32[%c1_209, %c0_210, %c0_211], %256 {strides = array<i32>} : memref<4x16x128xf32, #tpu.memory_space<vmem>>, vector<1x16x128xf32>,
    %257 = tpu.concatenate %244, %4 in 0 : vector<16x32xf32>, vector<112x32xf32> -> vector<128x32xf32>
    %c1_212 = arith.constant 1 : index
    %c0_213 = arith.constant 0 : index
    %c0_214 = arith.constant 0 : index
    %c0_215 = arith.constant 0 : index
    %258 = vector.load %arg4[%c1_212, %c0_213, %c0_214, %c0_215] : memref<2x2x32x16xf32, #tpu.memory_space<vmem>>, vector<1x1x32x16xf32>
    %259 = vector.shape_cast %258 : vector<1x1x32x16xf32> to vector<32x16xf32>
    %cst_216 = arith.constant dense<0.000000e+00> : vector<16x16xf32>
    %260 = tpu.matmul %244, %259, %cst_216 {dimension_numbers = #tpu.dot_dimension_numbers<[1], [0], [0], [1], [0, 0, 1, 1], [], []>} : vector<16x32xf32>, vector<32x16xf32>, vector<16x16xf32> -> vector<16x16xf32>
    %c1_217 = arith.constant 1 : index
    %c0_218 = arith.constant 0 : index
    %c0_219 = arith.constant 0 : index
    %c0_220 = arith.constant 0 : index
    %261 = vector.load %arg5[%c1_217, %c0_218, %c0_219, %c0_220] : memref<2x2x1x16xf32, #tpu.memory_space<vmem>>, vector<1x1x1x16xf32>
    %262 = vector.shape_cast %261 : vector<1x1x1x16xf32> to vector<1x16xf32>
    %263 = vector.broadcast %262 : vector<1x16xf32> to vector<16x16xf32>
    %264 = arith.addf %260, %263 : vector<16x16xf32>
    %c1_221 = arith.constant 1 : index
    %c0_222 = arith.constant 0 : index
    %c0_223 = arith.constant 0 : index
    %c0_224 = arith.constant 0 : index
    %265 = vector.load %arg6[%c1_221, %c0_222, %c0_223, %c0_224] : memref<2x2x32x16xf32, #tpu.memory_space<vmem>>, vector<1x1x32x16xf32>
    %266 = vector.shape_cast %265 : vector<1x1x32x16xf32> to vector<32x16xf32>
    %cst_225 = arith.constant dense<0.000000e+00> : vector<128x16xf32>
    %267 = tpu.matmul %257, %266, %cst_225 {dimension_numbers = #tpu.dot_dimension_numbers<[1], [0], [0], [1], [0, 0, 1, 1], [], []>} : vector<128x32xf32>, vector<32x16xf32>, vector<128x16xf32> -> vector<128x16xf32>
    %c1_226 = arith.constant 1 : index
    %c0_227 = arith.constant 0 : index
    %c0_228 = arith.constant 0 : index
    %c0_229 = arith.constant 0 : index
    %268 = vector.load %arg7[%c1_226, %c0_227, %c0_228, %c0_229] : memref<2x2x1x16xf32, #tpu.memory_space<vmem>>, vector<1x1x1x16xf32>
    %269 = vector.shape_cast %268 : vector<1x1x1x16xf32> to vector<1x16xf32>
    %270 = vector.broadcast %269 : vector<1x16xf32> to vector<128x16xf32>
    %271 = arith.addf %267, %270 : vector<128x16xf32>
    %c1_230 = arith.constant 1 : index
    %c0_231 = arith.constant 0 : index
    %c0_232 = arith.constant 0 : index
    %c0_233 = arith.constant 0 : index
    %272 = vector.load %arg8[%c1_230, %c0_231, %c0_232, %c0_233] : memref<2x2x32x16xf32, #tpu.memory_space<vmem>>, vector<1x1x32x16xf32>
    %273 = vector.shape_cast %272 : vector<1x1x32x16xf32> to vector<32x16xf32>
    %cst_234 = arith.constant dense<0.000000e+00> : vector<128x16xf32>
    %274 = tpu.matmul %257, %273, %cst_234 {dimension_numbers = #tpu.dot_dimension_numbers<[1], [0], [0], [1], [0, 0, 1, 1], [], []>} : vector<128x32xf32>, vector<32x16xf32>, vector<128x16xf32> -> vector<128x16xf32>
    %c1_235 = arith.constant 1 : index
    %c0_236 = arith.constant 0 : index
    %c0_237 = arith.constant 0 : index
    %c0_238 = arith.constant 0 : index
    %275 = vector.load %arg9[%c1_235, %c0_236, %c0_237, %c0_238] : memref<2x2x1x16xf32, #tpu.memory_space<vmem>>, vector<1x1x1x16xf32>
    %276 = vector.shape_cast %275 : vector<1x1x1x16xf32> to vector<1x16xf32>
    %277 = vector.broadcast %276 : vector<1x16xf32> to vector<128x16xf32>
    %278 = arith.addf %274, %277 : vector<128x16xf32>
    %cst_239 = arith.constant dense<0.000000e+00> : vector<16x128xf32>
    %279 = tpu.matmul %264, %271, %cst_239 {dimension_numbers = #tpu.dot_dimension_numbers<[1], [1], [0], [0], [0, 0, 1, 0], [], []>} : vector<16x16xf32>, vector<128x16xf32>, vector<16x128xf32> -> vector<16x128xf32>
    %280 = arith.addf %279, %2 : vector<16x128xf32>
    %281 = math.exp %280 : vector<16x128xf32>
    %cst_240 = arith.constant dense<0.000000e+00> : vector<16xf32>
    %282 = vector.multi_reduction <add>, %281, %cst_240 [1] : vector<16x128xf32> to vector<16xf32>
    %283 = vector.shape_cast %282 : vector<16xf32> to vector<16x1xf32>
    %284 = tpu.reciprocal %283 {approx = true} : vector<16x1xf32> -> vector<16x1xf32>
    %285 = vector.broadcast %284 : vector<16x1xf32> to vector<16x128xf32>
    %286 = arith.mulf %281, %285 : vector<16x128xf32>
    %cst_241 = arith.constant dense<0.000000e+00> : vector<16x16xf32>
    %287 = tpu.matmul %286, %278, %cst_241 {dimension_numbers = #tpu.dot_dimension_numbers<[1], [0], [0], [1], [0, 0, 1, 1], [], []>} : vector<16x128xf32>, vector<128x16xf32>, vector<16x16xf32> -> vector<16x16xf32>
    %c1_242 = arith.constant 1 : index
    %c0_243 = arith.constant 0 : index
    %c0_244 = arith.constant 0 : index
    %c0_245 = arith.constant 0 : index
    %288 = vector.load %arg10[%c1_242, %c0_243, %c0_244, %c0_245] : memref<2x2x16x32xf32, #tpu.memory_space<vmem>>, vector<1x1x16x32xf32>
    %289 = vector.shape_cast %288 : vector<1x1x16x32xf32> to vector<16x32xf32>
    %cst_246 = arith.constant dense<0.000000e+00> : vector<16x32xf32>
    %290 = tpu.matmul %287, %289, %cst_246 {dimension_numbers = #tpu.dot_dimension_numbers<[1], [0], [0], [1], [0, 0, 1, 1], [], []>} : vector<16x16xf32>, vector<16x32xf32>, vector<16x32xf32> -> vector<16x32xf32>
    %c1_247 = arith.constant 1 : index
    %c1_248 = arith.constant 1 : index
    %c0_249 = arith.constant 0 : index
    %c0_250 = arith.constant 0 : index
    %291 = vector.load %arg4[%c1_247, %c1_248, %c0_249, %c0_250] : memref<2x2x32x16xf32, #tpu.memory_space<vmem>>, vector<1x1x32x16xf32>
    %292 = vector.shape_cast %291 : vector<1x1x32x16xf32> to vector<32x16xf32>
    %cst_251 = arith.constant dense<0.000000e+00> : vector<16x16xf32>
    %293 = tpu.matmul %244, %292, %cst_251 {dimension_numbers = #tpu.dot_dimension_numbers<[1], [0], [0], [1], [0, 0, 1, 1], [], []>} : vector<16x32xf32>, vector<32x16xf32>, vector<16x16xf32> -> vector<16x16xf32>
    %c1_252 = arith.constant 1 : index
    %c1_253 = arith.constant 1 : index
    %c0_254 = arith.constant 0 : index
    %c0_255 = arith.constant 0 : index
    %294 = vector.load %arg5[%c1_252, %c1_253, %c0_254, %c0_255] : memref<2x2x1x16xf32, #tpu.memory_space<vmem>>, vector<1x1x1x16xf32>
    %295 = vector.shape_cast %294 : vector<1x1x1x16xf32> to vector<1x16xf32>
    %296 = vector.broadcast %295 : vector<1x16xf32> to vector<16x16xf32>
    %297 = arith.addf %293, %296 : vector<16x16xf32>
    %c1_256 = arith.constant 1 : index
    %c1_257 = arith.constant 1 : index
    %c0_258 = arith.constant 0 : index
    %c0_259 = arith.constant 0 : index
    %298 = vector.load %arg6[%c1_256, %c1_257, %c0_258, %c0_259] : memref<2x2x32x16xf32, #tpu.memory_space<vmem>>, vector<1x1x32x16xf32>
    %299 = vector.shape_cast %298 : vector<1x1x32x16xf32> to vector<32x16xf32>
    %cst_260 = arith.constant dense<0.000000e+00> : vector<128x16xf32>
    %300 = tpu.matmul %257, %299, %cst_260 {dimension_numbers = #tpu.dot_dimension_numbers<[1], [0], [0], [1], [0, 0, 1, 1], [], []>} : vector<128x32xf32>, vector<32x16xf32>, vector<128x16xf32> -> vector<128x16xf32>
    %c1_261 = arith.constant 1 : index
    %c1_262 = arith.constant 1 : index
    %c0_263 = arith.constant 0 : index
    %c0_264 = arith.constant 0 : index
    %301 = vector.load %arg7[%c1_261, %c1_262, %c0_263, %c0_264] : memref<2x2x1x16xf32, #tpu.memory_space<vmem>>, vector<1x1x1x16xf32>
    %302 = vector.shape_cast %301 : vector<1x1x1x16xf32> to vector<1x16xf32>
    %303 = vector.broadcast %302 : vector<1x16xf32> to vector<128x16xf32>
    %304 = arith.addf %300, %303 : vector<128x16xf32>
    %c1_265 = arith.constant 1 : index
    %c1_266 = arith.constant 1 : index
    %c0_267 = arith.constant 0 : index
    %c0_268 = arith.constant 0 : index
    %305 = vector.load %arg8[%c1_265, %c1_266, %c0_267, %c0_268] : memref<2x2x32x16xf32, #tpu.memory_space<vmem>>, vector<1x1x32x16xf32>
    %306 = vector.shape_cast %305 : vector<1x1x32x16xf32> to vector<32x16xf32>
    %cst_269 = arith.constant dense<0.000000e+00> : vector<128x16xf32>
    %307 = tpu.matmul %257, %306, %cst_269 {dimension_numbers = #tpu.dot_dimension_numbers<[1], [0], [0], [1], [0, 0, 1, 1], [], []>} : vector<128x32xf32>, vector<32x16xf32>, vector<128x16xf32> -> vector<128x16xf32>
    %c1_270 = arith.constant 1 : index
    %c1_271 = arith.constant 1 : index
    %c0_272 = arith.constant 0 : index
    %c0_273 = arith.constant 0 : index
    %308 = vector.load %arg9[%c1_270, %c1_271, %c0_272, %c0_273] : memref<2x2x1x16xf32, #tpu.memory_space<vmem>>, vector<1x1x1x16xf32>
    %309 = vector.shape_cast %308 : vector<1x1x1x16xf32> to vector<1x16xf32>
    %310 = vector.broadcast %309 : vector<1x16xf32> to vector<128x16xf32>
    %311 = arith.addf %307, %310 : vector<128x16xf32>
    %cst_274 = arith.constant dense<0.000000e+00> : vector<16x128xf32>
    %312 = tpu.matmul %297, %304, %cst_274 {dimension_numbers = #tpu.dot_dimension_numbers<[1], [1], [0], [0], [0, 0, 1, 0], [], []>} : vector<16x16xf32>, vector<128x16xf32>, vector<16x128xf32> -> vector<16x128xf32>
    %313 = arith.addf %312, %2 : vector<16x128xf32>
    %314 = math.exp %313 : vector<16x128xf32>
    %cst_275 = arith.constant dense<0.000000e+00> : vector<16xf32>
    %315 = vector.multi_reduction <add>, %314, %cst_275 [1] : vector<16x128xf32> to vector<16xf32>
    %316 = vector.shape_cast %315 : vector<16xf32> to vector<16x1xf32>
    %317 = tpu.reciprocal %316 {approx = true} : vector<16x1xf32> -> vector<16x1xf32>
    %318 = vector.broadcast %317 : vector<16x1xf32> to vector<16x128xf32>
    %319 = arith.mulf %314, %318 : vector<16x128xf32>
    %cst_276 = arith.constant dense<0.000000e+00> : vector<16x16xf32>
    %320 = tpu.matmul %319, %311, %cst_276 {dimension_numbers = #tpu.dot_dimension_numbers<[1], [0], [0], [1], [0, 0, 1, 1], [], []>} : vector<16x128xf32>, vector<128x16xf32>, vector<16x16xf32> -> vector<16x16xf32>
    %c1_277 = arith.constant 1 : index
    %c1_278 = arith.constant 1 : index
    %c0_279 = arith.constant 0 : index
    %c0_280 = arith.constant 0 : index
    %321 = vector.load %arg10[%c1_277, %c1_278, %c0_279, %c0_280] : memref<2x2x16x32xf32, #tpu.memory_space<vmem>>, vector<1x1x16x32xf32>
    %322 = vector.shape_cast %321 : vector<1x1x16x32xf32> to vector<16x32xf32>
    %cst_281 = arith.constant dense<0.000000e+00> : vector<16x32xf32>
    %323 = tpu.matmul %320, %322, %cst_281 {dimension_numbers = #tpu.dot_dimension_numbers<[1], [0], [0], [1], [0, 0, 1, 1], [], []>} : vector<16x16xf32>, vector<16x32xf32>, vector<16x32xf32> -> vector<16x32xf32>
    %324 = arith.addf %290, %323 : vector<16x32xf32>
    %c1_282 = arith.constant 1 : index
    %c0_283 = arith.constant 0 : index
    %c0_284 = arith.constant 0 : index
    %325 = vector.load %arg11[%c1_282, %c0_283, %c0_284] : memref<2x1x32xf32, #tpu.memory_space<vmem>>, vector<1x1x32xf32>
    %326 = vector.shape_cast %325 : vector<1x1x32xf32> to vector<1x32xf32>
    %327 = vector.broadcast %326 : vector<1x32xf32> to vector<16x32xf32>
    %328 = arith.addf %324, %327 : vector<16x32xf32>
    %329 = arith.addf %328, %244 : vector<16x32xf32>
    %c1_285 = arith.constant 1 : index
    %c0_286 = arith.constant 0 : index
    %c0_287 = arith.constant 0 : index
    %330 = vector.load %arg12[%c1_285, %c0_286, %c0_287] : memref<2x1x32xf32, #tpu.memory_space<vmem>>, vector<1x1x32xf32>
    %331 = vector.shape_cast %330 : vector<1x1x32xf32> to vector<1x32xf32>
    %c1_288 = arith.constant 1 : index
    %c0_289 = arith.constant 0 : index
    %c0_290 = arith.constant 0 : index
    %332 = vector.load %arg13[%c1_288, %c0_289, %c0_290] : memref<2x1x32xf32, #tpu.memory_space<vmem>>, vector<1x1x32xf32>
    %333 = vector.shape_cast %332 : vector<1x1x32xf32> to vector<1x32xf32>
    %cst_291 = arith.constant dense<0.000000e+00> : vector<16xf32>
    %334 = vector.multi_reduction <add>, %329, %cst_291 [1] : vector<16x32xf32> to vector<16xf32>
    %335 = vector.shape_cast %334 : vector<16xf32> to vector<16x1xf32>
    %cst_292 = arith.constant 3.200000e+01 : f32
    %336 = vector.broadcast %cst_292 : f32 to vector<16x1xf32>
    %337 = arith.divf %335, %336 : vector<16x1xf32>
    %338 = vector.broadcast %337 : vector<16x1xf32> to vector<16x32xf32>
    %339 = arith.subf %329, %338 : vector<16x32xf32>
    %340 = arith.mulf %339, %339 : vector<16x32xf32>
    %cst_293 = arith.constant dense<0.000000e+00> : vector<16xf32>
    %341 = vector.multi_reduction <add>, %340, %cst_293 [1] : vector<16x32xf32> to vector<16xf32>
    %342 = vector.shape_cast %341 : vector<16xf32> to vector<16x1xf32>
    %cst_294 = arith.constant 3.200000e+01 : f32
    %343 = vector.broadcast %cst_294 : f32 to vector<16x1xf32>
    %344 = arith.divf %342, %343 : vector<16x1xf32>
    %345 = vector.broadcast %337 : vector<16x1xf32> to vector<16x32xf32>
    %346 = arith.subf %329, %345 : vector<16x32xf32>
    %cst_295 = arith.constant 9.99999974E-6 : f32
    %347 = vector.broadcast %cst_295 : f32 to vector<16x1xf32>
    %348 = arith.addf %344, %347 : vector<16x1xf32>
    %349 = math.rsqrt %348 : vector<16x1xf32>
    %350 = vector.broadcast %349 : vector<16x1xf32> to vector<16x32xf32>
    %351 = arith.mulf %346, %350 : vector<16x32xf32>
    %352 = vector.broadcast %331 : vector<1x32xf32> to vector<16x32xf32>
    %353 = arith.mulf %351, %352 : vector<16x32xf32>
    %354 = vector.broadcast %333 : vector<1x32xf32> to vector<16x32xf32>
    %355 = arith.addf %353, %354 : vector<16x32xf32>
    %c1_296 = arith.constant 1 : index
    %c0_297 = arith.constant 0 : index
    %c0_298 = arith.constant 0 : index
    %c0_299 = arith.constant 0 : index
    %356 = vector.load %arg14[%c1_296, %c0_297, %c0_298, %c0_299] : memref<2x2x32x16xf32, #tpu.memory_space<vmem>>, vector<1x1x32x16xf32>
    %357 = vector.shape_cast %356 : vector<1x1x32x16xf32> to vector<32x16xf32>
    %cst_300 = arith.constant dense<0.000000e+00> : vector<16x16xf32>
    %358 = tpu.matmul %355, %357, %cst_300 {dimension_numbers = #tpu.dot_dimension_numbers<[1], [0], [0], [1], [0, 0, 1, 1], [], []>} : vector<16x32xf32>, vector<32x16xf32>, vector<16x16xf32> -> vector<16x16xf32>
    %c1_301 = arith.constant 1 : index
    %c0_302 = arith.constant 0 : index
    %c0_303 = arith.constant 0 : index
    %c0_304 = arith.constant 0 : index
    %359 = vector.load %arg15[%c1_301, %c0_302, %c0_303, %c0_304] : memref<2x2x1x16xf32, #tpu.memory_space<vmem>>, vector<1x1x1x16xf32>
    %360 = vector.shape_cast %359 : vector<1x1x1x16xf32> to vector<1x16xf32>
    %361 = vector.broadcast %360 : vector<1x16xf32> to vector<16x16xf32>
    %362 = arith.addf %358, %361 : vector<16x16xf32>
    %c1_305 = arith.constant 1 : index
    %c0_306 = arith.constant 0 : index
    %c0_307 = arith.constant 0 : index
    %c0_308 = arith.constant 0 : index
    %363 = vector.load %arg16[%c1_305, %c0_306, %c0_307, %c0_308] : memref<2x2x32x16xf32, #tpu.memory_space<vmem>>, vector<1x1x32x16xf32>
    %364 = vector.shape_cast %363 : vector<1x1x32x16xf32> to vector<32x16xf32>
    %cst_309 = arith.constant dense<0.000000e+00> : vector<128x16xf32>
    %365 = tpu.matmul %1, %364, %cst_309 {dimension_numbers = #tpu.dot_dimension_numbers<[1], [0], [0], [1], [0, 0, 1, 1], [], []>} : vector<128x32xf32>, vector<32x16xf32>, vector<128x16xf32> -> vector<128x16xf32>
    %c1_310 = arith.constant 1 : index
    %c0_311 = arith.constant 0 : index
    %c0_312 = arith.constant 0 : index
    %c0_313 = arith.constant 0 : index
    %366 = vector.load %arg17[%c1_310, %c0_311, %c0_312, %c0_313] : memref<2x2x1x16xf32, #tpu.memory_space<vmem>>, vector<1x1x1x16xf32>
    %367 = vector.shape_cast %366 : vector<1x1x1x16xf32> to vector<1x16xf32>
    %368 = vector.broadcast %367 : vector<1x16xf32> to vector<128x16xf32>
    %369 = arith.addf %365, %368 : vector<128x16xf32>
    %c1_314 = arith.constant 1 : index
    %c0_315 = arith.constant 0 : index
    %c0_316 = arith.constant 0 : index
    %c0_317 = arith.constant 0 : index
    %370 = vector.load %arg18[%c1_314, %c0_315, %c0_316, %c0_317] : memref<2x2x32x16xf32, #tpu.memory_space<vmem>>, vector<1x1x32x16xf32>
    %371 = vector.shape_cast %370 : vector<1x1x32x16xf32> to vector<32x16xf32>
    %cst_318 = arith.constant dense<0.000000e+00> : vector<128x16xf32>
    %372 = tpu.matmul %1, %371, %cst_318 {dimension_numbers = #tpu.dot_dimension_numbers<[1], [0], [0], [1], [0, 0, 1, 1], [], []>} : vector<128x32xf32>, vector<32x16xf32>, vector<128x16xf32> -> vector<128x16xf32>
    %c1_319 = arith.constant 1 : index
    %c0_320 = arith.constant 0 : index
    %c0_321 = arith.constant 0 : index
    %c0_322 = arith.constant 0 : index
    %373 = vector.load %arg19[%c1_319, %c0_320, %c0_321, %c0_322] : memref<2x2x1x16xf32, #tpu.memory_space<vmem>>, vector<1x1x1x16xf32>
    %374 = vector.shape_cast %373 : vector<1x1x1x16xf32> to vector<1x16xf32>
    %375 = vector.broadcast %374 : vector<1x16xf32> to vector<128x16xf32>
    %376 = arith.addf %372, %375 : vector<128x16xf32>
    %cst_323 = arith.constant dense<0.000000e+00> : vector<16x128xf32>
    %377 = tpu.matmul %362, %369, %cst_323 {dimension_numbers = #tpu.dot_dimension_numbers<[1], [1], [0], [0], [0, 0, 1, 0], [], []>} : vector<16x16xf32>, vector<128x16xf32>, vector<16x128xf32> -> vector<16x128xf32>
    %378 = arith.addf %377, %3 : vector<16x128xf32>
    %379 = math.exp %378 : vector<16x128xf32>
    %cst_324 = arith.constant dense<0.000000e+00> : vector<16xf32>
    %380 = vector.multi_reduction <add>, %379, %cst_324 [1] : vector<16x128xf32> to vector<16xf32>
    %381 = vector.shape_cast %380 : vector<16xf32> to vector<16x1xf32>
    %382 = tpu.reciprocal %381 {approx = true} : vector<16x1xf32> -> vector<16x1xf32>
    %383 = vector.broadcast %382 : vector<16x1xf32> to vector<16x128xf32>
    %384 = arith.mulf %379, %383 : vector<16x128xf32>
    %cst_325 = arith.constant dense<0.000000e+00> : vector<16x16xf32>
    %385 = tpu.matmul %384, %376, %cst_325 {dimension_numbers = #tpu.dot_dimension_numbers<[1], [0], [0], [1], [0, 0, 1, 1], [], []>} : vector<16x128xf32>, vector<128x16xf32>, vector<16x16xf32> -> vector<16x16xf32>
    %c1_326 = arith.constant 1 : index
    %c0_327 = arith.constant 0 : index
    %c0_328 = arith.constant 0 : index
    %c0_329 = arith.constant 0 : index
    %386 = vector.load %arg20[%c1_326, %c0_327, %c0_328, %c0_329] : memref<2x2x16x32xf32, #tpu.memory_space<vmem>>, vector<1x1x16x32xf32>
    %387 = vector.shape_cast %386 : vector<1x1x16x32xf32> to vector<16x32xf32>
    %cst_330 = arith.constant dense<0.000000e+00> : vector<16x32xf32>
    %388 = tpu.matmul %385, %387, %cst_330 {dimension_numbers = #tpu.dot_dimension_numbers<[1], [0], [0], [1], [0, 0, 1, 1], [], []>} : vector<16x16xf32>, vector<16x32xf32>, vector<16x32xf32> -> vector<16x32xf32>
    %c1_331 = arith.constant 1 : index
    %c1_332 = arith.constant 1 : index
    %c0_333 = arith.constant 0 : index
    %c0_334 = arith.constant 0 : index
    %389 = vector.load %arg14[%c1_331, %c1_332, %c0_333, %c0_334] : memref<2x2x32x16xf32, #tpu.memory_space<vmem>>, vector<1x1x32x16xf32>
    %390 = vector.shape_cast %389 : vector<1x1x32x16xf32> to vector<32x16xf32>
    %cst_335 = arith.constant dense<0.000000e+00> : vector<16x16xf32>
    %391 = tpu.matmul %355, %390, %cst_335 {dimension_numbers = #tpu.dot_dimension_numbers<[1], [0], [0], [1], [0, 0, 1, 1], [], []>} : vector<16x32xf32>, vector<32x16xf32>, vector<16x16xf32> -> vector<16x16xf32>
    %c1_336 = arith.constant 1 : index
    %c1_337 = arith.constant 1 : index
    %c0_338 = arith.constant 0 : index
    %c0_339 = arith.constant 0 : index
    %392 = vector.load %arg15[%c1_336, %c1_337, %c0_338, %c0_339] : memref<2x2x1x16xf32, #tpu.memory_space<vmem>>, vector<1x1x1x16xf32>
    %393 = vector.shape_cast %392 : vector<1x1x1x16xf32> to vector<1x16xf32>
    %394 = vector.broadcast %393 : vector<1x16xf32> to vector<16x16xf32>
    %395 = arith.addf %391, %394 : vector<16x16xf32>
    %c1_340 = arith.constant 1 : index
    %c1_341 = arith.constant 1 : index
    %c0_342 = arith.constant 0 : index
    %c0_343 = arith.constant 0 : index
    %396 = vector.load %arg16[%c1_340, %c1_341, %c0_342, %c0_343] : memref<2x2x32x16xf32, #tpu.memory_space<vmem>>, vector<1x1x32x16xf32>
    %397 = vector.shape_cast %396 : vector<1x1x32x16xf32> to vector<32x16xf32>
    %cst_344 = arith.constant dense<0.000000e+00> : vector<128x16xf32>
    %398 = tpu.matmul %1, %397, %cst_344 {dimension_numbers = #tpu.dot_dimension_numbers<[1], [0], [0], [1], [0, 0, 1, 1], [], []>} : vector<128x32xf32>, vector<32x16xf32>, vector<128x16xf32> -> vector<128x16xf32>
    %c1_345 = arith.constant 1 : index
    %c1_346 = arith.constant 1 : index
    %c0_347 = arith.constant 0 : index
    %c0_348 = arith.constant 0 : index
    %399 = vector.load %arg17[%c1_345, %c1_346, %c0_347, %c0_348] : memref<2x2x1x16xf32, #tpu.memory_space<vmem>>, vector<1x1x1x16xf32>
    %400 = vector.shape_cast %399 : vector<1x1x1x16xf32> to vector<1x16xf32>
    %401 = vector.broadcast %400 : vector<1x16xf32> to vector<128x16xf32>
    %402 = arith.addf %398, %401 : vector<128x16xf32>
    %c1_349 = arith.constant 1 : index
    %c1_350 = arith.constant 1 : index
    %c0_351 = arith.constant 0 : index
    %c0_352 = arith.constant 0 : index
    %403 = vector.load %arg18[%c1_349, %c1_350, %c0_351, %c0_352] : memref<2x2x32x16xf32, #tpu.memory_space<vmem>>, vector<1x1x32x16xf32>
    %404 = vector.shape_cast %403 : vector<1x1x32x16xf32> to vector<32x16xf32>
    %cst_353 = arith.constant dense<0.000000e+00> : vector<128x16xf32>
    %405 = tpu.matmul %1, %404, %cst_353 {dimension_numbers = #tpu.dot_dimension_numbers<[1], [0], [0], [1], [0, 0, 1, 1], [], []>} : vector<128x32xf32>, vector<32x16xf32>, vector<128x16xf32> -> vector<128x16xf32>
    %c1_354 = arith.constant 1 : index
    %c1_355 = arith.constant 1 : index
    %c0_356 = arith.constant 0 : index
    %c0_357 = arith.constant 0 : index
    %406 = vector.load %arg19[%c1_354, %c1_355, %c0_356, %c0_357] : memref<2x2x1x16xf32, #tpu.memory_space<vmem>>, vector<1x1x1x16xf32>
    %407 = vector.shape_cast %406 : vector<1x1x1x16xf32> to vector<1x16xf32>
    %408 = vector.broadcast %407 : vector<1x16xf32> to vector<128x16xf32>
    %409 = arith.addf %405, %408 : vector<128x16xf32>
    %cst_358 = arith.constant dense<0.000000e+00> : vector<16x128xf32>
    %410 = tpu.matmul %395, %402, %cst_358 {dimension_numbers = #tpu.dot_dimension_numbers<[1], [1], [0], [0], [0, 0, 1, 0], [], []>} : vector<16x16xf32>, vector<128x16xf32>, vector<16x128xf32> -> vector<16x128xf32>
    %411 = arith.addf %410, %3 : vector<16x128xf32>
    %412 = math.exp %411 : vector<16x128xf32>
    %cst_359 = arith.constant dense<0.000000e+00> : vector<16xf32>
    %413 = vector.multi_reduction <add>, %412, %cst_359 [1] : vector<16x128xf32> to vector<16xf32>
    %414 = vector.shape_cast %413 : vector<16xf32> to vector<16x1xf32>
    %415 = tpu.reciprocal %414 {approx = true} : vector<16x1xf32> -> vector<16x1xf32>
    %416 = vector.broadcast %415 : vector<16x1xf32> to vector<16x128xf32>
    %417 = arith.mulf %412, %416 : vector<16x128xf32>
    %cst_360 = arith.constant dense<0.000000e+00> : vector<16x16xf32>
    %418 = tpu.matmul %417, %409, %cst_360 {dimension_numbers = #tpu.dot_dimension_numbers<[1], [0], [0], [1], [0, 0, 1, 1], [], []>} : vector<16x128xf32>, vector<128x16xf32>, vector<16x16xf32> -> vector<16x16xf32>
    %c1_361 = arith.constant 1 : index
    %c1_362 = arith.constant 1 : index
    %c0_363 = arith.constant 0 : index
    %c0_364 = arith.constant 0 : index
    %419 = vector.load %arg20[%c1_361, %c1_362, %c0_363, %c0_364] : memref<2x2x16x32xf32, #tpu.memory_space<vmem>>, vector<1x1x16x32xf32>
    %420 = vector.shape_cast %419 : vector<1x1x16x32xf32> to vector<16x32xf32>
    %cst_365 = arith.constant dense<0.000000e+00> : vector<16x32xf32>
    %421 = tpu.matmul %418, %420, %cst_365 {dimension_numbers = #tpu.dot_dimension_numbers<[1], [0], [0], [1], [0, 0, 1, 1], [], []>} : vector<16x16xf32>, vector<16x32xf32>, vector<16x32xf32> -> vector<16x32xf32>
    %422 = arith.addf %388, %421 : vector<16x32xf32>
    %c1_366 = arith.constant 1 : index
    %c0_367 = arith.constant 0 : index
    %c0_368 = arith.constant 0 : index
    %423 = vector.load %arg21[%c1_366, %c0_367, %c0_368] : memref<2x1x32xf32, #tpu.memory_space<vmem>>, vector<1x1x32xf32>
    %424 = vector.shape_cast %423 : vector<1x1x32xf32> to vector<1x32xf32>
    %425 = vector.broadcast %424 : vector<1x32xf32> to vector<16x32xf32>
    %426 = arith.addf %422, %425 : vector<16x32xf32>
    %427 = arith.addf %426, %355 : vector<16x32xf32>
    %c1_369 = arith.constant 1 : index
    %c0_370 = arith.constant 0 : index
    %c0_371 = arith.constant 0 : index
    %428 = vector.load %arg22[%c1_369, %c0_370, %c0_371] : memref<2x1x32xf32, #tpu.memory_space<vmem>>, vector<1x1x32xf32>
    %429 = vector.shape_cast %428 : vector<1x1x32xf32> to vector<1x32xf32>
    %c1_372 = arith.constant 1 : index
    %c0_373 = arith.constant 0 : index
    %c0_374 = arith.constant 0 : index
    %430 = vector.load %arg23[%c1_372, %c0_373, %c0_374] : memref<2x1x32xf32, #tpu.memory_space<vmem>>, vector<1x1x32xf32>
    %431 = vector.shape_cast %430 : vector<1x1x32xf32> to vector<1x32xf32>
    %cst_375 = arith.constant dense<0.000000e+00> : vector<16xf32>
    %432 = vector.multi_reduction <add>, %427, %cst_375 [1] : vector<16x32xf32> to vector<16xf32>
    %433 = vector.shape_cast %432 : vector<16xf32> to vector<16x1xf32>
    %cst_376 = arith.constant 3.200000e+01 : f32
    %434 = vector.broadcast %cst_376 : f32 to vector<16x1xf32>
    %435 = arith.divf %433, %434 : vector<16x1xf32>
    %436 = vector.broadcast %435 : vector<16x1xf32> to vector<16x32xf32>
    %437 = arith.subf %427, %436 : vector<16x32xf32>
    %438 = arith.mulf %437, %437 : vector<16x32xf32>
    %cst_377 = arith.constant dense<0.000000e+00> : vector<16xf32>
    %439 = vector.multi_reduction <add>, %438, %cst_377 [1] : vector<16x32xf32> to vector<16xf32>
    %440 = vector.shape_cast %439 : vector<16xf32> to vector<16x1xf32>
    %cst_378 = arith.constant 3.200000e+01 : f32
    %441 = vector.broadcast %cst_378 : f32 to vector<16x1xf32>
    %442 = arith.divf %440, %441 : vector<16x1xf32>
    %443 = vector.broadcast %435 : vector<16x1xf32> to vector<16x32xf32>
    %444 = arith.subf %427, %443 : vector<16x32xf32>
    %cst_379 = arith.constant 9.99999974E-6 : f32
    %445 = vector.broadcast %cst_379 : f32 to vector<16x1xf32>
    %446 = arith.addf %442, %445 : vector<16x1xf32>
    %447 = math.rsqrt %446 : vector<16x1xf32>
    %448 = vector.broadcast %447 : vector<16x1xf32> to vector<16x32xf32>
    %449 = arith.mulf %444, %448 : vector<16x32xf32>
    %450 = vector.broadcast %429 : vector<1x32xf32> to vector<16x32xf32>
    %451 = arith.mulf %449, %450 : vector<16x32xf32>
    %452 = vector.broadcast %431 : vector<1x32xf32> to vector<16x32xf32>
    %453 = arith.addf %451, %452 : vector<16x32xf32>
    %c1_380 = arith.constant 1 : index
    %c0_381 = arith.constant 0 : index
    %c0_382 = arith.constant 0 : index
    %454 = vector.load %arg24[%c1_380, %c0_381, %c0_382] : memref<2x32x64xf32, #tpu.memory_space<vmem>>, vector<1x32x64xf32>
    %455 = vector.shape_cast %454 : vector<1x32x64xf32> to vector<32x64xf32>
    %cst_383 = arith.constant dense<0.000000e+00> : vector<16x64xf32>
    %456 = tpu.matmul %453, %455, %cst_383 {dimension_numbers = #tpu.dot_dimension_numbers<[1], [0], [0], [1], [0, 0, 1, 1], [], []>} : vector<16x32xf32>, vector<32x64xf32>, vector<16x64xf32> -> vector<16x64xf32>
    %c1_384 = arith.constant 1 : index
    %c0_385 = arith.constant 0 : index
    %c0_386 = arith.constant 0 : index
    %457 = vector.load %arg25[%c1_384, %c0_385, %c0_386] : memref<2x1x64xf32, #tpu.memory_space<vmem>>, vector<1x1x64xf32>
    %458 = vector.shape_cast %457 : vector<1x1x64xf32> to vector<1x64xf32>
    %459 = vector.broadcast %458 : vector<1x64xf32> to vector<16x64xf32>
    %460 = arith.addf %456, %459 : vector<16x64xf32>
    %cst_387 = arith.constant 0.000000e+00 : f32
    %461 = vector.broadcast %cst_387 : f32 to vector<16x64xf32>
    %462 = arith.maximumf %460, %461 : vector<16x64xf32>
    %c1_388 = arith.constant 1 : index
    %c0_389 = arith.constant 0 : index
    %c0_390 = arith.constant 0 : index
    %463 = vector.load %arg26[%c1_388, %c0_389, %c0_390] : memref<2x64x32xf32, #tpu.memory_space<vmem>>, vector<1x64x32xf32>
    %464 = vector.shape_cast %463 : vector<1x64x32xf32> to vector<64x32xf32>
    %cst_391 = arith.constant dense<0.000000e+00> : vector<16x32xf32>
    %465 = tpu.matmul %462, %464, %cst_391 {dimension_numbers = #tpu.dot_dimension_numbers<[1], [0], [0], [1], [0, 0, 1, 1], [], []>} : vector<16x64xf32>, vector<64x32xf32>, vector<16x32xf32> -> vector<16x32xf32>
    %c1_392 = arith.constant 1 : index
    %c0_393 = arith.constant 0 : index
    %c0_394 = arith.constant 0 : index
    %466 = vector.load %arg27[%c1_392, %c0_393, %c0_394] : memref<2x1x32xf32, #tpu.memory_space<vmem>>, vector<1x1x32xf32>
    %467 = vector.shape_cast %466 : vector<1x1x32xf32> to vector<1x32xf32>
    %468 = vector.broadcast %467 : vector<1x32xf32> to vector<16x32xf32>
    %469 = arith.addf %465, %468 : vector<16x32xf32>
    %470 = arith.addf %469, %453 : vector<16x32xf32>
    %c1_395 = arith.constant 1 : index
    %c0_396 = arith.constant 0 : index
    %c0_397 = arith.constant 0 : index
    %471 = vector.load %arg28[%c1_395, %c0_396, %c0_397] : memref<2x1x32xf32, #tpu.memory_space<vmem>>, vector<1x1x32xf32>
    %472 = vector.shape_cast %471 : vector<1x1x32xf32> to vector<1x32xf32>
    %c1_398 = arith.constant 1 : index
    %c0_399 = arith.constant 0 : index
    %c0_400 = arith.constant 0 : index
    %473 = vector.load %arg29[%c1_398, %c0_399, %c0_400] : memref<2x1x32xf32, #tpu.memory_space<vmem>>, vector<1x1x32xf32>
    %474 = vector.shape_cast %473 : vector<1x1x32xf32> to vector<1x32xf32>
    %cst_401 = arith.constant dense<0.000000e+00> : vector<16xf32>
    %475 = vector.multi_reduction <add>, %470, %cst_401 [1] : vector<16x32xf32> to vector<16xf32>
    %476 = vector.shape_cast %475 : vector<16xf32> to vector<16x1xf32>
    %cst_402 = arith.constant 3.200000e+01 : f32
    %477 = vector.broadcast %cst_402 : f32 to vector<16x1xf32>
    %478 = arith.divf %476, %477 : vector<16x1xf32>
    %479 = vector.broadcast %478 : vector<16x1xf32> to vector<16x32xf32>
    %480 = arith.subf %470, %479 : vector<16x32xf32>
    %481 = arith.mulf %480, %480 : vector<16x32xf32>
    %cst_403 = arith.constant dense<0.000000e+00> : vector<16xf32>
    %482 = vector.multi_reduction <add>, %481, %cst_403 [1] : vector<16x32xf32> to vector<16xf32>
    %483 = vector.shape_cast %482 : vector<16xf32> to vector<16x1xf32>
    %cst_404 = arith.constant 3.200000e+01 : f32
    %484 = vector.broadcast %cst_404 : f32 to vector<16x1xf32>
    %485 = arith.divf %483, %484 : vector<16x1xf32>
    %486 = vector.broadcast %478 : vector<16x1xf32> to vector<16x32xf32>
    %487 = arith.subf %470, %486 : vector<16x32xf32>
    %cst_405 = arith.constant 9.99999974E-6 : f32
    %488 = vector.broadcast %cst_405 : f32 to vector<16x1xf32>
    %489 = arith.addf %485, %488 : vector<16x1xf32>
    %490 = math.rsqrt %489 : vector<16x1xf32>
    %491 = vector.broadcast %490 : vector<16x1xf32> to vector<16x32xf32>
    %492 = arith.mulf %487, %491 : vector<16x32xf32>
    %493 = vector.broadcast %472 : vector<1x32xf32> to vector<16x32xf32>
    %494 = arith.mulf %492, %493 : vector<16x32xf32>
    %495 = vector.broadcast %474 : vector<1x32xf32> to vector<16x32xf32>
    %496 = arith.addf %494, %495 : vector<16x32xf32>
    %c2 = arith.constant 2 : index
    %c0_406 = arith.constant 0 : index
    %c0_407 = arith.constant 0 : index
    %497 = vector.load %arg31[%c2, %c0_406, %c0_407] : memref<4x16x128xf32, #tpu.memory_space<vmem>>, vector<1x16x128xf32>
    %498 = vector.shape_cast %497 : vector<1x16x128xf32> to vector<16x128xf32>
    %499 = vector.shape_cast %286 : vector<16x128xf32> to vector<1x16x128xf32>
    tpu.vector_store %arg31[%c2, %c0_406, %c0_407], %499 {strides = array<i32>} : memref<4x16x128xf32, #tpu.memory_space<vmem>>, vector<1x16x128xf32>,
    %c2_408 = arith.constant 2 : index
    %c0_409 = arith.constant 0 : index
    %c0_410 = arith.constant 0 : index
    %500 = vector.load %arg32[%c2_408, %c0_409, %c0_410] : memref<4x16x128xf32, #tpu.memory_space<vmem>>, vector<1x16x128xf32>
    %501 = vector.shape_cast %500 : vector<1x16x128xf32> to vector<16x128xf32>
    %502 = vector.shape_cast %384 : vector<16x128xf32> to vector<1x16x128xf32>
    tpu.vector_store %arg32[%c2_408, %c0_409, %c0_410], %502 {strides = array<i32>} : memref<4x16x128xf32, #tpu.memory_space<vmem>>, vector<1x16x128xf32>,
    %c3 = arith.constant 3 : index
    %c0_411 = arith.constant 0 : index
    %c0_412 = arith.constant 0 : index
    %503 = vector.load %arg31[%c3, %c0_411, %c0_412] : memref<4x16x128xf32, #tpu.memory_space<vmem>>, vector<1x16x128xf32>
    %504 = vector.shape_cast %503 : vector<1x16x128xf32> to vector<16x128xf32>
    %505 = vector.shape_cast %319 : vector<16x128xf32> to vector<1x16x128xf32>
    tpu.vector_store %arg31[%c3, %c0_411, %c0_412], %505 {strides = array<i32>} : memref<4x16x128xf32, #tpu.memory_space<vmem>>, vector<1x16x128xf32>,
    %c3_413 = arith.constant 3 : index
    %c0_414 = arith.constant 0 : index
    %c0_415 = arith.constant 0 : index
    %506 = vector.load %arg32[%c3_413, %c0_414, %c0_415] : memref<4x16x128xf32, #tpu.memory_space<vmem>>, vector<1x16x128xf32>
    %507 = vector.shape_cast %506 : vector<1x16x128xf32> to vector<16x128xf32>
    %508 = vector.shape_cast %417 : vector<16x128xf32> to vector<1x16x128xf32>
    tpu.vector_store %arg32[%c3_413, %c0_414, %c0_415], %508 {strides = array<i32>} : memref<4x16x128xf32, #tpu.memory_space<vmem>>, vector<1x16x128xf32>,
    %c0_416 = arith.constant 0 : index
    %c0_417 = arith.constant 0 : index
    %509 = vector.load %arg30[%c0_416, %c0_417] : memref<16x32xf32, #tpu.memory_space<vmem>>, vector<16x32xf32>
    tpu.vector_store %arg30[%c0_416, %c0_417], %496 {strides = array<i32>} : memref<16x32xf32, #tpu.memory_space<vmem>>, vector<16x32xf32>,
    return
  }
}

</mosaic_0001>

<bundles_post_ra>
// kernel: tpu_custom_call.1
= control target key start
LH: loop header
LB: loop body
LE: loop exit
PB: predicated region body
PF: predicated region fallthrough
CT: control target
= control target key end

     0   :  { %s10287_s6 = smov 1   ;;  %s10288_s10 = smov 2   ;;  %s11830_s0 = inlined_call_operand.smem [shape: u32[33], index: -1, kind: input, shape index: {}] }
   0x1   :  { %s10333_s5 = sld [smem:[%s11830_s0]]   ;;  %s10289_s14 = smov 3  }
   0x2   :  { %s10338_s9 = sld [smem:[%s11830_s0 + %s10287_s6]]   ;;  %s10290_s18 = smov 4  }
   0x3   :  { %s10343_s13 = sld [smem:[%s11830_s0 + %s10288_s10]]   ;;  %s10291_s22 = smov 5  }
   0x4   :  { %s10348_s17 = sld [smem:[%s11830_s0 + %s10289_s14]]   ;;  %s10292_s26 = smov 6  }
   0x5   :  { %s10353_s21 = sld [smem:[%s11830_s0 + %s10290_s18]]   ;;  %s10293_s30 = smov 7  }
   0x6   :  { %s10358_s25 = sld [smem:[%s11830_s0 + %s10291_s22]]   ;;  %s10294_s4 = smov 8  }
   0x7   :  { %s10363_s29 = sld [smem:[%s11830_s0 + %s10292_s26]]   ;;  %s10295_s10 = smov 9  }
   0x8   :  { %s10368_s3 = sld [smem:[%s11830_s0 + %s10293_s30]]   ;;  %s10296_s15 = smov 10  }
   0x9   :  { %s10373_s8 = sld [smem:[%s11830_s0 + %s10294_s4]]   ;;  %s10297_s20 = smov 11  }
   0xa   :  { %11847 = sst [smem:[#allocation9_spill]] %s10348_s17  ;;  %s10298_s26 = smov 12  }
   0xb   :  { %s10378_s14 = sld [smem:[%s11830_s0 + %s10295_s10]]   ;;  %s10299_s1 = smov 13  }
   0xc   :  { %s10383_s19 = sld [smem:[%s11830_s0 + %s10296_s15]]   ;;  %s10300_s7 = smov 14  }
   0xd   :  { %s10388_s24 = sld [smem:[%s11830_s0 + %s10297_s20]]   ;;  %s10301_s15 = smov 15  }
   0xe   :  { %s10393_s30 = sld [smem:[%s11830_s0 + %s10298_s26]]   ;;  %s10302_s22 = smov 16  }
   0xf   :  { %s10398_s6 = sld [smem:[%s11830_s0 + %s10299_s1]]   ;;  %s10303_s28 = smov 17  }
  0x10   :  { %s10403_s12 = sld [smem:[%s11830_s0 + %s10300_s7]]   ;;  %s10304_s7 = smov 18  }
  0x11   :  { %s10408_s20 = sld [smem:[%s11830_s0 + %s10301_s15]]   ;;  %s10305_s15 = smov 19  }
  0x12   :  { %s10413_s27 = sld [smem:[%s11830_s0 + %s10302_s22]]   ;;  %s10306_s22 = smov 20  }
  0x13   :  { %s10418_s4 = sld [smem:[%s11830_s0 + %s10303_s28]]   ;;  %s10307_s28 = smov 21  }
  0x14   :  { %11848 = sst [smem:[#allocation10_spill]] %s10393_s30 }
  0x15   :  { %11849 = sst [smem:[#allocation11_spill]] %s10398_s6 }
  0x16   :  { %s10423_s17 = sld [smem:[%s11830_s0 + %s10304_s7]]   ;;  %s10308_s7 = smov 22  }
  0x17   :  { %11850 = sst [smem:[#allocation12_spill]] %s10408_s20 }
  0x18   :  { %s10428_s20 = sld [smem:[%s11830_s0 + %s10305_s15]]   ;;  %s10309_s15 = smov 23  }
  0x19   :  { %s10433_s6 = sld [smem:[%s11830_s0 + %s10306_s22]]   ;;  %s10310_s22 = smov 24  }
  0x1a   :  { %s10438_s30 = sld [smem:[%s11830_s0 + %s10307_s28]]   ;;  %s10311_s28 = smov 25  }
  0x1c   :  { %11851 = sst [smem:[#allocation13_spill]] %s10423_s17 }
  0x1d   :  { %s10443_s17 = sld [smem:[%s11830_s0 + %s10308_s7]]   ;;  %s10312_s7 = smov 26  }
  0x1e   :  { %11852 = sst [smem:[#allocation14_spill]] %s10428_s20 }
  0x1f   :  { %11853 = sst [smem:[#allocation15_spill]] %s10433_s6 }
  0x20   :  { %11854 = sst [smem:[#allocation16_spill]] %s10438_s30 }
  0x21   :  { %s10448_s20 = sld [smem:[%s11830_s0 + %s10309_s15]]   ;;  %s10313_s15 = smov 27  }
  0x22   :  { %s10453_s6 = sld [smem:[%s11830_s0 + %s10310_s22]]   ;;  %s10314_s22 = smov 28  }
  0x23   :  { %11855 = sst [smem:[#allocation17_spill]] %s10443_s17 }
  0x24   :  { %s10458_s30 = sld [smem:[%s11830_s0 + %s10311_s28]]   ;;  %s10315_s28 = smov 29  }
  0x25   :  { %s10463_s17 = sld [smem:[%s11830_s0 + %s10312_s7]]   ;;  %s10316_s7 = smov 30  }
  0x27   :  { %11856 = sst [smem:[#allocation18_spill]] %s10448_s20 }
  0x28   :  { %11857 = sst [smem:[#allocation19_spill]] %s10453_s6 }
  0x29   :  { %s10468_s20 = sld [smem:[%s11830_s0 + %s10313_s15]]   ;;  %s10317_s15 = smov 31  }
  0x2a   :  { %11858 = sst [smem:[#allocation20_spill]] %s10458_s30 }
  0x2b   :  { %11859 = sst [smem:[#allocation21_spill]] %s10463_s17 }
  0x2c   :  { %s10473_s6 = sld [smem:[%s11830_s0 + %s10314_s22]]   ;;  %s10318_s22 = smov 32  }
  0x2d   :  { %s10478_s30 = sld [smem:[%s11830_s0 + %s10315_s28]]  }
  0x2e   :  { %s10483_s17 = sld [smem:[%s11830_s0 + %s10316_s7]]  }
  0x2f   :  { %11860 = sst [smem:[#allocation22_spill]] %s10468_s20 }
  0x30   :  { %s10488_s20 = sld [smem:[%s11830_s0 + %s10317_s15]]  }
  0x32   :  { %11861 = sst [smem:[#allocation23_spill]] %s10473_s6 }
  0x33   :  { %s10493_s6 = sld [smem:[%s11830_s0 + %s10318_s22]]  }
  0x34   :  { %11862 = sst [smem:[#allocation24_spill]] %s10483_s17 }
  0x35   :  { %71 = vsyncpa [#allocation3], 0  ;;  %v155_v0 = vld [vmem:[%s10353_s21] sm:$0xff]  ;;  %v156_v1 = vld [vmem:[%s10353_s21 + $0x8] sm:$0xff]  ;;  %vm166_vm0 = vcmask 261120  }
  0x36   :  { %v157_v2 = vld [vmem:[%s10353_s21 + $0x10] sm:$0xff]  ;;  %v9151_v3 = vpack.c.bf16 %v156_v1, %v155_v0  ;;  %v158_v4 = vld [vmem:[%s10353_s21 + $0x18] sm:$0xff]  ;;  %v10500_v5 = vld [vmem:[%s10333_s5] sm:$0xff] }
  0x37   :  { %v9155_v6 = vpack.c.bf16 %v158_v4, %v157_v2  ;;  %7883 = vmatprep.mubr.msk.f32.mxu1 %vm166_vm0, %v10500_v5  ;;  %v248_v7 = vld [vmem:[%s10363_s29] sm:$0xff]  ;;  %v249_v8 = vld [vmem:[%s10363_s29 + $0x8] sm:$0xff]  ;;  %7926 = vmatprep.mubr.msk.f32.mxu0 %vm166_vm0, %v10500_v5 }
  0x38   :  { %9152 = vmatprep.subr.bf16.mxu1 %v9151_v3 }
  0x39   :  { %72 = vsyncpa [#allocation5], 0  ;;  %9154 = vmatpush3.bf16.msra.mxu1 %v9151_v3  ;;  %v9159_v9 = vpack.c.bf16 %v249_v8, %v248_v7  ;;  %v250_v10 = vld [vmem:[%s10363_s29 + $0x10] sm:$0xff]  ;;  %v251_v11 = vld [vmem:[%s10363_s29 + $0x18] sm:$0xff]  ;;  %v10319_v14 = vmov 0.0   ;;  %vm563_vm1 = vcmask 130048  }
  0x3a   :  { %9156 = vmatprep.subr.bf16.mxu1 %v9155_v6  ;;  %v10511_v12 = vld [vmem:[%s10333_s5 + $0x8] sm:$0xff]  ;;  %v9163_v13 = vpack.c.bf16 %v251_v11, %v250_v10  ;;  %v407_v15 = vld [vmem:[%s10373_s8] sm:$0xff]  ;;  %v409_v17 = vld [vmem:[%s10373_s8 + $0x10] sm:$0xff]  ;;  %s11865_s0 = sld [smem:[#allocation10_spill]]  ;;  %s11866_s5 = sld [smem:[#allocation11_spill]]  ;;  %vm3242_vm3 = vcmask 523264  }
  0x3b   :  { %v408_v16 = vld [vmem:[%s10373_s8 + $0x8] sm:$0xff]  ;;  %v410_v19 = vld [vmem:[%s10373_s8 + $0x18] sm:$0xff]  ;;  %v6659_v21 = vld [vmem:[%s10358_s25] ss:$0 sm:$0xff]  ;;  %s11867_s28 = sld [smem:[#allocation13_spill]]  ;;  %s11868_s1 = sld [smem:[#allocation12_spill]] }
  0x3c   :  { %v9167_v18 = vpack.c.bf16 %v408_v16, %v407_v15  ;;  %v9171_v20 = vpack.c.bf16 %v410_v19, %v409_v17  ;;  %v6662_v26 = vld [vmem:[%s10368_s3] ss:$0 sm:$0xff]  ;;  %vm10560_vm2 = vmpackc.low %vm563_vm1, %vm563_vm1  ;;  %s11869_s2 = sld [smem:[#allocation14_spill]]  ;;  %s11870_s7 = sld [smem:[#allocation9_spill]] }
  0x3d   :  { %9158 = vmatpush3.bf16.msra.mxu1 %v9155_v6  ;;  %v10601_v6 = vld [vmem:[%s10378_s14] ss:$0 sm:$0xff]  ;;  %s11871_s10 = sld [smem:[#allocation15_spill]]  ;;  %s11872_s11 = sld [smem:[#allocation16_spill]] }
  0x3e   :  { %9160 = vmatprep.subr.bf16.mxu1 %v9159_v9  ;;  %9168 = vmatprep.subr.bf16.mxu0 %v9167_v18  ;;  %s11873_s15 = sld [smem:[#allocation19_spill]]  ;;  %s11874_s16 = sld [smem:[#allocation21_spill]] }
  0x3f   :  { %9170 = vmatpush3.bf16.msra.mxu0 %v9167_v18  ;;  %s11875_s18 = sld [smem:[#allocation17_spill]]  ;;  %s11876_s22 = sld [smem:[#allocation18_spill]] }
  0x40   :  { %7884 = vmatmul.mubr.msk.f32.vlgmr.msra.gmra.mrb[0].mxu1 %vm166_vm0, %v10511_v12  ;;  %9172 = vmatprep.subr.bf16.mxu0 %v9171_v20  ;;  %s11877_s23 = sld [smem:[#allocation20_spill]]  ;;  %s11878_s26 = sld [smem:[#allocation22_spill]] }
  0x41   :  { %9162 = vmatpush3.bf16.msra.mxu1 %v9159_v9  ;;  %7894 = vmatprep.mubr.msk.f32.mxu1 %vm166_vm0, %v10500_v5  ;;  %s11879_s17 = sld [smem:[#allocation23_spill]] }
  0x42   :  { %9164 = vmatprep.subr.bf16.mxu1 %v9163_v13 }
  0x43   :  { %9174 = vmatpush3.bf16.msra.mxu0 %v9171_v20 }
  0x45   :  { %9166 = vmatpush3.bf16.msra.mxu1 %v9163_v13 }
  0x46   :  { %7927 = vmatmul.mubr.msk.f32.vlgmr.msra.gmra.mrb[0].mxu0 %vm166_vm0, %v10511_v12 }
  0x47   :  { %7929 = vmatprep.mubr.f32.mxu0 %v10319_v14 }
  0x48   :  { %7895 = vmatmul.mubr.msk.f32.vlgmr.msra.gmra.mrb[2].mxu1 %vm166_vm0, %v10511_v12 }
  0x49   :  { %7897 = vmatprep.mubr.f32.mxu1 %v10319_v14 }
  0x4a   :  { %7930 = vmatmul.mubr.f32.gmra.mrb[2].mxu0 %v10319_v14 }
  0x4b   :  { %7932 = vmatprep.mubr.f32.mxu0 %v10319_v14 }
  0x4c   :  { %7898 = vmatmul.mubr.f32.gmra.mrb[4].mxu1 %v10319_v14 }
  0x4d   :  { %7900 = vmatprep.mubr.f32.mxu1 %v10319_v14 }
  0x4e   :  { %7933 = vmatmul.mubr.f32.gmra.mrb[4].mxu0 %v10319_v14 }
  0x4f   :  { %7935 = vmatprep.mubr.f32.mxu0 %v10319_v14 }
  0x50   :  { %7901 = vmatmul.mubr.f32.gmra.mrb[6].mxu1 %v10319_v14 }
  0x51   :  { %7903 = vmatprep.mubr.f32.mxu1 %v10319_v14 }
  0x52   :  { %7936 = vmatmul.mubr.f32.gmra.mrb[6].mxu0 %v10319_v14 }
  0x53   :  { %7938 = vmatprep.mubr.f32.mxu0 %v10319_v14 }
  0x54   :  { %7904 = vmatmul.mubr.f32.gmra.mrb[8].mxu1 %v10319_v14 }
  0x55   :  { %7906 = vmatprep.mubr.f32.mxu1 %v10319_v14 }
  0x56   :  { %7939 = vmatmul.mubr.f32.gmra.mrb[8].mxu0 %v10319_v14 }
  0x57   :  { %7941 = vmatprep.mubr.f32.mxu0 %v10319_v14 }
  0x58   :  { %7907 = vmatmul.mubr.f32.gmra.mrb[10].mxu1 %v10319_v14 }
  0x59   :  { %7909 = vmatprep.mubr.f32.mxu1 %v10319_v14 }
  0x5a   :  { %7942 = vmatmul.mubr.f32.gmra.mrb[10].mxu0 %v10319_v14 }
  0x5b   :  { %7944 = vmatprep.mubr.f32.mxu0 %v10319_v14 }
  0x5c   :  { %7910 = vmatmul.mubr.f32.gmra.mrb[12].mxu1 %v10319_v14 }
  0x5d   :  { %7912 = vmatprep.mubr.f32.mxu1 %v10319_v14 }
  0x5e   :  { %7945 = vmatmul.mubr.f32.gmra.mrb[12].mxu0 %v10319_v14 }
  0x5f   :  { %7947 = vmatprep.mubr.f32.mxu0 %v10319_v14 }
  0x60   :  { %7913 = vmatmul.mubr.f32.gmra.mrb[14].mxu1 %v10319_v14 }
  0x61   :  { %7915 = vmatprep.mubr.f32.mxu1 %v10319_v14 }
  0x62   :  { %7948 = vmatmul.mubr.f32.gmra.mrb[14].mxu0 %v10319_v14 }
  0x64   :  { %7916 = vmatmul.mubr.f32.gmra.mrb[16].mxu1 %v10319_v14 }
 0x113   :  { %v7885_v22 = vpop.f32.mrb[0].mxu1 }
 0x114   :  { %v10554_v23 = vadd.f32 %v7885_v22, %v6659_v21  ;;  %v239_v24 = vpop.f32.mrb[1].mxu1 }
 0x115   :  { %v240_v25 = vadd.f32 %v6659_v21, %v239_v24 }
 0x117   :  { %7982 = vmatprep.mubr.msk.f32.mxu1 %vm563_vm1, %v240_v25 }
 0x119   :  { %v7928_v4 = vpop.f32.mrb[0].mxu0 }
 0x11a   :  { %v490_v7 = vadd.f32 %v7928_v4, %v10601_v6  ;;  %v484_v8 = vpop.f32.mrb[1].mxu0 }
 0x11b   :  { %v7896_v27 = vpop.f32.mrb[2].mxu1  ;;  %v485_v9 = vadd.f32 %v10601_v6, %v484_v8  ;;  %v6694_v8 = vld [vmem:[%s10363_s29 + $0x20] sm:$0xff] }
 0x11c   :  { %v334_v28 = vadd.f32 %v7896_v27, %v6662_v26  ;;  %v328_v29 = vpop.f32.mrb[3].mxu1 }
 0x11d   :  { %v329_v30 = vadd.f32 %v6662_v26, %v328_v29  ;;  %v7931_v10 = vpop.f32.mrb[2].mxu0  ;;  %v9223_v15 = vpack.c.bf16 %v490_v7, %v485_v9  ;;  %v6695_v9 = vld [vmem:[%s10363_s29 + $0x28] sm:$0xff] }
 0x11e   :  { %v500_v11 = vadd.f32 %v7931_v10, %v10601_v6  ;;  %v494_v13 = vpop.f32.mrb[3].mxu0  ;;  %v9263_v10 = vpack.c.bf16 %v6695_v9, %v6694_v8 }
 0x11f   :  { %v9175_v32 = vpack.c.bf16 %v334_v28, %v329_v30  ;;  %v7899_v33 = vpop.f32.mrb[4].mxu1  ;;  %v495_v16 = vadd.f32 %v10601_v6, %v494_v13  ;;  %9224 = vmatprep.subr.bf16.mxu0 %v9223_v15  ;;  %v6697_v13 = vld [vmem:[%s10363_s29 + $0x38] sm:$0xff] }
 0x120   :  { %v344_v34 = vadd.f32 %v7899_v33, %v6662_v26  ;;  %v338_v35 = vpop.f32.mrb[5].mxu1  ;;  %9226 = vmatpush3.bf16.msra.mxu0 %v9223_v15 }
 0x121   :  { %9177 = vmatprep.subr.msk.bf16.mxu1 %vm10560_vm2, %v9175_v32  ;;  %v339_v36 = vadd.f32 %v6662_v26, %v338_v35  ;;  %v7934_v17 = vpop.f32.mrb[4].mxu0  ;;  %v9227_v20 = vpack.c.bf16 %v500_v11, %v495_v16  ;;  %v6696_v11 = vld [vmem:[%s10363_s29 + $0x30] sm:$0xff]  ;;  %v6702_v16 = vld [vmem:[%s10373_s8 + $0x20] sm:$0xff] }
 0x122   :  { %9180 = vmatpush3.bf16.xpose.msk.msra.mxu1 %vm10560_vm2, %v9175_v32  ;;  %v510_v18 = vadd.f32 %v7934_v17, %v10601_v6  ;;  %v504_v19 = vpop.f32.mrb[5].mxu0  ;;  %v9267_v15 = vpack.c.bf16 %v6697_v13, %v6696_v11  ;;  %v6703_v17 = vld [vmem:[%s10373_s8 + $0x28] sm:$0xff]  ;;  %v10718_v11 = vld [vmem:[%s10378_s14 + $0x1] ss:$0 sm:$0xff] }
 0x123   :  { %v9181_v37 = vpack.c.bf16 %v344_v34, %v339_v36  ;;  %v7902_v38 = vpop.f32.mrb[6].mxu1  ;;  %v505_v21 = vadd.f32 %v10601_v6, %v504_v19  ;;  %9228 = vmatprep.subr.bf16.mxu0 %v9227_v20  ;;  %v9271_v19 = vpack.c.bf16 %v6703_v17, %v6702_v16 }
 0x124   :  { %v354_v39 = vadd.f32 %v7902_v38, %v6662_v26  ;;  %v348_v40 = vpop.f32.mrb[7].mxu1  ;;  %9230 = vmatpush3.bf16.msra.mxu0 %v9227_v20  ;;  %v6705_v20 = vld [vmem:[%s10373_s8 + $0x38] sm:$0xff] }
 0x125   :  { %9183 = vmatprep.subr.msk.bf16.mxu1 %vm10560_vm2, %v9181_v37  ;;  %v349_v41 = vadd.f32 %v6662_v26, %v348_v40  ;;  %v7937_v22 = vpop.f32.mrb[6].mxu0  ;;  %v9231_v25 = vpack.c.bf16 %v510_v18, %v505_v21  ;;  %v10619_v40 = vld [vmem:[%s10343_s13] sm:$0xff]  ;;  %v6704_v18 = vld [vmem:[%s10373_s8 + $0x30] sm:$0xff] }
 0x126   :  { %v514_v24 = vpop.f32.mrb[7].mxu0  ;;  %v9275_v21 = vpack.c.bf16 %v6705_v20, %v6704_v18 }
 0x127   :  { %v9187_v42 = vpack.c.bf16 %v354_v39, %v349_v41  ;;  %v7905_v43 = vpop.f32.mrb[8].mxu1  ;;  %9232 = vmatprep.subr.bf16.mxu0 %v9231_v25  ;;  %v10616_v39 = vld [vmem:[%s10343_s13 + $0x8] sm:$0xff] }
 0x128   :  { %v364_v44 = vadd.f32 %v7905_v43, %v6662_v26  ;;  %v358_v45 = vpop.f32.mrb[9].mxu1  ;;  %9234 = vmatpush3.bf16.msra.mxu0 %v9231_v25 }
 0x129   :  { %v359_v46 = vadd.f32 %v6662_v26, %v358_v45  ;;  %v7940_v27 = vpop.f32.mrb[8].mxu0 }
 0x12a   :  { %9186 = vmatpush3.bf16.xpose.msk.msra.mxu1 %vm10560_vm2, %v9181_v37  ;;  %v530_v28 = vadd.f32 %v7940_v27, %v10601_v6  ;;  %v524_v29 = vpop.f32.mrb[9].mxu0 }
 0x12b   :  { %9189 = vmatprep.subr.msk.bf16.mxu1 %vm10560_vm2, %v9187_v42  ;;  %v9193_v47 = vpack.c.bf16 %v364_v44, %v359_v46  ;;  %v7908_v48 = vpop.f32.mrb[10].mxu1  ;;  %v525_v32 = vadd.f32 %v10601_v6, %v524_v29  ;;  %v6699_v29 = vld [vmem:[%s10368_s3 + $0x1] ss:$0 sm:$0xff] }
 0x12c   :  { %v374_v49 = vadd.f32 %v7908_v48, %v6662_v26  ;;  %v368_v50 = vpop.f32.mrb[11].mxu1 }
 0x12d   :  { %v369_v51 = vadd.f32 %v6662_v26, %v368_v50  ;;  %v7943_v33 = vpop.f32.mrb[10].mxu0  ;;  %v9239_v36 = vpack.c.bf16 %v530_v28, %v525_v32 }
 0x12e   :  { %v540_v34 = vadd.f32 %v7943_v33, %v10601_v6  ;;  %v534_v35 = vpop.f32.mrb[11].mxu0 }
 0x12f   :  { %v9199_v52 = vpack.c.bf16 %v374_v49, %v369_v51  ;;  %v7911_v53 = vpop.f32.mrb[12].mxu1  ;;  %v535_v37 = vadd.f32 %v10601_v6, %v534_v35 }
 0x130   :  { %v384_v54 = vadd.f32 %v7911_v53, %v6662_v26  ;;  %v378_v55 = vpop.f32.mrb[13].mxu1 }
 0x131   :  { %v379_v56 = vadd.f32 %v6662_v26, %v378_v55  ;;  %v9243_v38 = vpack.c.bf16 %v540_v34, %v535_v37  ;;  %v7946_v49 = vpop.f32.mrb[12].mxu0 }
 0x132   :  { %9192 = vmatpush3.bf16.xpose.msk.msra.mxu1 %vm10560_vm2, %v9187_v42  ;;  %v550_v50 = vadd.f32 %v7946_v49, %v10601_v6  ;;  %v544_v51 = vpop.f32.mrb[13].mxu0 }
 0x133   :  { %9195 = vmatprep.subr.msk.bf16.mxu1 %vm10560_vm2, %v9193_v47  ;;  %v9205_v57 = vpack.c.bf16 %v384_v54, %v379_v56  ;;  %v7914_v58 = vpop.f32.mrb[14].mxu1 }
 0x134   :  { %v394_v59 = vadd.f32 %v7914_v58, %v6662_v26  ;;  %v388_v60 = vpop.f32.mrb[15].mxu1 }
 0x135   :  { %v389_v61 = vadd.f32 %v6662_v26, %v388_v60  ;;  %v7949_v54 = vpop.f32.mrb[14].mxu0  ;;  %v6687_v60 = vld [vmem:[%s10353_s21 + $0x28] sm:$0xff] }
 0x136   :  { %v554_v55 = vpop.f32.mrb[15].mxu0  ;;  %v560_v56 = vadd.f32 %v7949_v54, %v10601_v6 }
 0x137   :  { %v9211_v62 = vpack.c.bf16 %v394_v59, %v389_v61  ;;  %v7917_v63 = vpop.f32.mrb[16].mxu1  ;;  %v6686_v59 = vld [vmem:[%s10353_s21 + $0x20] sm:$0xff] }
 0x138   :  { %v404_v0 = vadd.f32 %v7917_v63, %v6662_v26  ;;  %v398_v1 = vpop.f32.mrb[17].mxu1  ;;  %v9255_v61 = vpack.c.bf16 %v6687_v60, %v6686_v59 }
 0x139   :  { %v399_v2 = vadd.f32 %v6662_v26, %v398_v1  ;;  %v515_v26 = vadd.f32 %v10601_v6, %v514_v24  ;;  %v6691_v24 = vld [vmem:[%s10358_s25 + $0x1] ss:$0 sm:$0xff] }
 0x13a   :  { %9198 = vmatpush3.bf16.xpose.msk.msra.mxu1 %vm10560_vm2, %v9193_v47 }
 0x13b   :  { %9201 = vmatprep.subr.msk.bf16.mxu1 %vm10560_vm2, %v9199_v52  ;;  %v9217_v3 = vpack.c.bf16 %v404_v0, %v399_v2  ;;  %v6688_v2 = vld [vmem:[%s10353_s21 + $0x30] sm:$0xff] }
 0x142   :  { %9204 = vmatpush3.bf16.xpose.msk.msra.mxu1 %vm10560_vm2, %v9199_v52  ;;  %v545_v52 = vadd.f32 %v10601_v6, %v544_v51 }
 0x143   :  { %9207 = vmatprep.subr.msk.bf16.mxu1 %vm10560_vm2, %v9205_v57 }
 0x144   :  { %v9247_v53 = vpack.c.bf16 %v550_v50, %v545_v52 }
 0x14a   :  { %9210 = vmatpush3.bf16.xpose.msk.msra.mxu1 %vm10560_vm2, %v9205_v57  ;;  %v555_v57 = vadd.f32 %v10601_v6, %v554_v55 }
 0x14b   :  { %9213 = vmatprep.subr.msk.bf16.mxu1 %vm10560_vm2, %v9211_v62 }
 0x14c   :  { %v9251_v58 = vpack.c.bf16 %v560_v56, %v555_v57 }
 0x152   :  { %9216 = vmatpush3.bf16.xpose.msk.msra.mxu1 %vm10560_vm2, %v9211_v62 }
 0x153   :  { %9219 = vmatprep.subr.msk.bf16.mxu1 %vm10560_vm2, %v9217_v3 }
 0x15a   :  { %9222 = vmatpush3.bf16.xpose.msk.msra.mxu1 %vm10560_vm2, %v9217_v3  ;;  %v6689_v3 = vld [vmem:[%s10353_s21 + $0x38] sm:$0xff] }
 0x15b   :  { %v9259_v7 = vpack.c.bf16 %v6689_v3, %v6688_v2  ;;  %9272 = vmatprep.subr.bf16.mxu1 %v9271_v19 }
 0x161   :  { %7983 = vmatmul.mubr.msk.f32.vlgmr.msra.gmra.mrb[18].mxu1 %vm563_vm1, %v10554_v23  ;;  %v520_v23 = vadd.f32 %v7937_v22, %v10601_v6 }
 0x162   :  { %8071 = vmatprep.mubr.msk.f32.mxu1 %vm166_vm0, %v10500_v5  ;;  %9274 = vmatpush3.bf16.msra.mxu1 %v9271_v19 }
 0x163   :  { %v9235_v30 = vpack.c.bf16 %v520_v23, %v515_v26  ;;  %9276 = vmatprep.subr.bf16.mxu1 %v9275_v21 }
 0x165   :  { %9236 = vmatprep.subr.bf16.mxu0 %v9235_v30 }
 0x166   :  { %9238 = vmatpush3.bf16.msra.mxu0 %v9235_v30  ;;  %9278 = vmatpush3.bf16.msra.mxu1 %v9275_v21 }
 0x167   :  { %9240 = vmatprep.subr.bf16.mxu0 %v9239_v36 }
 0x169   :  { %8072 = vmatmul.mubr.msk.f32.vlgmr.msra.gmra.mrb[20].mxu1 %vm166_vm0, %v10511_v12 }
 0x16a   :  { %9242 = vmatpush3.bf16.msra.mxu0 %v9239_v36  ;;  %8074 = vmatprep.mubr.f32.mxu1 %v10319_v14 }
 0x16b   :  { %9244 = vmatprep.subr.bf16.mxu0 %v9243_v38 }
 0x16d   :  { %8075 = vmatmul.mubr.f32.gmra.mrb[22].mxu1 %v10319_v14 }
 0x16e   :  { %9246 = vmatpush3.bf16.msra.mxu0 %v9243_v38  ;;  %8077 = vmatprep.mubr.f32.mxu1 %v10319_v14 }
 0x16f   :  { %9248 = vmatprep.subr.bf16.mxu0 %v9247_v53 }
 0x171   :  { %8078 = vmatmul.mubr.f32.gmra.mrb[24].mxu1 %v10319_v14 }
 0x172   :  { %9250 = vmatpush3.bf16.msra.mxu0 %v9247_v53  ;;  %8080 = vmatprep.mubr.f32.mxu1 %v10319_v14 }
 0x173   :  { %9252 = vmatprep.subr.bf16.mxu0 %v9251_v58 }
 0x175   :  { %8081 = vmatmul.mubr.f32.gmra.mrb[26].mxu1 %v10319_v14 }
 0x176   :  { %9254 = vmatpush3.bf16.msra.mxu0 %v9251_v58  ;;  %8083 = vmatprep.mubr.f32.mxu1 %v10319_v14 }
 0x177   :  { %9256 = vmatprep.subr.bf16.mxu0 %v9255_v61 }
 0x179   :  { %8084 = vmatmul.mubr.f32.gmra.mrb[28].mxu1 %v10319_v14 }
 0x17a   :  { %8086 = vmatprep.mubr.f32.mxu1 %v10319_v14 }
 0x17d   :  { %8087 = vmatmul.mubr.f32.gmra.mrb[30].mxu1 %v10319_v14 }
 0x17e   :  { %8089 = vmatprep.mubr.f32.mxu1 %v10319_v14 }
 0x181   :  { %8090 = vmatmul.mubr.f32.gmra.mrb[32].mxu1 %v10319_v14 }
 0x182   :  { %8092 = vmatprep.mubr.f32.mxu1 %v10319_v14 }
 0x185   :  { %8093 = vmatmul.mubr.f32.gmra.mrb[34].mxu1 %v10319_v14 }
 0x234   :  { %v7984_v41 = vpop.f32.mrb[18].mxu1 }
 0x235   :  { %v684_v42 = vpop.f32.mrb[19].mxu1  ;;  %v690_v43 = vadd.f32 %v7984_v41, %v10616_v39 }
 0x236   :  { %v685_v44 = vadd.f32 %v684_v42, %v10619_v40 }
 0x237   :  { %v695_v46 = vmul.f32 1.442695, %v690_v43 }
 0x238   :  { %v693_v45 = vmul.f32 1.442695, %v685_v44 }
 0x23a   :  { %10109 = vpow2.f32 %v693_v45 }
 0x23b   :  { %10111 = vpow2.f32 %v695_v46 }
 0x244   :  { %v10110_v47 = vpop.eup %10109 }
 0x245   :  { %697 = vadd.xlane.f32.xlu0 %v10110_v47  ;;  %v10112_v48 = vpop.eup %10111 }
 0x249   :  { %699 = vadd.xlane.f32.xlu0 %v10112_v48 }
 0x2d2   :  { %v698_v62 = vpop.xlane.xlu0 %697 }
 0x2d3   :  { %10113 = vrcp.f32 %v698_v62 }
 0x2d6   :  { %v700_v63 = vpop.xlane.xlu0 %699 }
 0x2d7   :  { %10115 = vrcp.f32 %v700_v63 }
 0x2dd   :  { %v10114_v0 = vpop.eup %10113 }
 0x2de   :  { %v703_v1 = vmul.f32 %v10114_v0, %v10110_v47 }
 0x2e0   :  { %8017 = vmatprep.mubr.f32.mxu0 %v703_v1  ;;  %3370 = vst [vmem:[#allocation4] sm:$0xff] %v703_v1 }
 0x2e1   :  { %v10116_v4 = vpop.eup %10115 }
 0x2e2   :  { %v704_v6 = vmul.f32 %v10116_v4, %v10112_v48 }
 0x2e4   :  { %3371 = vst [vmem:[#allocation4 + $0x8] sm:$0xff] %v704_v6  ;;  %8018 = vmatmul.mubr.f32.vlgmr.msra.gmra.mrb[16].mxu0 %v704_v6 }
 0x2e5   :  { %9258 = vmatpush3.bf16.msra.mxu0 %v9255_v61  ;;  %8028 = vmatprep.mubr.msk.f32.mxu0 %vm166_vm0, %v10500_v5 }
 0x2e6   :  { %9260 = vmatprep.subr.bf16.mxu0 %v9259_v7 }
 0x2e9   :  { %9262 = vmatpush3.bf16.msra.mxu0 %v9259_v7 }
 0x2ea   :  { %9264 = vmatprep.subr.bf16.mxu0 %v9263_v10 }
 0x2ec   :  { %8029 = vmatmul.mubr.msk.f32.vlgmr.msra.gmra.mrb[18].mxu0 %vm166_vm0, %v10511_v12 }
 0x2ed   :  { %9266 = vmatpush3.bf16.msra.mxu0 %v9263_v10  ;;  %8039 = vmatprep.mubr.msk.f32.mxu0 %vm166_vm0, %v10500_v5  ;;  %v8073_v10 = vpop.f32.mrb[20].mxu1 }
 0x2ee   :  { %9268 = vmatprep.subr.bf16.mxu0 %v9267_v15  ;;  %v1113_v13 = vadd.f32 %v8073_v10, %v10718_v11  ;;  %v780_v10 = vld [vmem:[%s10383_s19] sm:$0xff] }
 0x2f1   :  { %9270 = vmatpush3.bf16.msra.mxu0 %v9267_v15  ;;  %v1107_v15 = vpop.f32.mrb[21].mxu1 }
 0x2f2   :  { %v1108_v16 = vadd.f32 %v10718_v11, %v1107_v15  ;;  %v8076_v17 = vpop.f32.mrb[22].mxu1 }
 0x2f3   :  { %v1123_v18 = vadd.f32 %v8076_v17, %v10718_v11  ;;  %v1117_v19 = vpop.f32.mrb[23].mxu1  ;;  %v6734_v17 = vld [vmem:[%s10388_s24] ss:$0 sm:$0xff] }
 0x2f4   :  { %8040 = vmatmul.mubr.msk.f32.vlgmr.msra.gmra.mrb[20].mxu0 %vm166_vm0, %v10511_v12  ;;  %v9327_v20 = vpack.c.bf16 %v1113_v13, %v1108_v16  ;;  %v1118_v21 = vadd.f32 %v10718_v11, %v1117_v19 }
 0x2f5   :  { %8042 = vmatprep.mubr.f32.mxu0 %v10319_v14 }
 0x2f6   :  { %9328 = vmatprep.subr.bf16.mxu1 %v9327_v20 }
 0x2f7   :  { %9330 = vmatpush3.bf16.msra.mxu1 %v9327_v20 }
 0x2f8   :  { %8043 = vmatmul.mubr.f32.gmra.mrb[22].mxu0 %v10319_v14 }
 0x2f9   :  { %8045 = vmatprep.mubr.f32.mxu0 %v10319_v14 }
 0x2fc   :  { %8046 = vmatmul.mubr.f32.gmra.mrb[24].mxu0 %v10319_v14 }
 0x2fd   :  { %8048 = vmatprep.mubr.f32.mxu0 %v10319_v14 }
 0x300   :  { %8049 = vmatmul.mubr.f32.gmra.mrb[26].mxu0 %v10319_v14 }
 0x301   :  { %8051 = vmatprep.mubr.f32.mxu0 %v10319_v14 }
 0x304   :  { %8052 = vmatmul.mubr.f32.gmra.mrb[28].mxu0 %v10319_v14 }
 0x305   :  { %8054 = vmatprep.mubr.f32.mxu0 %v10319_v14 }
 0x308   :  { %8055 = vmatmul.mubr.f32.gmra.mrb[30].mxu0 %v10319_v14 }
 0x309   :  { %8057 = vmatprep.mubr.f32.mxu0 %v10319_v14 }
 0x30c   :  { %8058 = vmatmul.mubr.f32.gmra.mrb[32].mxu0 %v10319_v14 }
 0x30d   :  { %8060 = vmatprep.mubr.f32.mxu0 %v10319_v14 }
 0x310   :  { %8061 = vmatmul.mubr.f32.gmra.mrb[34].mxu0 %v10319_v14 }
 0x3b7   :  { %v10677_v22 = vpop.f32.mrb[16].mxu0 }
 0x3b8   :  { %v10679_v23 = vpop.f32.mrb[17].mxu0 }
 0x3bf   :  { %v8030_v25 = vpop.f32.mrb[18].mxu0 }
 0x3c0   :  { %v867_v26 = vadd.f32 %v8030_v25, %v6691_v24  ;;  %v861_v27 = vpop.f32.mrb[19].mxu0 }
 0x3c1   :  { %v862_v28 = vadd.f32 %v6691_v24, %v861_v27  ;;  %v8079_v24 = vpop.f32.mrb[24].mxu1 }
 0x3c2   :  { %v1133_v25 = vadd.f32 %v8079_v24, %v10718_v11  ;;  %v1127_v27 = vpop.f32.mrb[25].mxu1 }
 0x3c3   :  { %8127 = vmatprep.mubr.msk.f32.mxu0 %vm563_vm1, %v862_v28  ;;  %v1128_v28 = vadd.f32 %v10718_v11, %v1127_v27 }
 0x3c7   :  { %v8041_v30 = vpop.f32.mrb[20].mxu0 }
 0x3c8   :  { %v955_v32 = vadd.f32 %v8041_v30, %v6699_v29  ;;  %v949_v33 = vpop.f32.mrb[21].mxu0 }
 0x3c9   :  { %v950_v34 = vadd.f32 %v6699_v29, %v949_v33  ;;  %v9335_v33 = vpack.c.bf16 %v1133_v25, %v1128_v28  ;;  %v1717_v28 = vld [vmem:[%s10413_s27 + $0x10] sm:$0xff] }
 0x3cb   :  { %v9279_v35 = vpack.c.bf16 %v955_v32, %v950_v34  ;;  %v8044_v36 = vpop.f32.mrb[22].mxu0 }
 0x3cc   :  { %v965_v37 = vadd.f32 %v8044_v36, %v6699_v29  ;;  %v959_v38 = vpop.f32.mrb[23].mxu0 }
 0x3cd   :  { %9281 = vmatprep.subr.msk.bf16.mxu0 %vm10560_vm2, %v9279_v35  ;;  %v960_v41 = vadd.f32 %v6699_v29, %v959_v38 }
 0x3ce   :  { %9284 = vmatpush3.bf16.xpose.msk.msra.mxu0 %vm10560_vm2, %v9279_v35 }
 0x3cf   :  { %v9285_v42 = vpack.c.bf16 %v965_v37, %v960_v41  ;;  %v8047_v43 = vpop.f32.mrb[24].mxu0 }
 0x3d0   :  { %v975_v44 = vadd.f32 %v8047_v43, %v6699_v29  ;;  %v969_v45 = vpop.f32.mrb[25].mxu0 }
 0x3d1   :  { %9287 = vmatprep.subr.msk.bf16.mxu0 %vm10560_vm2, %v9285_v42  ;;  %v970_v46 = vadd.f32 %v6699_v29, %v969_v45 }
 0x3d3   :  { %v9291_v47 = vpack.c.bf16 %v975_v44, %v970_v46  ;;  %v8050_v48 = vpop.f32.mrb[26].mxu0 }
 0x3d4   :  { %v985_v49 = vadd.f32 %v8050_v48, %v6699_v29  ;;  %v979_v50 = vpop.f32.mrb[27].mxu0 }
 0x3d5   :  { %v980_v51 = vadd.f32 %v6699_v29, %v979_v50 }
 0x3d6   :  { %9290 = vmatpush3.bf16.xpose.msk.msra.mxu0 %vm10560_vm2, %v9285_v42 }
 0x3d7   :  { %9293 = vmatprep.subr.msk.bf16.mxu0 %vm10560_vm2, %v9291_v47  ;;  %v9297_v52 = vpack.c.bf16 %v985_v49, %v980_v51  ;;  %v8053_v53 = vpop.f32.mrb[28].mxu0 }
 0x3d8   :  { %v995_v54 = vadd.f32 %v8053_v53, %v6699_v29  ;;  %v989_v55 = vpop.f32.mrb[29].mxu0 }
 0x3d9   :  { %v990_v56 = vadd.f32 %v6699_v29, %v989_v55 }
 0x3db   :  { %v9303_v57 = vpack.c.bf16 %v995_v54, %v990_v56  ;;  %v8056_v58 = vpop.f32.mrb[30].mxu0 }
 0x3dc   :  { %v1005_v59 = vadd.f32 %v8056_v58, %v6699_v29  ;;  %v999_v60 = vpop.f32.mrb[31].mxu0 }
 0x3dd   :  { %v1000_v61 = vadd.f32 %v6699_v29, %v999_v60 }
 0x3de   :  { %9296 = vmatpush3.bf16.xpose.msk.msra.mxu0 %vm10560_vm2, %v9291_v47 }
 0x3df   :  { %9299 = vmatprep.subr.msk.bf16.mxu0 %vm10560_vm2, %v9297_v52  ;;  %v9309_v62 = vpack.c.bf16 %v1005_v59, %v1000_v61  ;;  %v8059_v63 = vpop.f32.mrb[32].mxu0 }
 0x3e0   :  { %v1015_v0 = vadd.f32 %v8059_v63, %v6699_v29  ;;  %v1009_v1 = vpop.f32.mrb[33].mxu0 }
 0x3e1   :  { %v1010_v2 = vadd.f32 %v6699_v29, %v1009_v1  ;;  %v6729_v1 = vld [vmem:[%s10383_s19 + $0x18] sm:$0xff] }
 0x3e3   :  { %v9315_v3 = vpack.c.bf16 %v1015_v0, %v1010_v2  ;;  %v8062_v4 = vpop.f32.mrb[34].mxu0  ;;  %v6728_v0 = vld [vmem:[%s10383_s19 + $0x10] sm:$0xff] }
 0x3e4   :  { %v1025_v6 = vadd.f32 %v8062_v4, %v6699_v29  ;;  %v1019_v7 = vpop.f32.mrb[35].mxu0  ;;  %v9359_v2 = vpack.c.bf16 %v6729_v1, %v6728_v0 }
 0x3e5   :  { %v1020_v8 = vadd.f32 %v6699_v29, %v1019_v7  ;;  %v8082_v29 = vpop.f32.mrb[26].mxu1 }
 0x3e6   :  { %9302 = vmatpush3.bf16.xpose.msk.msra.mxu0 %vm10560_vm2, %v9297_v52  ;;  %v1143_v30 = vadd.f32 %v8082_v29, %v10718_v11  ;;  %v1137_v32 = vpop.f32.mrb[27].mxu1 }
 0x3e7   :  { %9305 = vmatprep.subr.msk.bf16.mxu0 %vm10560_vm2, %v9303_v57  ;;  %v9321_v9 = vpack.c.bf16 %v1025_v6, %v1020_v8  ;;  %v1138_v34 = vadd.f32 %v10718_v11, %v1137_v32  ;;  %v8085_v35 = vpop.f32.mrb[28].mxu1  ;;  %v10758_v32 = vld [vmem:[%s10338_s9] sm:$0xff] }
 0x3e8   :  { %v1153_v36 = vadd.f32 %v8085_v35, %v10718_v11  ;;  %v1147_v37 = vpop.f32.mrb[29].mxu1  ;;  %v10776_v35 = vld [vmem:[%s10338_s9 + $0x20] sm:$0xff] }
 0x3e9   :  { %v9339_v38 = vpack.c.bf16 %v1143_v30, %v1138_v34  ;;  %v1148_v41 = vadd.f32 %v10718_v11, %v1147_v37  ;;  %v8088_v42 = vpop.f32.mrb[30].mxu1  ;;  %v1718_v30 = vld [vmem:[%s10413_s27 + $0x18] sm:$0xff]  ;;  %v10786_v37 = vld [vmem:[%s10338_s9 + $0x30] sm:$0xff] }
 0x3ea   :  { %v1163_v43 = vadd.f32 %v8088_v42, %v10718_v11  ;;  %v1157_v44 = vpop.f32.mrb[31].mxu1  ;;  %v10773_v34 = vld [vmem:[%s10338_s9 + $0x18] sm:$0xff]  ;;  %v10803_v42 = vld [vmem:[%s10338_s9 + $0x48] sm:$0xff] }
 0x3eb   :  { %v9343_v45 = vpack.c.bf16 %v1153_v36, %v1148_v41  ;;  %v1158_v46 = vadd.f32 %v10718_v11, %v1157_v44  ;;  %v8091_v56 = vpop.f32.mrb[32].mxu1  ;;  %v10783_v36 = vld [vmem:[%s10338_s9 + $0x28] sm:$0xff]  ;;  %v10796_v41 = vld [vmem:[%s10338_s9 + $0x40] sm:$0xff]  ;;  %v10813_v44 = vld [vmem:[%s10338_s9 + $0x58] sm:$0xff] }
 0x3ec   :  { %v1167_v58 = vpop.f32.mrb[33].mxu1 }
 0x3ed   :  { %v9347_v47 = vpack.c.bf16 %v1163_v43, %v1158_v46  ;;  %v1168_v59 = vadd.f32 %v10718_v11, %v1167_v58  ;;  %v10806_v43 = vld [vmem:[%s10338_s9 + $0x50] sm:$0xff]  ;;  %v10843_v58 = vld [vmem:[%s10338_s9 + $0x78] sm:$0xff] }
 0x3ee   :  { %9308 = vmatpush3.bf16.xpose.msk.msra.mxu0 %vm10560_vm2, %v9303_v57  ;;  %v1173_v57 = vadd.f32 %v8091_v56, %v10718_v11  ;;  %v10833_v56 = vld [vmem:[%s10338_s9 + $0x68] sm:$0xff] }
 0x3ef   :  { %9311 = vmatprep.subr.msk.bf16.mxu0 %vm10560_vm2, %v9309_v62 }
 0x3f0   :  { %v9351_v60 = vpack.c.bf16 %v1173_v57, %v1168_v59  ;;  %v10838_v57 = vld [vmem:[%s10338_s9 + $0x70] sm:$0xff]  ;;  %v1623_v59 = vld [vmem:[%s10403_s12] sm:$0xff] }
 0x3f6   :  { %9314 = vmatpush3.bf16.xpose.msk.msra.mxu0 %vm10560_vm2, %v9309_v62 }
 0x3f7   :  { %9317 = vmatprep.subr.msk.bf16.mxu0 %vm10560_vm2, %v9315_v3 }
 0x3fe   :  { %9320 = vmatpush3.bf16.xpose.msk.msra.mxu0 %vm10560_vm2, %v9315_v3 }
 0x3ff   :  { %9323 = vmatprep.subr.msk.bf16.mxu0 %vm10560_vm2, %v9321_v9 }
 0x406   :  { %9326 = vmatpush3.bf16.xpose.msk.msra.mxu0 %vm10560_vm2, %v9321_v9 }
 0x40d   :  { %8128 = vmatmul.mubr.msk.f32.vlgmr.msra.gmra.mrb[36].mxu0 %vm563_vm1, %v867_v26  ;;  %v9331_v26 = vpack.c.bf16 %v1123_v18, %v1118_v21 }
 0x40e   :  { %8198 = vmatprep.mubr.msk.f32.mxu0 %vm166_vm0, %v10758_v32 }
 0x40f   :  { %9332 = vmatprep.subr.bf16.mxu1 %v9331_v26 }
 0x410   :  { %9334 = vmatpush3.bf16.msra.mxu1 %v9331_v26  ;;  %v1716_v26 = vld [vmem:[%s10413_s27 + $0x8] sm:$0xff] }
 0x411   :  { %9336 = vmatprep.subr.bf16.mxu1 %v9335_v33 }
 0x414   :  { %9338 = vmatpush3.bf16.msra.mxu1 %v9335_v33  ;;  %v10766_v33 = vld [vmem:[%s10338_s9 + $0x10] sm:$0xff] }
 0x415   :  { %9340 = vmatprep.subr.bf16.mxu1 %v9339_v38 }
 0x418   :  { %9342 = vmatpush3.bf16.msra.mxu1 %v9339_v38  ;;  %v10793_v38 = vld [vmem:[%s10338_s9 + $0x38] sm:$0xff] }
 0x419   :  { %9344 = vmatprep.subr.bf16.mxu1 %v9343_v45 }
 0x41c   :  { %9346 = vmatpush3.bf16.msra.mxu1 %v9343_v45 }
 0x41d   :  { %9348 = vmatprep.subr.bf16.mxu1 %v9347_v47 }
 0x420   :  { %9350 = vmatpush3.bf16.msra.mxu1 %v9347_v47 }
 0x421   :  { %9352 = vmatprep.subr.bf16.mxu1 %v9351_v60 }
 0x424   :  { %9354 = vmatpush3.bf16.msra.mxu1 %v9351_v60  ;;  %v1624_v60 = vld [vmem:[%s10403_s12 + $0x8] sm:$0xff] }
 0x4e0   :  { %v8129_v48 = vpop.f32.mrb[36].mxu0 }
 0x4e1   :  { %v1306_v49 = vpop.f32.mrb[37].mxu0  ;;  %v1312_v50 = vadd.f32 %v8129_v48, %v10616_v39  ;;  %v8094_v39 = vpop.f32.mrb[34].mxu1 }
 0x4e2   :  { %v1307_v51 = vadd.f32 %v1306_v49, %v10619_v40  ;;  %v1177_v61 = vpop.f32.mrb[35].mxu1  ;;  %v1183_v40 = vadd.f32 %v8094_v39, %v10718_v11  ;;  %v9367_v39 = vpack.c.bf16 %v1624_v60, %v1623_v59  ;;  %v6735_v59 = vld [vmem:[%s11865_s0] ss:$0 sm:$0xff] }
 0x4e3   :  { %v1317_v53 = vmul.f32 1.442695, %v1312_v50  ;;  %v1178_v62 = vadd.f32 %v10718_v11, %v1177_v61  ;;  %v781_v11 = vld [vmem:[%s10383_s19 + $0x8] sm:$0xff]  ;;  %v1625_v61 = vld [vmem:[%s10403_s12 + $0x10] sm:$0xff] }
 0x4e4   :  { %v1315_v52 = vmul.f32 1.442695, %v1307_v51  ;;  %v9363_v13 = vpack.c.bf16 %v781_v11, %v780_v10 }
 0x4e5   :  { %v9355_v63 = vpack.c.bf16 %v1183_v40, %v1178_v62  ;;  %v1626_v40 = vld [vmem:[%s10403_s12 + $0x18] sm:$0xff] }
 0x4e6   :  { %10117 = vpow2.f32 %v1315_v52  ;;  %v9371_v62 = vpack.c.bf16 %v1626_v40, %v1625_v61  ;;  %v6736_v40 = vld [vmem:[%s11866_s5] ss:$0 sm:$0xff] }
 0x4e7   :  { %10119 = vpow2.f32 %v1317_v53  ;;  %9356 = vmatprep.subr.bf16.mxu1 %v9355_v63 }
 0x4e8   :  { %9358 = vmatpush3.bf16.msra.mxu1 %v9355_v63  ;;  %v10852_v63 = vld [vmem:[%s10418_s4] ss:$0 sm:$0xff] }
 0x4e9   :  { %9360 = vmatprep.subr.bf16.mxu1 %v9359_v2 }
 0x4f0   :  { %v10118_v54 = vpop.eup %10117 }
 0x4f1   :  { %1319 = vadd.xlane.f32.xlu1 %v10118_v54  ;;  %v10120_v55 = vpop.eup %10119 }
 0x4f5   :  { %1321 = vadd.xlane.f32.xlu1 %v10120_v55 }
 0x57e   :  { %v1320_v3 = vpop.xlane.xlu1 %1319 }
 0x57f   :  { %10121 = vrcp.f32 %v1320_v3 }
 0x582   :  { %v1322_v4 = vpop.xlane.xlu1 %1321 }
 0x583   :  { %10123 = vrcp.f32 %v1322_v4 }
 0x589   :  { %v10122_v6 = vpop.eup %10121 }
 0x58a   :  { %v1325_v7 = vmul.f32 %v10122_v6, %v10118_v54 }
 0x58c   :  { %8162 = vmatprep.mubr.f32.mxu1 %v1325_v7  ;;  %3375 = vst [vmem:[#allocation4 + $0x10] sm:$0xff] %v1325_v7 }
 0x58d   :  { %v10124_v8 = vpop.eup %10123 }
 0x58e   :  { %v1326_v9 = vmul.f32 %v10124_v8, %v10120_v55  ;;  %v10828_v55 = vld [vmem:[%s10338_s9 + $0x60] sm:$0xff] }
 0x590   :  { %3376 = vst [vmem:[#allocation4 + $0x18] sm:$0xff] %v1326_v9  ;;  %8163 = vmatmul.mubr.f32.vlgmr.msra.gmra.mrb[36].mxu1 %v1326_v9 }
 0x591   :  { %9362 = vmatpush3.bf16.msra.mxu1 %v9359_v2 }
 0x592   :  { %9364 = vmatprep.subr.bf16.mxu1 %v9363_v13 }
 0x663   :  { %v8164_v15 = vpop.f32.mrb[36].mxu1 }
 0x664   :  { %v1393_v16 = vpop.f32.mrb[37].mxu1 }
 0x665   :  { %8169 = vmatprep.mubr.msk.f32.mxu1 %vm563_vm1, %v1393_v16 }
 0x666   :  { %8170 = vmatmul.mubr.msk.f32.vlgmr.msra.gmra.mrb[38].mxu1 %vm563_vm1, %v8164_v15 }
 0x667   :  { %9366 = vmatpush3.bf16.msra.mxu1 %v9363_v13  ;;  %8176 = vmatprep.mubr.msk.f32.mxu1 %vm563_vm1, %v10679_v23 }
 0x668   :  { %9368 = vmatprep.subr.bf16.mxu1 %v9367_v39 }
 0x66e   :  { %8177 = vmatmul.mubr.msk.f32.vlgmr.msra.gmra.mrb[38].mxu1 %vm563_vm1, %v10677_v22  ;;  %v1715_v22 = vld [vmem:[%s10413_s27] sm:$0xff] }
 0x66f   :  { %v9375_v29 = vpack.c.bf16 %v1716_v26, %v1715_v22  ;;  %9370 = vmatpush3.bf16.msra.mxu1 %v9367_v39 }
 0x670   :  { %9372 = vmatprep.subr.bf16.mxu1 %v9371_v62 }
 0x671   :  { %9376 = vmatprep.subr.bf16.mxu0 %v9375_v29 }
 0x672   :  { %9378 = vmatpush3.bf16.msra.mxu0 %v9375_v29 }
 0x673   :  { %9374 = vmatpush3.bf16.msra.mxu1 %v9371_v62 }
 0x741   :  { %v8178_v18 = vpop.f32.mrb[38].mxu1 }
 0x742   :  { %v1575_v19 = vadd.f32 %v8178_v18, %v6734_v17  ;;  %v1558_v20 = vpop.f32.mrb[39].mxu1 }
 0x743   :  { %v1574_v21 = vadd.f32 %v6734_v17, %v1558_v20 }
 0x744   :  { %v1577_v24 = vadd.f32 %v1575_v19, %v10511_v12  ;;  %v10763_v12 = vld [vmem:[%s10338_s9 + $0x8] sm:$0xff] }
 0x745   :  { %v1576_v25 = vadd.f32 %v1574_v21, %v10500_v5  ;;  %v9379_v5 = vpack.c.bf16 %v1718_v30, %v1717_v28 }
 0x746   :  { %v1583_v27 = vsel %vm166_vm0, %v1577_v24, 0.0 }
 0x747   :  { %1584 = vadd.xlane.f32.xlu1 %v1583_v27  ;;  %v1580_v23 = vsel %vm166_vm0, %v1576_v25, 0.0  ;;  %9380 = vmatprep.subr.bf16.mxu0 %v9379_v5 }
 0x748   :  { %1581 = vadd.xlane.f32.xlu0 %v1580_v23  ;;  %9382 = vmatpush3.bf16.msra.mxu0 %v9379_v5 }
 0x74b   :  { %8199 = vmatmul.mubr.msk.f32.vlgmr.msra.gmra.mrb[38].mxu0 %vm166_vm0, %v10763_v12 }
 0x74c   :  { %8201 = vmatprep.mubr.msk.f32.mxu0 %vm166_vm0, %v10766_v33 }
 0x74f   :  { %8202 = vmatmul.mubr.msk.f32.gmra.mrb[40].mxu0 %vm166_vm0, %v10773_v34 }
 0x750   :  { %8204 = vmatprep.mubr.msk.f32.mxu0 %vm166_vm0, %v10776_v35 }
 0x753   :  { %8205 = vmatmul.mubr.msk.f32.gmra.mrb[42].mxu0 %vm166_vm0, %v10783_v36 }
 0x754   :  { %8207 = vmatprep.mubr.msk.f32.mxu0 %vm166_vm0, %v10786_v37 }
 0x757   :  { %8208 = vmatmul.mubr.msk.f32.gmra.mrb[44].mxu0 %vm166_vm0, %v10793_v38 }
 0x758   :  { %8210 = vmatprep.mubr.msk.f32.mxu0 %vm166_vm0, %v10796_v41 }
 0x75b   :  { %8211 = vmatmul.mubr.msk.f32.gmra.mrb[46].mxu0 %vm166_vm0, %v10803_v42 }
 0x75c   :  { %8213 = vmatprep.mubr.msk.f32.mxu0 %vm166_vm0, %v10806_v43 }
 0x75f   :  { %8214 = vmatmul.mubr.msk.f32.gmra.mrb[48].mxu0 %vm166_vm0, %v10813_v44 }
 0x760   :  { %8216 = vmatprep.mubr.msk.f32.mxu0 %vm166_vm0, %v10828_v55 }
 0x763   :  { %8217 = vmatmul.mubr.msk.f32.gmra.mrb[50].mxu0 %vm166_vm0, %v10833_v56 }
 0x764   :  { %8219 = vmatprep.mubr.msk.f32.mxu0 %vm166_vm0, %v10838_v57 }
 0x767   :  { %8220 = vmatmul.mubr.msk.f32.gmra.mrb[52].mxu0 %vm166_vm0, %v10843_v58 }
 0x7d4   :  { %v1585_v45 = vpop.xlane.xlu1 %1584 }
 0x7d5   :  { %v1588_v46 = vmul.f32 0.03125, %v1585_v45  ;;  %v1582_v47 = vpop.xlane.xlu0 %1581 }
 0x7d6   :  { %v1587_v48 = vmul.f32 0.03125, %v1582_v47 }
 0x7d7   :  { %v10817_v49 = vsub.f32 %v1577_v24, %v1588_v46 }
 0x7d8   :  { %v10819_v50 = vsub.f32 %v1576_v25, %v1587_v48 }
 0x7d9   :  { %v1592_v51 = vmul.f32 %v10817_v49, %v10817_v49 }
 0x7da   :  { %v1591_v52 = vmul.f32 %v10819_v50, %v10819_v50 }
 0x7db   :  { %v1596_v53 = vsel %vm166_vm0, %v1592_v51, 0.0 }
 0x7dc   :  { %1597 = vadd.xlane.f32.xlu1 %v1596_v53  ;;  %v1593_v54 = vsel %vm166_vm0, %v1591_v52, 0.0 }
 0x7dd   :  { %1594 = vadd.xlane.f32.xlu0 %v1593_v54 }
 0x81e   :  { %v8200_v0 = vpop.f32.mrb[38].mxu0 }
 0x81f   :  { %v1846_v1 = vadd.f32 %v8200_v0, %v10852_v63  ;;  %v1840_v2 = vpop.f32.mrb[39].mxu0 }
 0x820   :  { %v1841_v3 = vadd.f32 %v10852_v63, %v1840_v2 }
 0x822   :  { %v9391_v4 = vpack.c.bf16 %v1846_v1, %v1841_v3  ;;  %v8203_v6 = vpop.f32.mrb[40].mxu0 }
 0x823   :  { %v1856_v7 = vadd.f32 %v8203_v6, %v10852_v63  ;;  %v1850_v8 = vpop.f32.mrb[41].mxu0 }
 0x824   :  { %9393 = vmatprep.subr.msk.bf16.mxu0 %vm10560_vm2, %v9391_v4  ;;  %v1851_v9 = vadd.f32 %v10852_v63, %v1850_v8 }
 0x825   :  { %9396 = vmatpush3.bf16.xpose.msk.msra.mxu0 %vm10560_vm2, %v9391_v4 }
 0x826   :  { %v9397_v10 = vpack.c.bf16 %v1856_v7, %v1851_v9  ;;  %v8206_v11 = vpop.f32.mrb[42].mxu0 }
 0x827   :  { %v1866_v13 = vadd.f32 %v8206_v11, %v10852_v63  ;;  %v1860_v15 = vpop.f32.mrb[43].mxu0 }
 0x828   :  { %9399 = vmatprep.subr.msk.bf16.mxu0 %vm10560_vm2, %v9397_v10  ;;  %v1861_v16 = vadd.f32 %v10852_v63, %v1860_v15  ;;  %v1920_v15 = vld [vmem:[%s11867_s28 + $0x8] sm:$0xff] }
 0x82a   :  { %v9403_v17 = vpack.c.bf16 %v1866_v13, %v1861_v16  ;;  %v8209_v18 = vpop.f32.mrb[44].mxu0  ;;  %v1919_v13 = vld [vmem:[%s11867_s28] sm:$0xff]  ;;  %v1921_v16 = vld [vmem:[%s11867_s28 + $0x10] sm:$0xff] }
 0x82b   :  { %v1876_v19 = vadd.f32 %v8209_v18, %v10852_v63  ;;  %v1870_v20 = vpop.f32.mrb[45].mxu0  ;;  %v1922_v18 = vld [vmem:[%s11867_s28 + $0x18] sm:$0xff] }
 0x82c   :  { %v1871_v21 = vadd.f32 %v10852_v63, %v1870_v20 }
 0x82d   :  { %9402 = vmatpush3.bf16.xpose.msk.msra.mxu0 %vm10560_vm2, %v9397_v10 }
 0x82e   :  { %9405 = vmatprep.subr.msk.bf16.mxu0 %vm10560_vm2, %v9403_v17  ;;  %v9409_v24 = vpack.c.bf16 %v1876_v19, %v1871_v21  ;;  %v8212_v25 = vpop.f32.mrb[46].mxu0  ;;  %v9387_v19 = vpack.c.bf16 %v1922_v18, %v1921_v16  ;;  %v10976_v18 = vld [vmem:[%s11870_s7] sm:$0xff] }
 0x82f   :  { %v1886_v27 = vadd.f32 %v8212_v25, %v10852_v63  ;;  %v1880_v23 = vpop.f32.mrb[47].mxu0 }
 0x830   :  { %v1881_v22 = vadd.f32 %v10852_v63, %v1880_v23  ;;  %v10956_v23 = vld [vmem:[%s11869_s2] ss:$0 sm:$0xff] }
 0x832   :  { %v9415_v26 = vpack.c.bf16 %v1886_v27, %v1881_v22  ;;  %v8215_v28 = vpop.f32.mrb[48].mxu0 }
 0x833   :  { %v1896_v29 = vadd.f32 %v8215_v28, %v10852_v63  ;;  %v1890_v30 = vpop.f32.mrb[49].mxu0 }
 0x834   :  { %v1891_v5 = vadd.f32 %v10852_v63, %v1890_v30 }
 0x835   :  { %9408 = vmatpush3.bf16.xpose.msk.msra.mxu0 %vm10560_vm2, %v9403_v17  ;;  %v9383_v17 = vpack.c.bf16 %v1920_v15, %v1919_v13 }
 0x836   :  { %9411 = vmatprep.subr.msk.bf16.mxu0 %vm10560_vm2, %v9409_v24  ;;  %v9421_v45 = vpack.c.bf16 %v1896_v29, %v1891_v5 }
 0x837   :  { %9384 = vmatprep.subr.bf16.mxu1 %v9383_v17 }
 0x83d   :  { %9414 = vmatpush3.bf16.xpose.msk.msra.mxu0 %vm10560_vm2, %v9409_v24 }
 0x83e   :  { %9417 = vmatprep.subr.msk.bf16.mxu0 %vm10560_vm2, %v9415_v26 }
 0x845   :  { %9420 = vmatpush3.bf16.xpose.msk.msra.mxu0 %vm10560_vm2, %v9415_v26 }
 0x846   :  { %9423 = vmatprep.subr.msk.bf16.mxu0 %vm10560_vm2, %v9421_v45 }
 0x84d   :  { %9426 = vmatpush3.bf16.xpose.msk.msra.mxu0 %vm10560_vm2, %v9421_v45 }
 0x869   :  { %v1598_v46 = vpop.xlane.xlu1 %1597 }
 0x86a   :  { %v1600_v47 = vmul.f32 0.03125, %v1598_v46  ;;  %v1595_v48 = vpop.xlane.xlu0 %1594 }
 0x86b   :  { %v1599_v51 = vmul.f32 0.03125, %v1595_v48 }
 0x86c   :  { %v1602_v52 = vadd.f32 1e-05, %v1600_v47 }
 0x86d   :  { %v1601_v53 = vadd.f32 1e-05, %v1599_v51 }
 0x86e   :  { %10125 = vrsqrt.f32 %v1602_v52 }
 0x86f   :  { %10127 = vrsqrt.f32 %v1601_v53 }
 0x878   :  { %v10126_v54 = vpop.eup %10125 }
 0x879   :  { %v10128_v60 = vpop.eup %10127  ;;  %v1606_v39 = vmul.f32 %v10126_v54, %v10817_v49  ;;  %v8218_v49 = vpop.f32.mrb[50].mxu0 }
 0x87a   :  { %v1605_v61 = vmul.f32 %v10128_v60, %v10819_v50  ;;  %v1906_v50 = vadd.f32 %v8218_v49, %v10852_v63  ;;  %v1900_v3 = vpop.f32.mrb[51].mxu0 }
 0x87b   :  { %v1614_v62 = vmul.f32 %v6735_v59, %v1606_v39  ;;  %v1901_v4 = vadd.f32 %v10852_v63, %v1900_v3  ;;  %v8221_v7 = vpop.f32.mrb[52].mxu0 }
 0x87c   :  { %v1613_v0 = vmul.f32 %v6735_v59, %v1605_v61  ;;  %v1916_v8 = vadd.f32 %v8221_v7, %v10852_v63  ;;  %v1910_v9 = vpop.f32.mrb[53].mxu0 }
 0x87d   :  { %v10896_v2 = vadd.f32 %v6736_v40, %v1614_v62  ;;  %v9427_v6 = vpack.c.bf16 %v1906_v50, %v1901_v4  ;;  %v1911_v10 = vadd.f32 %v10852_v63, %v1910_v9  ;;  %v6737_v63 = vld [vmem:[%s11868_s1] ss:$0 sm:$0xff] }
 0x87e   :  { %v10894_v1 = vadd.f32 %v6736_v40, %v1613_v0 }
 0x87f   :  { %9429 = vmatprep.subr.msk.bf16.mxu0 %vm10560_vm2, %v9427_v6  ;;  %v9433_v11 = vpack.c.bf16 %v1916_v8, %v1911_v10 }
 0x880   :  { %8187 = vmatprep.mubr.msk.f32.mxu1 %vm166_vm0, %v10894_v1  ;;  %9432 = vmatpush3.bf16.xpose.msk.msra.mxu0 %vm10560_vm2, %v9427_v6 }
 0x881   :  { %8188 = vmatmul.mubr.msk.f32.vlgmr.msra.gmra.mrb[40].mxu1 %vm166_vm0, %v10896_v2  ;;  %9435 = vmatprep.subr.msk.bf16.mxu0 %vm10560_vm2, %v9433_v11 }
 0x882   :  { %8230 = vmatprep.mubr.msk.f32.mxu1 %vm166_vm0, %v10758_v32  ;;  %9386 = vmatpush3.bf16.msra.mxu1 %v9383_v17  ;;  %v10973_v17 = vld [vmem:[%s11870_s7 + $0x8] sm:$0xff] }
 0x883   :  { %9388 = vmatprep.subr.bf16.mxu1 %v9387_v19 }
 0x886   :  { %9390 = vmatpush3.bf16.msra.mxu1 %v9387_v19 }
 0x888   :  { %9438 = vmatpush3.bf16.xpose.msk.msra.mxu0 %vm10560_vm2, %v9433_v11 }
 0x889   :  { %8231 = vmatmul.mubr.msk.f32.vlgmr.msra.gmra.mrb[42].mxu1 %vm166_vm0, %v10763_v12 }
 0x88a   :  { %8233 = vmatprep.mubr.msk.f32.mxu1 %vm166_vm0, %v10766_v33 }
 0x88d   :  { %8234 = vmatmul.mubr.msk.f32.gmra.mrb[44].mxu1 %vm166_vm0, %v10773_v34 }
 0x88e   :  { %8236 = vmatprep.mubr.msk.f32.mxu1 %vm166_vm0, %v10776_v35 }
 0x891   :  { %8237 = vmatmul.mubr.msk.f32.gmra.mrb[46].mxu1 %vm166_vm0, %v10783_v36 }
 0x892   :  { %8239 = vmatprep.mubr.msk.f32.mxu1 %vm166_vm0, %v10786_v37 }
 0x895   :  { %8240 = vmatmul.mubr.msk.f32.gmra.mrb[48].mxu1 %vm166_vm0, %v10793_v38 }
 0x896   :  { %8242 = vmatprep.mubr.msk.f32.mxu1 %vm166_vm0, %v10796_v41 }
 0x899   :  { %8243 = vmatmul.mubr.msk.f32.gmra.mrb[50].mxu1 %vm166_vm0, %v10803_v42 }
 0x89a   :  { %8245 = vmatprep.mubr.msk.f32.mxu1 %vm166_vm0, %v10806_v43 }
 0x89d   :  { %8246 = vmatmul.mubr.msk.f32.gmra.mrb[52].mxu1 %vm166_vm0, %v10813_v44 }
 0x89e   :  { %8248 = vmatprep.mubr.msk.f32.mxu1 %vm166_vm0, %v10828_v55 }
 0x8a1   :  { %8249 = vmatmul.mubr.msk.f32.gmra.mrb[54].mxu1 %vm166_vm0, %v10833_v56 }
 0x8a2   :  { %8251 = vmatprep.mubr.msk.f32.mxu1 %vm166_vm0, %v10838_v57 }
 0x8a5   :  { %8252 = vmatmul.mubr.msk.f32.gmra.mrb[56].mxu1 %vm166_vm0, %v10843_v58 }
 0x954   :  { %v8189_v20 = vpop.f32.mrb[40].mxu1 }
 0x955   :  { %v1706_v21 = vpop.f32.mrb[41].mxu1  ;;  %v1712_v25 = vadd.f32 %v8189_v20, %v6737_v63 }
 0x956   :  { %v1707_v24 = vadd.f32 %v6737_v63, %v1706_v21 }
 0x958   :  { %8286 = vmatprep.mubr.msk.f32.mxu0 %vm563_vm1, %v1707_v24 }
 0x959   :  { %8287 = vmatmul.mubr.msk.f32.vlgmr.msra.gmra.mrb[54].mxu0 %vm563_vm1, %v1712_v25 }
 0x95a   :  { %8375 = vmatprep.mubr.msk.f32.mxu0 %vm166_vm0, %v10758_v32 }
 0x95c   :  { %v8232_v27 = vpop.f32.mrb[42].mxu1 }
 0x95d   :  { %v2002_v22 = vadd.f32 %v8232_v27, %v10956_v23  ;;  %v1996_v26 = vpop.f32.mrb[43].mxu1 }
 0x95e   :  { %v1997_v28 = vadd.f32 %v10956_v23, %v1996_v26 }
 0x960   :  { %v8235_v29 = vpop.f32.mrb[44].mxu1  ;;  %v9439_v45 = vpack.c.bf16 %v2002_v22, %v1997_v28 }
 0x961   :  { %v2012_v30 = vadd.f32 %v8235_v29, %v10956_v23  ;;  %v2006_v5 = vpop.f32.mrb[45].mxu1 }
 0x962   :  { %v2007_v46 = vadd.f32 %v10956_v23, %v2006_v5  ;;  %9440 = vmatprep.subr.bf16.mxu1 %v9439_v45 }
 0x963   :  { %9442 = vmatpush3.bf16.msra.mxu1 %v9439_v45  ;;  %v6792_v45 = vld [vmem:[%s10403_s12 + $0x20] sm:$0xff] }
 0x964   :  { %v8238_v47 = vpop.f32.mrb[46].mxu1  ;;  %v9443_v52 = vpack.c.bf16 %v2012_v30, %v2007_v46  ;;  %v6793_v46 = vld [vmem:[%s10403_s12 + $0x28] sm:$0xff] }
 0x965   :  { %v2022_v48 = vadd.f32 %v8238_v47, %v10956_v23  ;;  %v2016_v51 = vpop.f32.mrb[47].mxu1  ;;  %v9471_v47 = vpack.c.bf16 %v6793_v46, %v6792_v45 }
 0x966   :  { %v2017_v53 = vadd.f32 %v10956_v23, %v2016_v51  ;;  %9444 = vmatprep.subr.bf16.mxu1 %v9443_v52 }
 0x967   :  { %9446 = vmatpush3.bf16.msra.mxu1 %v9443_v52 }
 0x968   :  { %v8241_v54 = vpop.f32.mrb[48].mxu1  ;;  %v9447_v39 = vpack.c.bf16 %v2022_v48, %v2017_v53  ;;  %v6794_v53 = vld [vmem:[%s10403_s12 + $0x30] sm:$0xff] }
 0x969   :  { %v2032_v59 = vadd.f32 %v8241_v54, %v10956_v23  ;;  %v2026_v60 = vpop.f32.mrb[49].mxu1  ;;  %v6795_v54 = vld [vmem:[%s10403_s12 + $0x38] sm:$0xff] }
 0x96a   :  { %v2027_v61 = vadd.f32 %v10956_v23, %v2026_v60  ;;  %9448 = vmatprep.subr.bf16.mxu1 %v9447_v39 }
 0x96b   :  { %9450 = vmatpush3.bf16.msra.mxu1 %v9447_v39  ;;  %v9475_v39 = vpack.c.bf16 %v6795_v54, %v6794_v53 }
 0x96c   :  { %v9451_v40 = vpack.c.bf16 %v2032_v59, %v2027_v61  ;;  %v8244_v62 = vpop.f32.mrb[50].mxu1  ;;  %v6800_v61 = vld [vmem:[%s10413_s27 + $0x20] sm:$0xff] }
 0x96d   :  { %v2042_v0 = vadd.f32 %v8244_v62, %v10956_v23  ;;  %v2036_v49 = vpop.f32.mrb[51].mxu1 }
 0x96e   :  { %v2037_v50 = vadd.f32 %v10956_v23, %v2036_v49  ;;  %9452 = vmatprep.subr.bf16.mxu1 %v9451_v40  ;;  %v6803_v49 = vld [vmem:[%s10413_s27 + $0x38] sm:$0xff] }
 0x96f   :  { %9454 = vmatpush3.bf16.msra.mxu1 %v9451_v40  ;;  %v6801_v40 = vld [vmem:[%s10413_s27 + $0x28] sm:$0xff] }
 0x970   :  { %v9455_v3 = vpack.c.bf16 %v2042_v0, %v2037_v50  ;;  %v8247_v4 = vpop.f32.mrb[52].mxu1  ;;  %v9479_v62 = vpack.c.bf16 %v6801_v40, %v6800_v61  ;;  %v6802_v0 = vld [vmem:[%s10413_s27 + $0x30] sm:$0xff] }
 0x971   :  { %v2052_v6 = vadd.f32 %v8247_v4, %v10956_v23  ;;  %v2046_v7 = vpop.f32.mrb[53].mxu1  ;;  %v9483_v50 = vpack.c.bf16 %v6803_v49, %v6802_v0  ;;  %v6824_v4 = vld [vmem:[%s11867_s28 + $0x30] sm:$0xff]  ;;  %v11101_v0 = vld [vmem:[%s11869_s2 + $0x1] ss:$0 sm:$0xff] }
 0x972   :  { %v2047_v8 = vadd.f32 %v10956_v23, %v2046_v7  ;;  %9456 = vmatprep.subr.bf16.mxu1 %v9455_v3  ;;  %v6825_v7 = vld [vmem:[%s11867_s28 + $0x38] sm:$0xff] }
 0x973   :  { %9458 = vmatpush3.bf16.msra.mxu1 %v9455_v3  ;;  %v6823_v3 = vld [vmem:[%s11867_s28 + $0x28] sm:$0xff] }
 0x974   :  { %v9459_v9 = vpack.c.bf16 %v2052_v6, %v2047_v8  ;;  %v8250_v10 = vpop.f32.mrb[54].mxu1  ;;  %v9491_v8 = vpack.c.bf16 %v6825_v7, %v6824_v4 }
 0x975   :  { %v2062_v11 = vadd.f32 %v8250_v10, %v10956_v23  ;;  %v2056_v13 = vpop.f32.mrb[55].mxu1 }
 0x976   :  { %v2057_v15 = vadd.f32 %v10956_v23, %v2056_v13  ;;  %9460 = vmatprep.subr.bf16.mxu1 %v9459_v9 }
 0x977   :  { %9462 = vmatpush3.bf16.msra.mxu1 %v9459_v9 }
 0x978   :  { %v9463_v16 = vpack.c.bf16 %v2062_v11, %v2057_v15  ;;  %v8253_v26 = vpop.f32.mrb[56].mxu1 }
 0x979   :  { %v2066_v28 = vpop.f32.mrb[57].mxu1  ;;  %v2072_v29 = vadd.f32 %v8253_v26, %v10956_v23 }
 0x97a   :  { %9464 = vmatprep.subr.bf16.mxu1 %v9463_v16  ;;  %v2067_v30 = vadd.f32 %v10956_v23, %v2066_v28 }
 0x97b   :  { %9466 = vmatpush3.bf16.msra.mxu1 %v9463_v16 }
 0x97c   :  { %v9467_v5 = vpack.c.bf16 %v2072_v29, %v2067_v30 }
 0x97e   :  { %9468 = vmatprep.subr.bf16.mxu1 %v9467_v5 }
 0x97f   :  { %9470 = vmatpush3.bf16.msra.mxu1 %v9467_v5 }
 0x980   :  { %9472 = vmatprep.subr.bf16.mxu1 %v9471_v47 }
 0xa2c   :  { %v8288_v19 = vpop.f32.mrb[54].mxu0 }
 0xa2d   :  { %v2201_v63 = vadd.f32 %v8288_v19, %v10973_v17  ;;  %v2195_v20 = vpop.f32.mrb[55].mxu0 }
 0xa2e   :  { %v2196_v21 = vadd.f32 %v2195_v20, %v10976_v18 }
 0xa2f   :  { %v2206_v24 = vmul.f32 1.442695, %v2201_v63 }
 0xa30   :  { %v2204_v25 = vmul.f32 1.442695, %v2196_v21 }
 0xa31   :  { %10129 = vpow2.f32 %v2206_v24 }
 0xa32   :  { %10131 = vpow2.f32 %v2204_v25 }
 0xa3b   :  { %v10130_v27 = vpop.eup %10129 }
 0xa3c   :  { %v10132_v22 = vpop.eup %10131  ;;  %2210 = vadd.xlane.f32.xlu1 %v10130_v27 }
 0xa3d   :  { %2208 = vadd.xlane.f32.xlu0 %v10132_v22 }
 0xac9   :  { %v2211_v48 = vpop.xlane.xlu1 %2210 }
 0xaca   :  { %10133 = vrcp.f32 %v2211_v48  ;;  %v2209_v51 = vpop.xlane.xlu0 %2208 }
 0xacb   :  { %10135 = vrcp.f32 %v2209_v51 }
 0xad4   :  { %v10134_v52 = vpop.eup %10133 }
 0xad5   :  { %v10136_v59 = vpop.eup %10135  ;;  %v2215_v23 = vmul.f32 %v10134_v52, %v10130_v27 }
 0xad6   :  { %v2214_v60 = vmul.f32 %v10136_v59, %v10132_v22 }
 0xad7   :  { %3373 = vst [vmem:[#allocation6 + $0x8] sm:$0xff] %v2215_v23 }
 0xad8   :  { %8321 = vmatprep.mubr.f32.mxu1 %v2214_v60  ;;  %3372 = vst [vmem:[#allocation6] sm:$0xff] %v2214_v60 }
 0xad9   :  { %8322 = vmatmul.mubr.f32.vlgmr.msra.gmra.mrb[58].mxu1 %v2215_v23 }
 0xada   :  { %9474 = vmatpush3.bf16.msra.mxu1 %v9471_v47  ;;  %8332 = vmatprep.mubr.msk.f32.mxu1 %vm166_vm0, %v10894_v1 }
 0xadb   :  { %9476 = vmatprep.subr.bf16.mxu1 %v9475_v39 }
 0xade   :  { %9478 = vmatpush3.bf16.msra.mxu1 %v9475_v39 }
 0xadf   :  { %9480 = vmatprep.subr.bf16.mxu1 %v9479_v62 }
 0xae1   :  { %8333 = vmatmul.mubr.msk.f32.vlgmr.msra.gmra.mrb[60].mxu1 %vm166_vm0, %v10896_v2 }
 0xae2   :  { %9482 = vmatpush3.bf16.msra.mxu1 %v9479_v62  ;;  %8343 = vmatprep.mubr.msk.f32.mxu1 %vm166_vm0, %v10758_v32  ;;  %v6822_v32 = vld [vmem:[%s11867_s28 + $0x20] sm:$0xff] }
 0xae3   :  { %9484 = vmatprep.subr.bf16.mxu1 %v9483_v50  ;;  %v9487_v6 = vpack.c.bf16 %v6823_v3, %v6822_v32 }
 0xae5   :  { %9488 = vmatprep.subr.bf16.mxu0 %v9487_v6 }
 0xae6   :  { %9486 = vmatpush3.bf16.msra.mxu1 %v9483_v50  ;;  %9490 = vmatpush3.bf16.msra.mxu0 %v9487_v6 }
 0xae7   :  { %9492 = vmatprep.subr.bf16.mxu0 %v9491_v8 }
 0xae9   :  { %8344 = vmatmul.mubr.msk.f32.vlgmr.msra.gmra.mrb[62].mxu1 %vm166_vm0, %v10763_v12 }
 0xaea   :  { %8346 = vmatprep.mubr.msk.f32.mxu1 %vm166_vm0, %v10766_v33  ;;  %9494 = vmatpush3.bf16.msra.mxu0 %v9491_v8 }
 0xaed   :  { %8347 = vmatmul.mubr.msk.f32.gmra.mrb[64].mxu1 %vm166_vm0, %v10773_v34  ;;  %8376 = vmatmul.mubr.msk.f32.vlgmr.msra.gmra.mrb[56].mxu0 %vm166_vm0, %v10763_v12 }
 0xaee   :  { %8349 = vmatprep.mubr.msk.f32.mxu1 %vm166_vm0, %v10776_v35  ;;  %8378 = vmatprep.mubr.msk.f32.mxu0 %vm166_vm0, %v10766_v33 }
 0xaf1   :  { %8350 = vmatmul.mubr.msk.f32.gmra.mrb[66].mxu1 %vm166_vm0, %v10783_v36  ;;  %8379 = vmatmul.mubr.msk.f32.gmra.mrb[58].mxu0 %vm166_vm0, %v10773_v34  ;;  %v6797_v34 = vld [vmem:[%s11868_s1 + $0x1] ss:$0 sm:$0xff] }
 0xaf2   :  { %8352 = vmatprep.mubr.msk.f32.mxu1 %vm166_vm0, %v10786_v37  ;;  %8381 = vmatprep.mubr.msk.f32.mxu0 %vm166_vm0, %v10776_v35 }
 0xaf5   :  { %8353 = vmatmul.mubr.msk.f32.gmra.mrb[68].mxu1 %vm166_vm0, %v10793_v38  ;;  %8382 = vmatmul.mubr.msk.f32.gmra.mrb[60].mxu0 %vm166_vm0, %v10783_v36 }
 0xaf6   :  { %8355 = vmatprep.mubr.msk.f32.mxu1 %vm166_vm0, %v10796_v41  ;;  %8384 = vmatprep.mubr.msk.f32.mxu0 %vm166_vm0, %v10786_v37 }
 0xaf9   :  { %8356 = vmatmul.mubr.msk.f32.gmra.mrb[70].mxu1 %vm166_vm0, %v10803_v42  ;;  %8385 = vmatmul.mubr.msk.f32.gmra.mrb[62].mxu0 %vm166_vm0, %v10793_v38 }
 0xafa   :  { %8358 = vmatprep.mubr.msk.f32.mxu1 %vm166_vm0, %v10806_v43  ;;  %8387 = vmatprep.mubr.msk.f32.mxu0 %vm166_vm0, %v10796_v41  ;;  %v6805_v41 = vld [vmem:[%s10418_s4 + $0x1] ss:$0 sm:$0xff] }
 0xafd   :  { %8359 = vmatmul.mubr.msk.f32.gmra.mrb[72].mxu1 %vm166_vm0, %v10813_v44  ;;  %8388 = vmatmul.mubr.msk.f32.gmra.mrb[64].mxu0 %vm166_vm0, %v10803_v42 }
 0xafe   :  { %8361 = vmatprep.mubr.msk.f32.mxu1 %vm166_vm0, %v10828_v55  ;;  %8390 = vmatprep.mubr.msk.f32.mxu0 %vm166_vm0, %v10806_v43 }
 0xb01   :  { %8362 = vmatmul.mubr.msk.f32.gmra.mrb[74].mxu1 %vm166_vm0, %v10833_v56  ;;  %8391 = vmatmul.mubr.msk.f32.gmra.mrb[66].mxu0 %vm166_vm0, %v10813_v44 }
 0xb02   :  { %8364 = vmatprep.mubr.msk.f32.mxu1 %vm166_vm0, %v10838_v57  ;;  %8393 = vmatprep.mubr.msk.f32.mxu0 %vm166_vm0, %v10828_v55 }
 0xb05   :  { %8365 = vmatmul.mubr.msk.f32.gmra.mrb[76].mxu1 %vm166_vm0, %v10843_v58  ;;  %8394 = vmatmul.mubr.msk.f32.gmra.mrb[68].mxu0 %vm166_vm0, %v10833_v56 }
 0xb06   :  { %8396 = vmatprep.mubr.msk.f32.mxu0 %vm166_vm0, %v10838_v57 }
 0xb09   :  { %8397 = vmatmul.mubr.msk.f32.gmra.mrb[70].mxu0 %vm166_vm0, %v10843_v58 }
 0xbac   :  { %v11060_v12 = vpop.f32.mrb[58].mxu1 }
 0xbad   :  { %v11062_v33 = vpop.f32.mrb[59].mxu1 }
 0xbb4   :  { %v8334_v35 = vpop.f32.mrb[60].mxu1 }
 0xbb5   :  { %v2378_v36 = vadd.f32 %v8334_v35, %v6797_v34  ;;  %v2372_v37 = vpop.f32.mrb[61].mxu1 }
 0xbb6   :  { %v2373_v38 = vadd.f32 %v6797_v34, %v2372_v37 }
 0xbb8   :  { %8431 = vmatprep.mubr.msk.f32.mxu1 %vm563_vm1, %v2373_v38 }
 0xbbc   :  { %v8345_v42 = vpop.f32.mrb[62].mxu1 }
 0xbbd   :  { %v2466_v43 = vadd.f32 %v8345_v42, %v6805_v41  ;;  %v2460_v44 = vpop.f32.mrb[63].mxu1 }
 0xbbe   :  { %v2461_v55 = vadd.f32 %v6805_v41, %v2460_v44 }
 0xbc0   :  { %v9495_v56 = vpack.c.bf16 %v2466_v43, %v2461_v55  ;;  %v8348_v57 = vpop.f32.mrb[64].mxu1  ;;  %v8377_v62 = vpop.f32.mrb[56].mxu0 }
 0xbc1   :  { %v2476_v9 = vadd.f32 %v8348_v57, %v6805_v41  ;;  %v2470_v58 = vpop.f32.mrb[65].mxu1  ;;  %v2624_v49 = vadd.f32 %v8377_v62, %v11101_v0  ;;  %v2618_v50 = vpop.f32.mrb[57].mxu0  ;;  %v2291_v62 = vld [vmem:[%s11871_s10] sm:$0xff] }
 0xbc2   :  { %9497 = vmatprep.subr.msk.bf16.mxu1 %vm10560_vm2, %v9495_v56  ;;  %v2471_v10 = vadd.f32 %v6805_v41, %v2470_v58  ;;  %v2619_v32 = vadd.f32 %v11101_v0, %v2618_v50 }
 0xbc3   :  { %9500 = vmatpush3.bf16.xpose.msk.msra.mxu1 %vm10560_vm2, %v9495_v56 }
 0xbc4   :  { %v9501_v11 = vpack.c.bf16 %v2476_v9, %v2471_v10  ;;  %v8351_v13 = vpop.f32.mrb[66].mxu1  ;;  %v8380_v3 = vpop.f32.mrb[58].mxu0  ;;  %v9543_v7 = vpack.c.bf16 %v2624_v49, %v2619_v32 }
 0xbc5   :  { %v2486_v15 = vadd.f32 %v8351_v13, %v6805_v41  ;;  %v2480_v16 = vpop.f32.mrb[67].mxu1  ;;  %v2634_v4 = vadd.f32 %v8380_v3, %v11101_v0  ;;  %v2628_v6 = vpop.f32.mrb[59].mxu0  ;;  %v6868_v3 = vld [vmem:[%s11872_s11] ss:$0 sm:$0xff] }
 0xbc6   :  { %9503 = vmatprep.subr.msk.bf16.mxu1 %vm10560_vm2, %v9501_v11  ;;  %v2481_v19 = vadd.f32 %v6805_v41, %v2480_v16  ;;  %v2629_v8 = vadd.f32 %v11101_v0, %v2628_v6  ;;  %9544 = vmatprep.subr.bf16.mxu0 %v9543_v7 }
 0xbc7   :  { %9546 = vmatpush3.bf16.msra.mxu0 %v9543_v7 }
 0xbc8   :  { %v9507_v63 = vpack.c.bf16 %v2486_v15, %v2481_v19  ;;  %v8354_v20 = vpop.f32.mrb[68].mxu1  ;;  %v8383_v34 = vpop.f32.mrb[60].mxu0 }
 0xbc9   :  { %v2496_v21 = vadd.f32 %v8354_v20, %v6805_v41  ;;  %v2490_v24 = vpop.f32.mrb[69].mxu1  ;;  %v2644_v35 = vadd.f32 %v8383_v34, %v11101_v0  ;;  %v2638_v37 = vpop.f32.mrb[61].mxu0 }
 0xbca   :  { %v2491_v25 = vadd.f32 %v6805_v41, %v2490_v24  ;;  %v2639_v38 = vadd.f32 %v11101_v0, %v2638_v37 }
 0xbcb   :  { %9506 = vmatpush3.bf16.xpose.msk.msra.mxu1 %vm10560_vm2, %v9501_v11 }
 0xbcc   :  { %9509 = vmatprep.subr.msk.bf16.mxu1 %vm10560_vm2, %v9507_v63  ;;  %v9513_v27 = vpack.c.bf16 %v2496_v21, %v2491_v25  ;;  %v8357_v22 = vpop.f32.mrb[70].mxu1  ;;  %v9551_v44 = vpack.c.bf16 %v2644_v35, %v2639_v38 }
 0xbcd   :  { %v2506_v26 = vadd.f32 %v8357_v22, %v6805_v41  ;;  %v2500_v28 = vpop.f32.mrb[71].mxu1 }
 0xbce   :  { %v2501_v29 = vadd.f32 %v6805_v41, %v2500_v28 }
 0xbd0   :  { %v9519_v30 = vpack.c.bf16 %v2506_v26, %v2501_v29  ;;  %v8360_v5 = vpop.f32.mrb[72].mxu1 }
 0xbd1   :  { %v2516_v45 = vadd.f32 %v8360_v5, %v6805_v41  ;;  %v2510_v46 = vpop.f32.mrb[73].mxu1 }
 0xbd2   :  { %v2511_v47 = vadd.f32 %v6805_v41, %v2510_v46 }
 0xbd3   :  { %9512 = vmatpush3.bf16.xpose.msk.msra.mxu1 %vm10560_vm2, %v9507_v63 }
 0xbd4   :  { %9515 = vmatprep.subr.msk.bf16.mxu1 %vm10560_vm2, %v9513_v27  ;;  %v9525_v48 = vpack.c.bf16 %v2516_v45, %v2511_v47  ;;  %v8363_v51 = vpop.f32.mrb[74].mxu1 }
 0xbd5   :  { %v2526_v52 = vadd.f32 %v8363_v51, %v6805_v41  ;;  %v2520_v53 = vpop.f32.mrb[75].mxu1 }
 0xbd6   :  { %v2521_v54 = vadd.f32 %v6805_v41, %v2520_v53  ;;  %v6863_v53 = vld [vmem:[%s11871_s10 + $0x18] sm:$0xff] }
 0xbd8   :  { %v9531_v59 = vpack.c.bf16 %v2526_v52, %v2521_v54  ;;  %v8366_v23 = vpop.f32.mrb[76].mxu1 }
 0xbd9   :  { %v2536_v60 = vadd.f32 %v8366_v23, %v6805_v41  ;;  %v2530_v39 = vpop.f32.mrb[77].mxu1 }
 0xbda   :  { %v2531_v61 = vadd.f32 %v6805_v41, %v2530_v39  ;;  %v8386_v41 = vpop.f32.mrb[62].mxu0 }
 0xbdb   :  { %9518 = vmatpush3.bf16.xpose.msk.msra.mxu1 %vm10560_vm2, %v9513_v27  ;;  %v2654_v42 = vadd.f32 %v8386_v41, %v11101_v0  ;;  %v2648_v43 = vpop.f32.mrb[63].mxu0 }
 0xbdc   :  { %9521 = vmatprep.subr.msk.bf16.mxu1 %vm10560_vm2, %v9519_v30  ;;  %v9537_v40 = vpack.c.bf16 %v2536_v60, %v2531_v61  ;;  %v2649_v55 = vadd.f32 %v11101_v0, %v2648_v43  ;;  %v8389_v57 = vpop.f32.mrb[64].mxu0 }
 0xbdd   :  { %v2664_v9 = vadd.f32 %v8389_v57, %v11101_v0  ;;  %v2658_v58 = vpop.f32.mrb[65].mxu0  ;;  %v3134_v57 = vld [vmem:[%s11873_s15 + $0x8] sm:$0xff] }
 0xbde   :  { %v9555_v56 = vpack.c.bf16 %v2654_v42, %v2649_v55  ;;  %v2659_v10 = vadd.f32 %v11101_v0, %v2658_v58  ;;  %v8392_v13 = vpop.f32.mrb[66].mxu0  ;;  %v3135_v58 = vld [vmem:[%s11873_s15 + $0x10] sm:$0xff] }
 0xbdf   :  { %v2674_v15 = vadd.f32 %v8392_v13, %v11101_v0  ;;  %v2668_v16 = vpop.f32.mrb[67].mxu0  ;;  %v3227_v13 = vld [vmem:[%s11874_s16] sm:$0xff] }
 0xbe0   :  { %v9559_v11 = vpack.c.bf16 %v2664_v9, %v2659_v10  ;;  %v2669_v19 = vadd.f32 %v11101_v0, %v2668_v16  ;;  %v8395_v20 = vpop.f32.mrb[68].mxu0  ;;  %v3136_v10 = vld [vmem:[%s11873_s15 + $0x18] sm:$0xff]  ;;  %v3229_v16 = vld [vmem:[%s11874_s16 + $0x10] sm:$0xff] }
 0xbe1   :  { %v2684_v21 = vadd.f32 %v8395_v20, %v11101_v0  ;;  %v2678_v24 = vpop.f32.mrb[69].mxu0 }
 0xbe2   :  { %v9563_v63 = vpack.c.bf16 %v2674_v15, %v2669_v19  ;;  %v2679_v25 = vadd.f32 %v11101_v0, %v2678_v24  ;;  %v8398_v47 = vpop.f32.mrb[70].mxu0  ;;  %v3228_v15 = vld [vmem:[%s11874_s16 + $0x8] sm:$0xff] }
 0xbe3   :  { %9524 = vmatpush3.bf16.xpose.msk.msra.mxu1 %vm10560_vm2, %v9519_v30  ;;  %v2694_v51 = vadd.f32 %v8398_v47, %v11101_v0  ;;  %v9591_v19 = vpack.c.bf16 %v3228_v15, %v3227_v13  ;;  %v3232_v24 = vld [vmem:[%s11874_s16 + $0x28] sm:$0xff]  ;;  %v6897_v15 = vld [vmem:[%s10373_s8 + $0x50] sm:$0xff] }
 0xbe4   :  { %9527 = vmatprep.subr.msk.bf16.mxu1 %vm10560_vm2, %v9525_v48  ;;  %v9567_v27 = vpack.c.bf16 %v2684_v21, %v2679_v25  ;;  %v3231_v21 = vld [vmem:[%s11874_s16 + $0x20] sm:$0xff] }
 0xbe5   :  { %v9599_v25 = vpack.c.bf16 %v3232_v24, %v3231_v21 }
 0xbeb   :  { %9530 = vmatpush3.bf16.xpose.msk.msra.mxu1 %vm10560_vm2, %v9525_v48  ;;  %v2688_v48 = vpop.f32.mrb[71].mxu0 }
 0xbec   :  { %9533 = vmatprep.subr.msk.bf16.mxu1 %vm10560_vm2, %v9531_v59  ;;  %v2689_v52 = vadd.f32 %v11101_v0, %v2688_v48  ;;  %v2292_v0 = vld [vmem:[%s11871_s10 + $0x8] sm:$0xff] }
 0xbed   :  { %v9579_v49 = vpack.c.bf16 %v2292_v0, %v2291_v62 }
 0xbf3   :  { %9536 = vmatpush3.bf16.xpose.msk.msra.mxu1 %vm10560_vm2, %v9531_v59 }
 0xbf4   :  { %9539 = vmatprep.subr.msk.bf16.mxu1 %vm10560_vm2, %v9537_v40 }
 0xbfb   :  { %9542 = vmatpush3.bf16.xpose.msk.msra.mxu1 %vm10560_vm2, %v9537_v40 }
 0xbfc   :  { %9592 = vmatprep.subr.bf16.mxu1 %v9591_v19 }
 0xc02   :  { %8432 = vmatmul.mubr.msk.f32.vlgmr.msra.gmra.mrb[78].mxu1 %vm563_vm1, %v2378_v36  ;;  %v9547_v36 = vpack.c.bf16 %v2634_v4, %v2629_v8 }
 0xc03   :  { %9594 = vmatpush3.bf16.msra.mxu1 %v9591_v19 }
 0xc04   :  { %9548 = vmatprep.subr.bf16.mxu0 %v9547_v36 }
 0xc05   :  { %9550 = vmatpush3.bf16.msra.mxu0 %v9547_v36 }
 0xc06   :  { %9552 = vmatprep.subr.bf16.mxu0 %v9551_v44 }
 0xc09   :  { %9554 = vmatpush3.bf16.msra.mxu0 %v9551_v44 }
 0xc0a   :  { %9556 = vmatprep.subr.bf16.mxu0 %v9555_v56 }
 0xc0d   :  { %9558 = vmatpush3.bf16.msra.mxu0 %v9555_v56  ;;  %v3133_v56 = vld [vmem:[%s11873_s15] sm:$0xff] }
 0xc0e   :  { %9560 = vmatprep.subr.bf16.mxu0 %v9559_v11  ;;  %v9583_v9 = vpack.c.bf16 %v3134_v57, %v3133_v56  ;;  %v6895_v57 = vld [vmem:[%s10373_s8 + $0x40] sm:$0xff] }
 0xc11   :  { %9562 = vmatpush3.bf16.msra.mxu0 %v9559_v11  ;;  %v9587_v11 = vpack.c.bf16 %v3136_v10, %v3135_v58  ;;  %v6881_v10 = vld [vmem:[%s10353_s21 + $0x50] sm:$0xff] }
 0xc12   :  { %9564 = vmatprep.subr.bf16.mxu0 %v9563_v63 }
 0xc15   :  { %9566 = vmatpush3.bf16.msra.mxu0 %v9563_v63  ;;  %v3230_v63 = vld [vmem:[%s11874_s16 + $0x18] sm:$0xff] }
 0xc16   :  { %9568 = vmatprep.subr.bf16.mxu0 %v9567_v27  ;;  %v9595_v20 = vpack.c.bf16 %v3230_v63, %v3229_v16  ;;  %v6898_v16 = vld [vmem:[%s10373_s8 + $0x58] sm:$0xff]  ;;  %v6887_v63 = vld [vmem:[%s10363_s29 + $0x40] sm:$0xff] }
 0xc17   :  { %v9627_v19 = vpack.c.bf16 %v6898_v16, %v6897_v15 }
 0xc18   :  { %9596 = vmatprep.subr.bf16.mxu1 %v9595_v20 }
 0xc19   :  { %9570 = vmatpush3.bf16.msra.mxu0 %v9567_v27  ;;  %9598 = vmatpush3.bf16.msra.mxu1 %v9595_v20  ;;  %v6888_v20 = vld [vmem:[%s10363_s29 + $0x48] sm:$0xff] }
 0xc1a   :  { %9600 = vmatprep.subr.bf16.mxu1 %v9599_v25  ;;  %v9615_v21 = vpack.c.bf16 %v6888_v20, %v6887_v63 }
 0xc1d   :  { %9602 = vmatpush3.bf16.msra.mxu1 %v9599_v25 }
 0xcd5   :  { %v8433_v22 = vpop.f32.mrb[78].mxu1 }
 0xcd6   :  { %v2823_v26 = vadd.f32 %v8433_v22, %v10973_v17  ;;  %v2817_v28 = vpop.f32.mrb[79].mxu1  ;;  %v9571_v17 = vpack.c.bf16 %v2694_v51, %v2689_v52  ;;  %v6870_v51 = vld [vmem:[%s11876_s22] ss:$0 sm:$0xff] }
 0xcd7   :  { %v2818_v29 = vadd.f32 %v2817_v28, %v10976_v18  ;;  %v6862_v18 = vld [vmem:[%s11871_s10 + $0x10] sm:$0xff] }
 0xcd8   :  { %v2828_v30 = vmul.f32 1.442695, %v2823_v26  ;;  %9572 = vmatprep.subr.bf16.mxu0 %v9571_v17  ;;  %v9575_v54 = vpack.c.bf16 %v6863_v53, %v6862_v18 }
 0xcd9   :  { %v2826_v5 = vmul.f32 1.442695, %v2818_v29  ;;  %9574 = vmatpush3.bf16.msra.mxu0 %v9571_v17 }
 0xcda   :  { %10137 = vpow2.f32 %v2828_v30  ;;  %9576 = vmatprep.subr.bf16.mxu0 %v9575_v54 }
 0xcdb   :  { %10139 = vpow2.f32 %v2826_v5 }
 0xce4   :  { %v10138_v45 = vpop.eup %10137 }
 0xce5   :  { %v10140_v46 = vpop.eup %10139  ;;  %2832 = vadd.xlane.f32.xlu1 %v10138_v45 }
 0xce6   :  { %2830 = vadd.xlane.f32.xlu0 %v10140_v46 }
 0xd72   :  { %v2833_v59 = vpop.xlane.xlu1 %2832 }
 0xd73   :  { %10141 = vrcp.f32 %v2833_v59  ;;  %v2831_v23 = vpop.xlane.xlu0 %2830  ;;  %v3234_v59 = vld [vmem:[%s11874_s16 + $0x38] sm:$0xff] }
 0xd74   :  { %10143 = vrcp.f32 %v2831_v23 }
 0xd7d   :  { %v10142_v60 = vpop.eup %10141 }
 0xd7e   :  { %v10144_v39 = vpop.eup %10143  ;;  %v2837_v61 = vmul.f32 %v10142_v60, %v10138_v45  ;;  %v6869_v45 = vld [vmem:[%s11875_s18] ss:$0 sm:$0xff] }
 0xd7f   :  { %v2836_v40 = vmul.f32 %v10144_v39, %v10140_v46  ;;  %v6871_v60 = vld [vmem:[%s11877_s23] ss:$0 sm:$0xff] }
 0xd80   :  { %3379 = vst [vmem:[#allocation6 + $0x18] sm:$0xff] %v2837_v61 }
 0xd81   :  { %8466 = vmatprep.mubr.f32.mxu0 %v2836_v40  ;;  %3378 = vst [vmem:[#allocation6 + $0x10] sm:$0xff] %v2836_v40 }
 0xd82   :  { %8467 = vmatmul.mubr.f32.vlgmr.msra.gmra.mrb[72].mxu0 %v2837_v61 }
 0xd83   :  { %9578 = vmatpush3.bf16.msra.mxu0 %v9575_v54  ;;  %v3233_v54 = vld [vmem:[%s11874_s16 + $0x30] sm:$0xff] }
 0xd84   :  { %9580 = vmatprep.subr.bf16.mxu0 %v9579_v49  ;;  %v9603_v23 = vpack.c.bf16 %v3234_v59, %v3233_v54  ;;  %v6884_v59 = vld [vmem:[%s10358_s25 + $0x2] ss:$0 sm:$0xff] }
 0xd86   :  { %9604 = vmatprep.subr.bf16.mxu1 %v9603_v23 }
 0xd87   :  { %9606 = vmatpush3.bf16.msra.mxu1 %v9603_v23  ;;  %v11222_v23 = vld [vmem:[%s10378_s14 + $0x2] ss:$0 sm:$0xff] }
 0xe55   :  { %v8468_v50 = vpop.f32.mrb[72].mxu0 }
 0xe56   :  { %v2904_v32 = vpop.f32.mrb[73].mxu0 }
 0xe57   :  { %8473 = vmatprep.mubr.msk.f32.mxu0 %vm563_vm1, %v2904_v32 }
 0xe58   :  { %8474 = vmatmul.mubr.msk.f32.vlgmr.msra.gmra.mrb[74].mxu0 %vm563_vm1, %v8468_v50  ;;  %v6874_v50 = vld [vmem:[%s11878_s26] ss:$0 sm:$0xff] }
 0xe59   :  { %9582 = vmatpush3.bf16.msra.mxu0 %v9579_v49  ;;  %8480 = vmatprep.mubr.msk.f32.mxu0 %vm563_vm1, %v11062_v33 }
 0xe5a   :  { %9584 = vmatprep.subr.bf16.mxu0 %v9583_v9 }
 0xe60   :  { %8481 = vmatmul.mubr.msk.f32.vlgmr.msra.gmra.mrb[74].mxu0 %vm563_vm1, %v11060_v12 }
 0xe61   :  { %9586 = vmatpush3.bf16.msra.mxu0 %v9583_v9  ;;  %v6896_v9 = vld [vmem:[%s10373_s8 + $0x48] sm:$0xff] }
 0xe62   :  { %9588 = vmatprep.subr.bf16.mxu0 %v9587_v11  ;;  %v9623_v58 = vpack.c.bf16 %v6896_v9, %v6895_v57 }
 0xe64   :  { %9624 = vmatprep.subr.bf16.mxu1 %v9623_v58 }
 0xe65   :  { %9590 = vmatpush3.bf16.msra.mxu0 %v9587_v11  ;;  %v6882_v11 = vld [vmem:[%s10353_s21 + $0x58] sm:$0xff] }
 0xe66   :  { %v9611_v13 = vpack.c.bf16 %v6882_v11, %v6881_v10 }
 0xf33   :  { %v8482_v4 = vpop.f32.mrb[74].mxu0 }
 0xf34   :  { %v3086_v6 = vadd.f32 %v8482_v4, %v6868_v3  ;;  %v3069_v7 = vpop.f32.mrb[75].mxu0 }
 0xf35   :  { %v3085_v8 = vadd.f32 %v6868_v3, %v3069_v7 }
 0xf36   :  { %v3088_v34 = vadd.f32 %v3086_v6, %v10896_v2 }
 0xf37   :  { %v3087_v35 = vadd.f32 %v3085_v8, %v10894_v1 }
 0xf38   :  { %v3094_v37 = vsel %vm166_vm0, %v3088_v34, 0.0 }
 0xf39   :  { %3095 = vadd.xlane.f32.xlu1 %v3094_v37  ;;  %v3091_v36 = vsel %vm166_vm0, %v3087_v35, 0.0 }
 0xf3a   :  { %3092 = vadd.xlane.f32.xlu0 %v3091_v36 }
 0xfc6   :  { %v3096_v33 = vpop.xlane.xlu1 %3095 }
 0xfc7   :  { %v3098_v12 = vmul.f32 0.03125, %v3096_v33  ;;  %v3093_v38 = vpop.xlane.xlu0 %3092 }
 0xfc8   :  { %v3097_v41 = vmul.f32 0.03125, %v3093_v38 }
 0xfc9   :  { %v3100_v42 = vsub.f32 %v3088_v34, %v3098_v12 }
 0xfca   :  { %v3099_v43 = vsub.f32 %v3087_v35, %v3097_v41 }
 0xfcb   :  { %v3102_v44 = vmul.f32 %v3100_v42, %v3100_v42 }
 0xfcc   :  { %v3101_v2 = vmul.f32 %v3099_v43, %v3099_v43 }
 0xfcd   :  { %v3106_v1 = vsel %vm166_vm0, %v3102_v44, 0.0 }
 0xfce   :  { %3107 = vadd.xlane.f32.xlu1 %v3106_v1  ;;  %v3103_v55 = vsel %vm166_vm0, %v3101_v2, 0.0  ;;  %v6879_v1 = vld [vmem:[%s10353_s21 + $0x40] sm:$0xff] }
 0xfcf   :  { %3104 = vadd.xlane.f32.xlu0 %v3103_v55  ;;  %v6880_v55 = vld [vmem:[%s10353_s21 + $0x48] sm:$0xff] }
 0xfd0   :  { %v9607_v56 = vpack.c.bf16 %v6880_v55, %v6879_v1 }
 0xfd2   :  { %9608 = vmatprep.subr.bf16.mxu0 %v9607_v56 }
0x105b   :  { %v3108_v27 = vpop.xlane.xlu1 %3107 }
0x105c   :  { %v3110_v22 = vmul.f32 0.03125, %v3108_v27  ;;  %v3105_v26 = vpop.xlane.xlu0 %3104 }
0x105d   :  { %v3109_v28 = vmul.f32 0.03125, %v3105_v26 }
0x105e   :  { %v3112_v29 = vadd.f32 1e-05, %v3110_v22 }
0x105f   :  { %v3111_v30 = vadd.f32 1e-05, %v3109_v28 }
0x1060   :  { %10145 = vrsqrt.f32 %v3112_v29 }
0x1061   :  { %10147 = vrsqrt.f32 %v3111_v30  ;;  %v6877_v30 = vld [vmem:[%s11879_s17] ss:$0 sm:$0xff] }
0x106a   :  { %v10146_v5 = vpop.eup %10145 }
0x106b   :  { %v10148_v46 = vpop.eup %10147  ;;  %v3116_v47 = vmul.f32 %v10146_v5, %v3100_v42 }
0x106c   :  { %v3115_v48 = vmul.f32 %v10148_v46, %v3099_v43 }
0x106d   :  { %v3124_v52 = vmul.f32 %v6869_v45, %v3116_v47  ;;  %v6878_v47 = vld [vmem:[%s10478_s30] ss:$0 sm:$0xff] }
0x106e   :  { %v3123_v17 = vmul.f32 %v6869_v45, %v3115_v48 }
0x106f   :  { %v3132_v53 = vadd.f32 %v6870_v51, %v3124_v52  ;;  %v6889_v52 = vld [vmem:[%s10363_s29 + $0x50] sm:$0xff] }
0x1070   :  { %v3131_v18 = vadd.f32 %v6870_v51, %v3123_v17  ;;  %v6890_v17 = vld [vmem:[%s10363_s29 + $0x58] sm:$0xff] }
0x1071   :  { %v9619_v54 = vpack.c.bf16 %v6890_v17, %v6889_v52 }
0x1072   :  { %8491 = vmatprep.mubr.msk.f32.mxu0 %vm166_vm0, %v3131_v18 }
0x1073   :  { %8492 = vmatmul.mubr.msk.f32.vlgmr.msra.gmra.mrb[76].mxu0 %vm166_vm0, %v3132_v53 }
0x1074   :  { %9610 = vmatpush3.bf16.msra.mxu0 %v9607_v56 }
0x1075   :  { %9612 = vmatprep.subr.bf16.mxu0 %v9611_v13 }
0x1078   :  { %9614 = vmatpush3.bf16.msra.mxu0 %v9611_v13 }
0x1079   :  { %9616 = vmatprep.subr.bf16.mxu0 %v9615_v21 }
0x1146   :  { %v8493_v39 = vpop.f32.mrb[76].mxu0 }
0x1147   :  { %v3222_v61 = vadd.f32 %v8493_v39, %v6871_v60  ;;  %v3216_v40 = vpop.f32.mrb[77].mxu0 }
0x1148   :  { %v3217_v62 = vadd.f32 %v6871_v60, %v3216_v40 }
0x1149   :  { %v3226_v49 = vmax.f32 %v3222_v61, 0.0 }
0x114a   :  { %v3225_v0 = vmax.f32 %v3217_v62, 0.0 }
0x114c   :  { %8510 = vmatprep.mubr.msk.f32.mxu1 %vm3242_vm3, %v3225_v0 }
0x114d   :  { %8511 = vmatmul.mubr.msk.f32.vlgmr.msra.gmra.mrb[80].mxu1 %vm3242_vm3, %v3226_v49 }
0x114e   :  { %9626 = vmatpush3.bf16.msra.mxu1 %v9623_v58 }
0x114f   :  { %9628 = vmatprep.subr.bf16.mxu1 %v9627_v19 }
0x1152   :  { %9630 = vmatpush3.bf16.msra.mxu1 %v9627_v19 }
0x1220   :  { %v8512_v32 = vpop.f32.mrb[80].mxu1 }
0x1221   :  { %v3321_v3 = vadd.f32 %v8512_v32, %v6874_v50  ;;  %v3315_v4 = vpop.f32.mrb[81].mxu1 }
0x1222   :  { %v3316_v6 = vadd.f32 %v6874_v50, %v3315_v4 }
0x1223   :  { %v3325_v7 = vadd.f32 %v3321_v3, %v3132_v53  ;;  %v6892_v3 = vld [vmem:[%s10368_s3 + $0x2] ss:$0 sm:$0xff] }
0x1224   :  { %v3324_v8 = vadd.f32 %v3316_v6, %v3131_v18 }
0x1225   :  { %v3331_v34 = vsel %vm166_vm0, %v3325_v7, 0.0 }
0x1226   :  { %3332 = vadd.xlane.f32.xlu1 %v3331_v34  ;;  %v3328_v35 = vsel %vm166_vm0, %v3324_v8, 0.0 }
0x1227   :  { %3329 = vadd.xlane.f32.xlu0 %v3328_v35 }
0x12b3   :  { %v3333_v37 = vpop.xlane.xlu1 %3332 }
0x12b4   :  { %v3335_v36 = vmul.f32 0.03125, %v3333_v37  ;;  %v3330_v33 = vpop.xlane.xlu0 %3329 }
0x12b5   :  { %v3334_v12 = vmul.f32 0.03125, %v3330_v33 }
0x12b6   :  { %v3337_v38 = vsub.f32 %v3325_v7, %v3335_v36 }
0x12b7   :  { %v3336_v41 = vsub.f32 %v3324_v8, %v3334_v12 }
0x12b8   :  { %v3339_v42 = vmul.f32 %v3337_v38, %v3337_v38 }
0x12b9   :  { %v3338_v43 = vmul.f32 %v3336_v41, %v3336_v41 }
0x12ba   :  { %v3343_v44 = vsel %vm166_vm0, %v3339_v42, 0.0 }
0x12bb   :  { %3344 = vadd.xlane.f32.xlu1 %v3343_v44  ;;  %v3340_v2 = vsel %vm166_vm0, %v3338_v43, 0.0 }
0x12bc   :  { %3341 = vadd.xlane.f32.xlu0 %v3340_v2 }
0x1348   :  { %v3345_v24 = vpop.xlane.xlu1 %3344 }
0x1349   :  { %v3347_v25 = vmul.f32 0.03125, %v3345_v24  ;;  %v3342_v27 = vpop.xlane.xlu0 %3341 }
0x134a   :  { %v3346_v22 = vmul.f32 0.03125, %v3342_v27 }
0x134b   :  { %v3349_v26 = vadd.f32 1e-05, %v3347_v25 }
0x134c   :  { %v3348_v28 = vadd.f32 1e-05, %v3346_v22 }
0x134d   :  { %10149 = vrsqrt.f32 %v3349_v26 }
0x134e   :  { %10151 = vrsqrt.f32 %v3348_v28 }
0x1357   :  { %v10150_v29 = vpop.eup %10149 }
0x1358   :  { %v10152_v5 = vpop.eup %10151  ;;  %v3353_v45 = vmul.f32 %v10150_v29, %v3337_v38 }
0x1359   :  { %v3352_v46 = vmul.f32 %v10152_v5, %v3336_v41 }
0x135a   :  { %v3361_v48 = vmul.f32 %v6877_v30, %v3353_v45  ;;  %v6939_v45 = vld [vmem:[%s10373_s8 + $0x60] sm:$0xff] }
0x135b   :  { %v3360_v51 = vmul.f32 %v6877_v30, %v3352_v46  ;;  %v6940_v46 = vld [vmem:[%s10373_s8 + $0x68] sm:$0xff] }
0x135c   :  { %v11178_v53 = vadd.f32 %v6878_v47, %v3361_v48  ;;  %v6941_v48 = vld [vmem:[%s10373_s8 + $0x70] sm:$0xff] }
0x135d   :  { %v11176_v18 = vadd.f32 %v6878_v47, %v3360_v51  ;;  %v9727_v47 = vpack.c.bf16 %v6940_v46, %v6939_v45  ;;  %v6942_v51 = vld [vmem:[%s10373_s8 + $0x78] sm:$0xff] }
0x135e   :  { %v9731_v52 = vpack.c.bf16 %v6942_v51, %v6941_v48  ;;  %v6925_v51 = vld [vmem:[%s10353_s21 + $0x70] sm:$0xff] }
0x135f   :  { %8521 = vmatprep.mubr.msk.f32.mxu0 %vm166_vm0, %v11176_v18  ;;  %8564 = vmatprep.mubr.msk.f32.mxu1 %vm166_vm0, %v11176_v18 }
0x1360   :  { %8522 = vmatmul.mubr.msk.f32.vlgmr.msra.gmra.mrb[78].mxu0 %vm166_vm0, %v11178_v53  ;;  %8565 = vmatmul.mubr.msk.f32.vlgmr.msra.gmra.mrb[82].mxu1 %vm166_vm0, %v11178_v53 }
0x1361   :  { %9618 = vmatpush3.bf16.msra.mxu0 %v9615_v21  ;;  %8532 = vmatprep.mubr.msk.f32.mxu0 %vm166_vm0, %v11176_v18 }
0x1362   :  { %9620 = vmatprep.subr.bf16.mxu0 %v9619_v54  ;;  %8567 = vmatprep.mubr.f32.mxu1 %v10319_v14 }
0x1364   :  { %8568 = vmatmul.mubr.f32.gmra.mrb[84].mxu1 %v10319_v14 }
0x1365   :  { %9622 = vmatpush3.bf16.msra.mxu0 %v9619_v54  ;;  %8570 = vmatprep.mubr.f32.mxu1 %v10319_v14 }
0x1368   :  { %8533 = vmatmul.mubr.msk.f32.vlgmr.msra.gmra.mrb[80].mxu0 %vm166_vm0, %v11178_v53  ;;  %8571 = vmatmul.mubr.f32.gmra.mrb[86].mxu1 %v10319_v14 }
0x1369   :  { %8535 = vmatprep.mubr.f32.mxu0 %v10319_v14  ;;  %8573 = vmatprep.mubr.f32.mxu1 %v10319_v14 }
0x136c   :  { %8536 = vmatmul.mubr.f32.gmra.mrb[82].mxu0 %v10319_v14  ;;  %8574 = vmatmul.mubr.f32.gmra.mrb[88].mxu1 %v10319_v14 }
0x136d   :  { %8538 = vmatprep.mubr.f32.mxu0 %v10319_v14  ;;  %8576 = vmatprep.mubr.f32.mxu1 %v10319_v14 }
0x1370   :  { %8539 = vmatmul.mubr.f32.gmra.mrb[84].mxu0 %v10319_v14  ;;  %8577 = vmatmul.mubr.f32.gmra.mrb[90].mxu1 %v10319_v14 }
0x1371   :  { %8541 = vmatprep.mubr.f32.mxu0 %v10319_v14  ;;  %8579 = vmatprep.mubr.f32.mxu1 %v10319_v14 }
0x1374   :  { %8542 = vmatmul.mubr.f32.gmra.mrb[86].mxu0 %v10319_v14  ;;  %8580 = vmatmul.mubr.f32.gmra.mrb[92].mxu1 %v10319_v14 }
0x1375   :  { %8544 = vmatprep.mubr.f32.mxu0 %v10319_v14  ;;  %8582 = vmatprep.mubr.f32.mxu1 %v10319_v14 }
0x1378   :  { %8545 = vmatmul.mubr.f32.gmra.mrb[88].mxu0 %v10319_v14  ;;  %8583 = vmatmul.mubr.f32.gmra.mrb[94].mxu1 %v10319_v14 }
0x1379   :  { %8547 = vmatprep.mubr.f32.mxu0 %v10319_v14  ;;  %8585 = vmatprep.mubr.f32.mxu1 %v10319_v14 }
0x137c   :  { %8548 = vmatmul.mubr.f32.gmra.mrb[90].mxu0 %v10319_v14  ;;  %8586 = vmatmul.mubr.f32.gmra.mrb[96].mxu1 %v10319_v14 }
0x137d   :  { %8550 = vmatprep.mubr.f32.mxu0 %v10319_v14 }
0x1380   :  { %8551 = vmatmul.mubr.f32.gmra.mrb[92].mxu0 %v10319_v14 }
0x1381   :  { %8553 = vmatprep.mubr.f32.mxu0 %v10319_v14 }
0x1384   :  { %8554 = vmatmul.mubr.f32.gmra.mrb[94].mxu0 %v10319_v14 }
0x1433   :  { %v8523_v60 = vpop.f32.mrb[78].mxu0  ;;  %v8566_v39 = vpop.f32.mrb[82].mxu1 }
0x1434   :  { %v11224_v61 = vadd.f32 %v8523_v60, %v6884_v59  ;;  %v3717_v40 = vadd.f32 %v8566_v39, %v11222_v23  ;;  %v3465_v62 = vpop.f32.mrb[79].mxu0  ;;  %v3711_v0 = vpop.f32.mrb[83].mxu1 }
0x1435   :  { %v3466_v49 = vadd.f32 %v6884_v59, %v3465_v62  ;;  %v3712_v50 = vadd.f32 %v11222_v23, %v3711_v0 }
0x1437   :  { %v9679_v32 = vpack.c.bf16 %v3717_v40, %v3712_v50  ;;  %8620 = vmatprep.mubr.msk.f32.mxu0 %vm563_vm1, %v3466_v49  ;;  %v8569_v17 = vpop.f32.mrb[84].mxu1 }
0x1438   :  { %v3727_v54 = vadd.f32 %v8569_v17, %v11222_v23  ;;  %v3721_v59 = vpop.f32.mrb[85].mxu1 }
0x1439   :  { %9680 = vmatprep.subr.bf16.mxu1 %v9679_v32  ;;  %v3722_v60 = vadd.f32 %v11222_v23, %v3721_v59 }
0x143a   :  { %9682 = vmatpush3.bf16.msra.mxu1 %v9679_v32 }
0x143b   :  { %v8534_v4 = vpop.f32.mrb[80].mxu0  ;;  %v8572_v39 = vpop.f32.mrb[86].mxu1  ;;  %v9683_v62 = vpack.c.bf16 %v3727_v54, %v3722_v60  ;;  %v6931_v60 = vld [vmem:[%s10363_s29 + $0x60] sm:$0xff] }
0x143c   :  { %v3559_v6 = vadd.f32 %v8534_v4, %v6892_v3  ;;  %v3553_v7 = vpop.f32.mrb[81].mxu0  ;;  %v3731_v40 = vpop.f32.mrb[87].mxu1 }
0x143d   :  { %v3554_v8 = vadd.f32 %v6892_v3, %v3553_v7  ;;  %v3732_v0 = vadd.f32 %v11222_v23, %v3731_v40  ;;  %9684 = vmatprep.subr.bf16.mxu1 %v9683_v62  ;;  %v6933_v40 = vld [vmem:[%s10363_s29 + $0x70] sm:$0xff] }
0x143e   :  { %9686 = vmatpush3.bf16.msra.mxu1 %v9683_v62  ;;  %v6934_v62 = vld [vmem:[%s10363_s29 + $0x78] sm:$0xff] }
0x143f   :  { %v9631_v34 = vpack.c.bf16 %v3559_v6, %v3554_v8  ;;  %v8537_v35 = vpop.f32.mrb[82].mxu0  ;;  %v8575_v49 = vpop.f32.mrb[88].mxu1 }
0x1440   :  { %v3569_v37 = vadd.f32 %v8537_v35, %v6892_v3  ;;  %v3563_v36 = vpop.f32.mrb[83].mxu0  ;;  %v3747_v50 = vadd.f32 %v8575_v49, %v11222_v23  ;;  %v3741_v32 = vpop.f32.mrb[89].mxu1 }
0x1441   :  { %9633 = vmatprep.subr.msk.bf16.mxu0 %vm10560_vm2, %v9631_v34  ;;  %v3564_v33 = vadd.f32 %v6892_v3, %v3563_v36  ;;  %v3742_v4 = vadd.f32 %v11222_v23, %v3741_v32  ;;  %v6928_v32 = vld [vmem:[%s10358_s25 + $0x3] ss:$0 sm:$0xff] }
0x1442   :  { %9636 = vmatpush3.bf16.xpose.msk.msra.mxu0 %vm10560_vm2, %v9631_v34 }
0x1443   :  { %v9637_v12 = vpack.c.bf16 %v3569_v37, %v3564_v33  ;;  %v8540_v38 = vpop.f32.mrb[84].mxu0  ;;  %v8578_v6 = vpop.f32.mrb[90].mxu1  ;;  %v9691_v34 = vpack.c.bf16 %v3747_v50, %v3742_v4 }
0x1444   :  { %v3579_v41 = vadd.f32 %v8540_v38, %v6892_v3  ;;  %v3573_v42 = vpop.f32.mrb[85].mxu0  ;;  %v3757_v7 = vadd.f32 %v8578_v6, %v11222_v23  ;;  %v3751_v8 = vpop.f32.mrb[91].mxu1 }
0x1445   :  { %9639 = vmatprep.subr.msk.bf16.mxu0 %vm10560_vm2, %v9637_v12  ;;  %v3574_v43 = vadd.f32 %v6892_v3, %v3573_v42  ;;  %v3752_v35 = vadd.f32 %v11222_v23, %v3751_v8  ;;  %v6936_v8 = vld [vmem:[%s10368_s3 + $0x3] ss:$0 sm:$0xff] }
0x1447   :  { %v9643_v44 = vpack.c.bf16 %v3579_v41, %v3574_v43  ;;  %v8543_v2 = vpop.f32.mrb[86].mxu0  ;;  %v8581_v37 = vpop.f32.mrb[92].mxu1 }
0x1448   :  { %v3589_v1 = vadd.f32 %v8543_v2, %v6892_v3  ;;  %v3583_v55 = vpop.f32.mrb[87].mxu0  ;;  %v3767_v36 = vadd.f32 %v8581_v37, %v11222_v23  ;;  %v3761_v33 = vpop.f32.mrb[93].mxu1 }
0x1449   :  { %v3584_v56 = vadd.f32 %v6892_v3, %v3583_v55  ;;  %v3762_v38 = vadd.f32 %v11222_v23, %v3761_v33 }
0x144a   :  { %9642 = vmatpush3.bf16.xpose.msk.msra.mxu0 %vm10560_vm2, %v9637_v12  ;;  %v9695_v12 = vpack.c.bf16 %v3757_v7, %v3752_v35 }
0x144b   :  { %9645 = vmatprep.subr.msk.bf16.mxu0 %vm10560_vm2, %v9643_v44  ;;  %v9649_v57 = vpack.c.bf16 %v3589_v1, %v3584_v56  ;;  %v8546_v9 = vpop.f32.mrb[88].mxu0  ;;  %v8584_v41 = vpop.f32.mrb[94].mxu1  ;;  %v11299_v56 = vld [vmem:[%s10343_s13 + $0x8] sm:$0xff] }
0x144c   :  { %v3599_v58 = vadd.f32 %v8546_v9, %v6892_v3  ;;  %v3593_v10 = vpop.f32.mrb[89].mxu0  ;;  %v3777_v42 = vadd.f32 %v8584_v41, %v11222_v23  ;;  %v3771_v43 = vpop.f32.mrb[95].mxu1 }
0x144d   :  { %v3594_v11 = vadd.f32 %v6892_v3, %v3593_v10  ;;  %v3772_v2 = vadd.f32 %v11222_v23, %v3771_v43 }
0x144f   :  { %v9655_v13 = vpack.c.bf16 %v3599_v58, %v3594_v11  ;;  %v8549_v15 = vpop.f32.mrb[90].mxu0  ;;  %v9703_v1 = vpack.c.bf16 %v3777_v42, %v3772_v2  ;;  %v11303_v58 = vld [vmem:[%s10343_s13] sm:$0xff] }
0x1450   :  { %v3609_v16 = vadd.f32 %v8549_v15, %v6892_v3  ;;  %v3603_v19 = vpop.f32.mrb[91].mxu0  ;;  %v11307_v15 = vld [vmem:[%s10378_s14 + $0x3] ss:$0 sm:$0xff] }
0x1451   :  { %v3604_v63 = vadd.f32 %v6892_v3, %v3603_v19 }
0x1452   :  { %9648 = vmatpush3.bf16.xpose.msk.msra.mxu0 %vm10560_vm2, %v9643_v44  ;;  %v9699_v44 = vpack.c.bf16 %v3767_v36, %v3762_v38 }
0x1453   :  { %9651 = vmatprep.subr.msk.bf16.mxu0 %vm10560_vm2, %v9649_v57  ;;  %v9661_v20 = vpack.c.bf16 %v3609_v16, %v3604_v63  ;;  %v8552_v21 = vpop.f32.mrb[92].mxu0 }
0x1454   :  { %v3619_v24 = vadd.f32 %v8552_v21, %v6892_v3  ;;  %v3613_v25 = vpop.f32.mrb[93].mxu0 }
0x1455   :  { %v3614_v27 = vadd.f32 %v6892_v3, %v3613_v25 }
0x1457   :  { %v9667_v22 = vpack.c.bf16 %v3619_v24, %v3614_v27  ;;  %v8555_v26 = vpop.f32.mrb[94].mxu0  ;;  %v8587_v27 = vpop.f32.mrb[96].mxu1 }
0x1458   :  { %v3629_v28 = vadd.f32 %v8555_v26, %v6892_v3  ;;  %v3623_v29 = vpop.f32.mrb[95].mxu0  ;;  %v3787_v26 = vadd.f32 %v8587_v27, %v11222_v23 }
0x1459   :  { %v3624_v30 = vadd.f32 %v6892_v3, %v3623_v29 }
0x145a   :  { %9654 = vmatpush3.bf16.xpose.msk.msra.mxu0 %vm10560_vm2, %v9649_v57 }
0x145b   :  { %9657 = vmatprep.subr.msk.bf16.mxu0 %vm10560_vm2, %v9655_v13  ;;  %v9673_v5 = vpack.c.bf16 %v3629_v28, %v3624_v30  ;;  %v6923_v30 = vld [vmem:[%s10353_s21 + $0x60] sm:$0xff] }
0x1462   :  { %9660 = vmatpush3.bf16.xpose.msk.msra.mxu0 %vm10560_vm2, %v9655_v13 }
0x1463   :  { %9663 = vmatprep.subr.msk.bf16.mxu0 %vm10560_vm2, %v9661_v20 }
0x146a   :  { %9666 = vmatpush3.bf16.xpose.msk.msra.mxu0 %vm10560_vm2, %v9661_v20 }
0x146b   :  { %9669 = vmatprep.subr.msk.bf16.mxu0 %vm10560_vm2, %v9667_v22 }
0x1472   :  { %9672 = vmatpush3.bf16.xpose.msk.msra.mxu0 %vm10560_vm2, %v9667_v22  ;;  %v3781_v22 = vpop.f32.mrb[97].mxu1 }
0x1473   :  { %9675 = vmatprep.subr.msk.bf16.mxu0 %vm10560_vm2, %v9673_v5  ;;  %v3782_v28 = vadd.f32 %v11222_v23, %v3781_v22 }
0x1475   :  { %v9707_v29 = vpack.c.bf16 %v3787_v26, %v3782_v28 }
0x147a   :  { %9678 = vmatpush3.bf16.xpose.msk.msra.mxu0 %vm10560_vm2, %v9673_v5  ;;  %v6924_v5 = vld [vmem:[%s10353_s21 + $0x68] sm:$0xff] }
0x147b   :  { %9728 = vmatprep.subr.bf16.mxu0 %v9727_v47  ;;  %v9711_v45 = vpack.c.bf16 %v6924_v5, %v6923_v30 }
0x1481   :  { %8621 = vmatmul.mubr.msk.f32.vlgmr.msra.gmra.mrb[96].mxu0 %vm563_vm1, %v11224_v61  ;;  %v3737_v61 = vadd.f32 %v8572_v39, %v11222_v23  ;;  %v6932_v39 = vld [vmem:[%s10363_s29 + $0x68] sm:$0xff] }
0x1482   :  { %9730 = vmatpush3.bf16.msra.mxu0 %v9727_v47  ;;  %8709 = vmatprep.mubr.msk.f32.mxu0 %vm166_vm0, %v11176_v18 }
0x1483   :  { %9732 = vmatprep.subr.bf16.mxu0 %v9731_v52  ;;  %v9687_v3 = vpack.c.bf16 %v3737_v61, %v3732_v0  ;;  %v9719_v61 = vpack.c.bf16 %v6932_v39, %v6931_v60  ;;  %v9723_v0 = vpack.c.bf16 %v6934_v62, %v6933_v40 }
0x1485   :  { %9688 = vmatprep.subr.bf16.mxu1 %v9687_v3 }
0x1486   :  { %9734 = vmatpush3.bf16.msra.mxu0 %v9731_v52  ;;  %9690 = vmatpush3.bf16.msra.mxu1 %v9687_v3  ;;  %v6926_v52 = vld [vmem:[%s10353_s21 + $0x78] sm:$0xff] }
0x1487   :  { %9692 = vmatprep.subr.bf16.mxu1 %v9691_v34  ;;  %v9715_v59 = vpack.c.bf16 %v6926_v52, %v6925_v51 }
0x1489   :  { %8710 = vmatmul.mubr.msk.f32.vlgmr.msra.gmra.mrb[98].mxu0 %vm166_vm0, %v11178_v53 }
0x148a   :  { %8712 = vmatprep.mubr.f32.mxu0 %v10319_v14  ;;  %9694 = vmatpush3.bf16.msra.mxu1 %v9691_v34 }
0x148b   :  { %9696 = vmatprep.subr.bf16.mxu1 %v9695_v12 }
0x148d   :  { %8713 = vmatmul.mubr.f32.gmra.mrb[100].mxu0 %v10319_v14 }
0x148e   :  { %8715 = vmatprep.mubr.f32.mxu0 %v10319_v14  ;;  %9698 = vmatpush3.bf16.msra.mxu1 %v9695_v12 }
0x148f   :  { %9700 = vmatprep.subr.bf16.mxu1 %v9699_v44 }
0x1491   :  { %8716 = vmatmul.mubr.f32.gmra.mrb[102].mxu0 %v10319_v14 }
0x1492   :  { %8718 = vmatprep.mubr.f32.mxu0 %v10319_v14  ;;  %9702 = vmatpush3.bf16.msra.mxu1 %v9699_v44 }
0x1493   :  { %9704 = vmatprep.subr.bf16.mxu1 %v9703_v1 }
0x1495   :  { %8719 = vmatmul.mubr.f32.gmra.mrb[104].mxu0 %v10319_v14 }
0x1496   :  { %8721 = vmatprep.mubr.f32.mxu0 %v10319_v14  ;;  %9706 = vmatpush3.bf16.msra.mxu1 %v9703_v1 }
0x1497   :  { %9708 = vmatprep.subr.bf16.mxu1 %v9707_v29 }
0x1499   :  { %8722 = vmatmul.mubr.f32.gmra.mrb[106].mxu0 %v10319_v14 }
0x149a   :  { %8724 = vmatprep.mubr.f32.mxu0 %v10319_v14  ;;  %9710 = vmatpush3.bf16.msra.mxu1 %v9707_v29 }
0x149b   :  { %9712 = vmatprep.subr.bf16.mxu1 %v9711_v45 }
0x149d   :  { %8725 = vmatmul.mubr.f32.gmra.mrb[108].mxu0 %v10319_v14 }
0x149e   :  { %8727 = vmatprep.mubr.f32.mxu0 %v10319_v14 }
0x14a1   :  { %8728 = vmatmul.mubr.f32.gmra.mrb[110].mxu0 %v10319_v14 }
0x14a2   :  { %8730 = vmatprep.mubr.f32.mxu0 %v10319_v14 }
0x14a5   :  { %8731 = vmatmul.mubr.f32.gmra.mrb[112].mxu0 %v10319_v14 }
0x1554   :  { %v8622_v55 = vpop.f32.mrb[96].mxu0 }
0x1555   :  { %v3916_v57 = vadd.f32 %v11299_v56, %v8622_v55  ;;  %v3910_v9 = vpop.f32.mrb[97].mxu0 }
0x1556   :  { %v3911_v10 = vadd.f32 %v11303_v58, %v3910_v9 }
0x1557   :  { %v3921_v11 = vmul.f32 1.442695, %v3916_v57 }
0x1558   :  { %v3919_v13 = vmul.f32 1.442695, %v3911_v10 }
0x1559   :  { %10153 = vpow2.f32 %v3921_v11 }
0x155a   :  { %10155 = vpow2.f32 %v3919_v13 }
0x155c   :  { %v8711_v16 = vpop.f32.mrb[98].mxu0 }
0x155d   :  { %v4340_v19 = vadd.f32 %v8711_v16, %v11307_v15  ;;  %v4334_v63 = vpop.f32.mrb[99].mxu0 }
0x155e   :  { %v4335_v20 = vadd.f32 %v11307_v15, %v4334_v63 }
0x1560   :  { %v9783_v21 = vpack.c.bf16 %v4340_v19, %v4335_v20 }
0x1562   :  { %9784 = vmatprep.subr.bf16.mxu0 %v9783_v21 }
0x1563   :  { %v10154_v24 = vpop.eup %10153  ;;  %9786 = vmatpush3.bf16.msra.mxu0 %v9783_v21 }
0x1564   :  { %v10156_v25 = vpop.eup %10155  ;;  %3925 = vadd.xlane.f32.xlu1 %v10154_v24 }
0x1565   :  { %3923 = vadd.xlane.f32.xlu0 %v10156_v25 }
0x15f1   :  { %v3926_v46 = vpop.xlane.xlu1 %3925 }
0x15f2   :  { %10157 = vrcp.f32 %v3926_v46  ;;  %v3924_v47 = vpop.xlane.xlu0 %3923 }
0x15f3   :  { %10159 = vrcp.f32 %v3924_v47 }
0x15fc   :  { %v10158_v48 = vpop.eup %10157 }
0x15fd   :  { %v10160_v17 = vpop.eup %10159  ;;  %v3930_v23 = vmul.f32 %v10158_v48, %v10154_v24 }
0x15fe   :  { %v3929_v54 = vmul.f32 %v10160_v17, %v10156_v25  ;;  %v11384_v17 = vld [vmem:[%s10338_s9] sm:$0xff] }
0x15ff   :  { %6568 = vst [vmem:[#allocation4 + $0x28] sm:$0xff] %v3930_v23 }
0x1600   :  { %8655 = vmatprep.mubr.f32.mxu1 %v3929_v54  ;;  %6567 = vst [vmem:[#allocation4 + $0x20] sm:$0xff] %v3929_v54 }
0x1601   :  { %8656 = vmatmul.mubr.f32.vlgmr.msra.gmra.mrb[98].mxu1 %v3930_v23  ;;  %v8714_v23 = vpop.f32.mrb[100].mxu0 }
0x1602   :  { %9714 = vmatpush3.bf16.msra.mxu1 %v9711_v45  ;;  %8666 = vmatprep.mubr.msk.f32.mxu1 %vm166_vm0, %v11176_v18  ;;  %v4350_v54 = vadd.f32 %v8714_v23, %v11307_v15 }
0x1603   :  { %9716 = vmatprep.subr.bf16.mxu1 %v9715_v59 }
0x1606   :  { %9718 = vmatpush3.bf16.msra.mxu1 %v9715_v59  ;;  %v4344_v59 = vpop.f32.mrb[101].mxu0 }
0x1607   :  { %9720 = vmatprep.subr.bf16.mxu1 %v9719_v61  ;;  %v4345_v60 = vadd.f32 %v11307_v15, %v4344_v59  ;;  %v8717_v39 = vpop.f32.mrb[102].mxu0 }
0x1608   :  { %v4354_v40 = vpop.f32.mrb[103].mxu0 }
0x1609   :  { %8667 = vmatmul.mubr.msk.f32.vlgmr.msra.gmra.mrb[100].mxu1 %vm166_vm0, %v11178_v53  ;;  %v9787_v62 = vpack.c.bf16 %v4350_v54, %v4345_v60 }
0x160a   :  { %9722 = vmatpush3.bf16.msra.mxu1 %v9719_v61  ;;  %8677 = vmatprep.mubr.msk.f32.mxu1 %vm166_vm0, %v11176_v18  ;;  %v4360_v61 = vadd.f32 %v8717_v39, %v11307_v15 }
0x160b   :  { %9724 = vmatprep.subr.bf16.mxu1 %v9723_v0  ;;  %9788 = vmatprep.subr.bf16.mxu0 %v9787_v62 }
0x160c   :  { %9790 = vmatpush3.bf16.msra.mxu0 %v9787_v62  ;;  %v6986_v62 = vld [vmem:[%s10413_s27 + $0x48] sm:$0xff] }
0x160e   :  { %9726 = vmatpush3.bf16.msra.mxu1 %v9723_v0  ;;  %v4355_v0 = vadd.f32 %v11307_v15, %v4354_v40 }
0x1611   :  { %8678 = vmatmul.mubr.msk.f32.vlgmr.msra.gmra.mrb[102].mxu1 %vm166_vm0, %v11178_v53 }
0x1612   :  { %8680 = vmatprep.mubr.f32.mxu1 %v10319_v14 }
0x1615   :  { %8681 = vmatmul.mubr.f32.gmra.mrb[104].mxu1 %v10319_v14 }
0x1616   :  { %8683 = vmatprep.mubr.f32.mxu1 %v10319_v14 }
0x1619   :  { %8684 = vmatmul.mubr.f32.gmra.mrb[106].mxu1 %v10319_v14 }
0x161a   :  { %8686 = vmatprep.mubr.f32.mxu1 %v10319_v14 }
0x161d   :  { %8687 = vmatmul.mubr.f32.gmra.mrb[108].mxu1 %v10319_v14 }
0x161e   :  { %8689 = vmatprep.mubr.f32.mxu1 %v10319_v14 }
0x1621   :  { %8690 = vmatmul.mubr.f32.gmra.mrb[110].mxu1 %v10319_v14 }
0x1622   :  { %8692 = vmatprep.mubr.f32.mxu1 %v10319_v14 }
0x1625   :  { %8693 = vmatmul.mubr.f32.gmra.mrb[112].mxu1 %v10319_v14 }
0x1626   :  { %8695 = vmatprep.mubr.f32.mxu1 %v10319_v14 }
0x1629   :  { %8696 = vmatmul.mubr.f32.gmra.mrb[114].mxu1 %v10319_v14 }
0x162a   :  { %8698 = vmatprep.mubr.f32.mxu1 %v10319_v14 }
0x162d   :  { %8699 = vmatmul.mubr.f32.gmra.mrb[116].mxu1 %v10319_v14 }
0x16d4   :  { %v11343_v49 = vpop.f32.mrb[98].mxu1 }
0x16d5   :  { %v11345_v50 = vpop.f32.mrb[99].mxu1 }
0x16dc   :  { %v8668_v3 = vpop.f32.mrb[100].mxu1 }
0x16dd   :  { %v4094_v4 = vadd.f32 %v8668_v3, %v6928_v32  ;;  %v4088_v6 = vpop.f32.mrb[101].mxu1 }
0x16de   :  { %v4089_v7 = vadd.f32 %v6928_v32, %v4088_v6  ;;  %v8720_v32 = vpop.f32.mrb[104].mxu0  ;;  %v9791_v6 = vpack.c.bf16 %v4360_v61, %v4355_v0  ;;  %v6987_v0 = vld [vmem:[%s10413_s27 + $0x50] sm:$0xff] }
0x16df   :  { %v4370_v3 = vadd.f32 %v8720_v32, %v11307_v15 }
0x16e0   :  { %8765 = vmatprep.mubr.msk.f32.mxu1 %vm563_vm1, %v4089_v7  ;;  %9792 = vmatprep.subr.bf16.mxu0 %v9791_v6 }
0x16e1   :  { %9794 = vmatpush3.bf16.msra.mxu0 %v9791_v6  ;;  %v11434_v6 = vld [vmem:[%s10338_s9 + $0x18] sm:$0xff] }
0x16e4   :  { %v8679_v34 = vpop.f32.mrb[102].mxu1 }
0x16e5   :  { %v4182_v35 = vadd.f32 %v8679_v34, %v6936_v8  ;;  %v4176_v37 = vpop.f32.mrb[103].mxu1 }
0x16e6   :  { %v4177_v36 = vadd.f32 %v6936_v8, %v4176_v37 }
0x16e8   :  { %v9735_v33 = vpack.c.bf16 %v4182_v35, %v4177_v36  ;;  %v8682_v12 = vpop.f32.mrb[104].mxu1 }
0x16e9   :  { %v4192_v38 = vadd.f32 %v8682_v12, %v6936_v8  ;;  %v4186_v14 = vpop.f32.mrb[105].mxu1 }
0x16ea   :  { %9737 = vmatprep.subr.msk.bf16.mxu1 %vm10560_vm2, %v9735_v33  ;;  %v4187_v41 = vadd.f32 %v6936_v8, %v4186_v14 }
0x16eb   :  { %9740 = vmatpush3.bf16.xpose.msk.msra.mxu1 %vm10560_vm2, %v9735_v33 }
0x16ec   :  { %v9741_v42 = vpack.c.bf16 %v4192_v38, %v4187_v41  ;;  %v8685_v43 = vpop.f32.mrb[106].mxu1 }
0x16ed   :  { %v4202_v44 = vadd.f32 %v8685_v43, %v6936_v8  ;;  %v4196_v2 = vpop.f32.mrb[107].mxu1 }
0x16ee   :  { %9743 = vmatprep.subr.msk.bf16.mxu1 %vm10560_vm2, %v9741_v42  ;;  %v4197_v1 = vadd.f32 %v6936_v8, %v4196_v2 }
0x16f0   :  { %v9747_v55 = vpack.c.bf16 %v4202_v44, %v4197_v1  ;;  %v8688_v57 = vpop.f32.mrb[108].mxu1 }
0x16f1   :  { %v4212_v9 = vadd.f32 %v8688_v57, %v6936_v8  ;;  %v4206_v10 = vpop.f32.mrb[109].mxu1 }
0x16f2   :  { %v4207_v11 = vadd.f32 %v6936_v8, %v4206_v10 }
0x16f3   :  { %9746 = vmatpush3.bf16.xpose.msk.msra.mxu1 %vm10560_vm2, %v9741_v42 }
0x16f4   :  { %9749 = vmatprep.subr.msk.bf16.mxu1 %vm10560_vm2, %v9747_v55  ;;  %v9753_v13 = vpack.c.bf16 %v4212_v9, %v4207_v11  ;;  %v8691_v16 = vpop.f32.mrb[110].mxu1 }
0x16f5   :  { %v4222_v19 = vadd.f32 %v8691_v16, %v6936_v8  ;;  %v4216_v63 = vpop.f32.mrb[111].mxu1 }
0x16f6   :  { %v4217_v20 = vadd.f32 %v6936_v8, %v4216_v63 }
0x16f8   :  { %v9759_v21 = vpack.c.bf16 %v4222_v19, %v4217_v20  ;;  %v8694_v24 = vpop.f32.mrb[112].mxu1 }
0x16f9   :  { %v4232_v25 = vadd.f32 %v8694_v24, %v6936_v8  ;;  %v4226_v27 = vpop.f32.mrb[113].mxu1 }
0x16fa   :  { %v4227_v22 = vadd.f32 %v6936_v8, %v4226_v27  ;;  %v6966_v27 = vld [vmem:[%s10383_s19 + $0x38] sm:$0xff] }
0x16fb   :  { %9752 = vmatpush3.bf16.xpose.msk.msra.mxu1 %vm10560_vm2, %v9747_v55 }
0x16fc   :  { %9755 = vmatprep.subr.msk.bf16.mxu1 %vm10560_vm2, %v9753_v13  ;;  %v9765_v26 = vpack.c.bf16 %v4232_v25, %v4227_v22  ;;  %v8697_v28 = vpop.f32.mrb[114].mxu1 }
0x16fd   :  { %v4242_v29 = vadd.f32 %v8697_v28, %v6936_v8  ;;  %v4236_v30 = vpop.f32.mrb[115].mxu1 }
0x16fe   :  { %v4237_v5 = vadd.f32 %v6936_v8, %v4236_v30 }
0x1700   :  { %v9771_v45 = vpack.c.bf16 %v4242_v29, %v4237_v5  ;;  %v8700_v46 = vpop.f32.mrb[116].mxu1 }
0x1701   :  { %v4252_v47 = vadd.f32 %v8700_v46, %v6936_v8  ;;  %v4246_v48 = vpop.f32.mrb[117].mxu1  ;;  %v6922_v46 = vld [vmem:[%s10383_s19 + $0x28] sm:$0xff] }
0x1702   :  { %v4247_v51 = vadd.f32 %v6936_v8, %v4246_v48 }
0x1703   :  { %9758 = vmatpush3.bf16.xpose.msk.msra.mxu1 %vm10560_vm2, %v9753_v13 }
0x1704   :  { %9761 = vmatprep.subr.msk.bf16.mxu1 %vm10560_vm2, %v9759_v21  ;;  %v9777_v52 = vpack.c.bf16 %v4252_v47, %v4247_v51 }
0x170b   :  { %9764 = vmatpush3.bf16.xpose.msk.msra.mxu1 %vm10560_vm2, %v9759_v21 }
0x170c   :  { %9767 = vmatprep.subr.msk.bf16.mxu1 %vm10560_vm2, %v9765_v26 }
0x1713   :  { %9770 = vmatpush3.bf16.xpose.msk.msra.mxu1 %vm10560_vm2, %v9765_v26 }
0x1714   :  { %9773 = vmatprep.subr.msk.bf16.mxu1 %vm10560_vm2, %v9771_v45 }
0x171b   :  { %9776 = vmatpush3.bf16.xpose.msk.msra.mxu1 %vm10560_vm2, %v9771_v45 }
0x171c   :  { %9779 = vmatprep.subr.msk.bf16.mxu1 %vm10560_vm2, %v9777_v52 }
0x1723   :  { %9782 = vmatpush3.bf16.xpose.msk.msra.mxu1 %vm10560_vm2, %v9777_v52  ;;  %v6972_v52 = vld [vmem:[%s10388_s24 + $0x1] ss:$0 sm:$0xff] }
0x172a   :  { %8766 = vmatmul.mubr.msk.f32.vlgmr.msra.gmra.mrb[118].mxu1 %vm563_vm1, %v4094_v4  ;;  %v4364_v4 = vpop.f32.mrb[105].mxu0 }
0x172b   :  { %8836 = vmatprep.mubr.msk.f32.mxu1 %vm166_vm0, %v11384_v17  ;;  %v4365_v7 = vadd.f32 %v11307_v15, %v4364_v4  ;;  %v8723_v8 = vpop.f32.mrb[106].mxu0  ;;  %v11429_v4 = vld [vmem:[%s10338_s9 + $0x10] sm:$0xff] }
0x172c   :  { %v4380_v34 = vadd.f32 %v8723_v8, %v11307_v15  ;;  %v4374_v35 = vpop.f32.mrb[107].mxu0  ;;  %v11444_v8 = vld [vmem:[%s10338_s9 + $0x28] sm:$0xff] }
0x172d   :  { %v9795_v37 = vpack.c.bf16 %v4370_v3, %v4365_v7  ;;  %v4375_v36 = vadd.f32 %v11307_v15, %v4374_v35  ;;  %v8726_v33 = vpop.f32.mrb[108].mxu0  ;;  %v6988_v3 = vld [vmem:[%s10413_s27 + $0x58] sm:$0xff]  ;;  %v11439_v7 = vld [vmem:[%s10338_s9 + $0x20] sm:$0xff] }
0x172e   :  { %v4390_v12 = vadd.f32 %v8726_v33, %v11307_v15  ;;  %v4384_v38 = vpop.f32.mrb[109].mxu0  ;;  %v11454_v35 = vld [vmem:[%s10338_s9 + $0x38] sm:$0xff]  ;;  %v11469_v33 = vld [vmem:[%s10338_s9 + $0x50] sm:$0xff] }
0x172f   :  { %v9799_v14 = vpack.c.bf16 %v4380_v34, %v4375_v36  ;;  %v4385_v41 = vadd.f32 %v11307_v15, %v4384_v38  ;;  %v8729_v42 = vpop.f32.mrb[110].mxu0  ;;  %9796 = vmatprep.subr.bf16.mxu0 %v9795_v37  ;;  %v11449_v34 = vld [vmem:[%s10338_s9 + $0x30] sm:$0xff]  ;;  %v11464_v36 = vld [vmem:[%s10338_s9 + $0x48] sm:$0xff]  ;;  %v11479_v38 = vld [vmem:[%s10338_s9 + $0x60] sm:$0xff] }
0x1730   :  { %v4400_v43 = vadd.f32 %v8729_v42, %v11307_v15  ;;  %v4394_v44 = vpop.f32.mrb[111].mxu0  ;;  %9798 = vmatpush3.bf16.msra.mxu0 %v9795_v37  ;;  %v11459_v37 = vld [vmem:[%s10338_s9 + $0x40] sm:$0xff]  ;;  %v11494_v42 = vld [vmem:[%s10338_s9 + $0x78] sm:$0xff] }
0x1731   :  { %v9803_v2 = vpack.c.bf16 %v4390_v12, %v4385_v41  ;;  %v4395_v1 = vadd.f32 %v11307_v15, %v4394_v44  ;;  %9800 = vmatprep.subr.bf16.mxu0 %v9799_v14  ;;  %v8732_v20 = vpop.f32.mrb[112].mxu0  ;;  %v11474_v12 = vld [vmem:[%s10338_s9 + $0x58] sm:$0xff]  ;;  %v11489_v41 = vld [vmem:[%s10338_s9 + $0x70] sm:$0xff] }
0x1732   :  { %v4404_v21 = vpop.f32.mrb[113].mxu0  ;;  %v4410_v24 = vadd.f32 %v8732_v20, %v11307_v15  ;;  %v6979_v20 = vld [vmem:[%s10403_s12 + $0x50] sm:$0xff] }
0x1733   :  { %v9807_v55 = vpack.c.bf16 %v4400_v43, %v4395_v1  ;;  %v4405_v25 = vadd.f32 %v11307_v15, %v4404_v21  ;;  %v6921_v15 = vld [vmem:[%s10383_s19 + $0x20] sm:$0xff]  ;;  %v6980_v21 = vld [vmem:[%s10403_s12 + $0x58] sm:$0xff] }
0x1734   :  { %9802 = vmatpush3.bf16.msra.mxu0 %v9799_v14  ;;  %v9819_v47 = vpack.c.bf16 %v6922_v46, %v6921_v15  ;;  %v11484_v14 = vld [vmem:[%s10338_s9 + $0x68] sm:$0xff] }
0x1735   :  { %9804 = vmatprep.subr.bf16.mxu0 %v9803_v2 }
0x1738   :  { %9806 = vmatpush3.bf16.msra.mxu0 %v9803_v2 }
0x1739   :  { %9808 = vmatprep.subr.bf16.mxu0 %v9807_v55 }
0x173c   :  { %9810 = vmatpush3.bf16.msra.mxu0 %v9807_v55 }
0x17fd   :  { %v8767_v57 = vpop.f32.mrb[118].mxu1 }
0x17fe   :  { %v4539_v9 = vadd.f32 %v11299_v56, %v8767_v57  ;;  %v4533_v10 = vpop.f32.mrb[119].mxu1  ;;  %v9811_v56 = vpack.c.bf16 %v4410_v24, %v4405_v25  ;;  %v9827_v24 = vpack.c.bf16 %v6980_v21, %v6979_v20  ;;  %v6990_v25 = vld [vmem:[%s10418_s4 + $0x2] ss:$0 sm:$0xff] }
0x17ff   :  { %v4534_v11 = vadd.f32 %v11303_v58, %v4533_v10  ;;  %v6965_v58 = vld [vmem:[%s10383_s19 + $0x30] sm:$0xff] }
0x1800   :  { %v4544_v13 = vmul.f32 1.442695, %v4539_v9  ;;  %9812 = vmatprep.subr.bf16.mxu0 %v9811_v56  ;;  %v9815_v22 = vpack.c.bf16 %v6966_v27, %v6965_v58 }
0x1801   :  { %v4542_v16 = vmul.f32 1.442695, %v4534_v11  ;;  %9814 = vmatpush3.bf16.msra.mxu0 %v9811_v56 }
0x1802   :  { %10161 = vpow2.f32 %v4544_v13  ;;  %9816 = vmatprep.subr.bf16.mxu0 %v9815_v22 }
0x1803   :  { %10163 = vpow2.f32 %v4542_v16  ;;  %v6977_v16 = vld [vmem:[%s10403_s12 + $0x40] sm:$0xff] }
0x180c   :  { %v10162_v19 = vpop.eup %10161 }
0x180d   :  { %v10164_v63 = vpop.eup %10163  ;;  %4548 = vadd.xlane.f32.xlu1 %v10162_v19 }
0x180e   :  { %4546 = vadd.xlane.f32.xlu0 %v10164_v63 }
0x189a   :  { %v4549_v26 = vpop.xlane.xlu1 %4548 }
0x189b   :  { %10165 = vrcp.f32 %v4549_v26  ;;  %v4547_v28 = vpop.xlane.xlu0 %4546 }
0x189c   :  { %10167 = vrcp.f32 %v4547_v28 }
0x18a5   :  { %v10166_v29 = vpop.eup %10165 }
0x18a6   :  { %v10168_v30 = vpop.eup %10167  ;;  %v4553_v5 = vmul.f32 %v10166_v29, %v10162_v19  ;;  %v6978_v19 = vld [vmem:[%s10403_s12 + $0x48] sm:$0xff] }
0x18a7   :  { %v4552_v45 = vmul.f32 %v10168_v30, %v10164_v63  ;;  %v9823_v63 = vpack.c.bf16 %v6978_v19, %v6977_v16 }
0x18a8   :  { %6574 = vst [vmem:[#allocation4 + $0x38] sm:$0xff] %v4553_v5 }
0x18a9   :  { %8800 = vmatprep.mubr.f32.mxu0 %v4552_v45  ;;  %6573 = vst [vmem:[#allocation4 + $0x30] sm:$0xff] %v4552_v45 }
0x18aa   :  { %8801 = vmatmul.mubr.f32.vlgmr.msra.gmra.mrb[114].mxu0 %v4553_v5 }
0x18ab   :  { %9818 = vmatpush3.bf16.msra.mxu0 %v9815_v22 }
0x18ac   :  { %9820 = vmatprep.subr.bf16.mxu0 %v9819_v47 }
0x197d   :  { %v8802_v48 = vpop.f32.mrb[114].mxu0 }
0x197e   :  { %v4620_v51 = vpop.f32.mrb[115].mxu0 }
0x197f   :  { %8807 = vmatprep.mubr.msk.f32.mxu0 %vm563_vm1, %v4620_v51 }
0x1980   :  { %8808 = vmatmul.mubr.msk.f32.vlgmr.msra.gmra.mrb[116].mxu0 %vm563_vm1, %v8802_v48 }
0x1981   :  { %9822 = vmatpush3.bf16.msra.mxu0 %v9819_v47  ;;  %8814 = vmatprep.mubr.msk.f32.mxu0 %vm563_vm1, %v11345_v50 }
0x1982   :  { %9824 = vmatprep.subr.bf16.mxu0 %v9823_v63 }
0x1988   :  { %8815 = vmatmul.mubr.msk.f32.vlgmr.msra.gmra.mrb[116].mxu0 %vm563_vm1, %v11343_v49  ;;  %v6985_v49 = vld [vmem:[%s10413_s27 + $0x40] sm:$0xff] }
0x1989   :  { %v9831_v32 = vpack.c.bf16 %v6986_v62, %v6985_v49  ;;  %9826 = vmatpush3.bf16.msra.mxu0 %v9823_v63 }
0x198a   :  { %9828 = vmatprep.subr.bf16.mxu0 %v9827_v24 }
0x198b   :  { %9832 = vmatprep.subr.bf16.mxu1 %v9831_v32 }
0x198c   :  { %9834 = vmatpush3.bf16.msra.mxu1 %v9831_v32 }
0x198d   :  { %9830 = vmatpush3.bf16.msra.mxu0 %v9827_v24 }
0x1a5b   :  { %v8816_v23 = vpop.f32.mrb[116].mxu0 }
0x1a5c   :  { %v4803_v54 = vadd.f32 %v8816_v23, %v6972_v52  ;;  %v4785_v59 = vpop.f32.mrb[117].mxu0 }
0x1a5d   :  { %v4802_v60 = vadd.f32 %v6972_v52, %v4785_v59 }
0x1a5e   :  { %v4805_v39 = vadd.f32 %v4803_v54, %v11178_v53  ;;  %v9835_v53 = vpack.c.bf16 %v6988_v3, %v6987_v0 }
0x1a5f   :  { %v4804_v61 = vadd.f32 %v4802_v60, %v11176_v18  ;;  %v11424_v18 = vld [vmem:[%s10338_s9 + $0x8] sm:$0xff]  ;;  %s10320_s9 = smov [#allocation4]  }
0x1a60   :  { %v4813_v40 = vsel %vm166_vm0, %v4805_v39, 0.0  ;;  %9836 = vmatprep.subr.bf16.mxu1 %v9835_v53  ;;  %s6597_s13 = sshll.u32 %s10320_s9, 4  ;;  %s6598_s13 = int_to_ptr.vmem [resolvable:$true] %s6597_s13 }
0x1a61   :  { %4814 = vadd.xlane.f32.xlu1 %v4813_v40  ;;  %v4810_v50 = vsel %vm166_vm0, %v4804_v61, 0.0  ;;  %9838 = vmatpush3.bf16.msra.mxu1 %v9835_v53  ;;  %s10217_s21 = scalar_lea.vmem %s6598_s13, 1024  ;;  %p10222_p1 = scmp.lt.s32.totalorder %s6598_s13, %s6598_s13 }
0x1a62   :  { %4811 = vadd.xlane.f32.xlu0 %v4810_v50  ;;  %p10218_p0 = scmp.ne.s32.totalorder %s6598_s13, %s10217_s21  ;;  %p10223_p2 = scmp.lt.s32.totalorder %s10217_s21, %s10217_s21 }
0x1a64   :  { %8837 = vmatmul.mubr.msk.f32.vlgmr.msra.gmra.mrb[120].mxu1 %vm166_vm0, %v11424_v18  ;;  %p10224_p3 = por %p10223_p2, %p10222_p1 }
0x1a65   :  { %8839 = vmatprep.mubr.msk.f32.mxu1 %vm166_vm0, %v11429_v4 }
0x1a66   :  { %p10225_p4 = pnand %p10224_p3, %p10218_p0 }
0x1a68   :  { %8840 = vmatmul.mubr.msk.f32.gmra.mrb[122].mxu1 %vm166_vm0, %v11434_v6 }
0x1a69   :  { %8842 = vmatprep.mubr.msk.f32.mxu1 %vm166_vm0, %v11439_v7 }
0x1a6c   :  { %8843 = vmatmul.mubr.msk.f32.gmra.mrb[124].mxu1 %vm166_vm0, %v11444_v8 }
0x1a6d   :  { %8845 = vmatprep.mubr.msk.f32.mxu1 %vm166_vm0, %v11449_v34 }
0x1a70   :  { %8846 = vmatmul.mubr.msk.f32.gmra.mrb[126].mxu1 %vm166_vm0, %v11454_v35 }
0x1a71   :  { %8848 = vmatprep.mubr.msk.f32.mxu1 %vm166_vm0, %v11459_v37 }
0x1a74   :  { %8849 = vmatmul.mubr.msk.f32.gmra.mrb[128].mxu1 %vm166_vm0, %v11464_v36 }
0x1a75   :  { %8851 = vmatprep.mubr.msk.f32.mxu1 %vm166_vm0, %v11469_v33 }
0x1a78   :  { %8852 = vmatmul.mubr.msk.f32.gmra.mrb[130].mxu1 %vm166_vm0, %v11474_v12 }
0x1a79   :  { %8854 = vmatprep.mubr.msk.f32.mxu1 %vm166_vm0, %v11479_v38 }
0x1a7c   :  { %8855 = vmatmul.mubr.msk.f32.gmra.mrb[132].mxu1 %vm166_vm0, %v11484_v14 }
0x1a7d   :  { %8857 = vmatprep.mubr.msk.f32.mxu1 %vm166_vm0, %v11489_v41 }
0x1a80   :  { %8858 = vmatmul.mubr.msk.f32.gmra.mrb[134].mxu1 %vm166_vm0, %v11494_v42 }
0x1aee   :  { %v4815_v43 = vpop.xlane.xlu1 %4814 }
0x1aef   :  { %v4817_v44 = vmul.f32 0.03125, %v4815_v43  ;;  %v4812_v2 = vpop.xlane.xlu0 %4811 }
0x1af0   :  { %v4816_v1 = vmul.f32 0.03125, %v4812_v2 }
0x1af1   :  { %v11498_v55 = vsub.f32 %v4805_v39, %v4817_v44 }
0x1af2   :  { %v11500_v57 = vsub.f32 %v4804_v61, %v4816_v1 }
0x1af3   :  { %v4821_v9 = vmul.f32 %v11498_v55, %v11498_v55 }
0x1af4   :  { %v4820_v10 = vmul.f32 %v11500_v57, %v11500_v57 }
0x1af5   :  { %v4825_v11 = vsel %vm166_vm0, %v4821_v9, 0.0 }
0x1af6   :  { %4826 = vadd.xlane.f32.xlu1 %v4825_v11  ;;  %v4822_v13 = vsel %vm166_vm0, %v4820_v10, 0.0 }
0x1af7   :  { %4823 = vadd.xlane.f32.xlu0 %v4822_v13 }
0x1b37   :  { %v8838_v56 = vpop.f32.mrb[120].mxu1 }
0x1b38   :  { %v5031_v58 = vadd.f32 %v8838_v56, %v6990_v25  ;;  %v5025_v27 = vpop.f32.mrb[121].mxu1 }
0x1b39   :  { %v5026_v22 = vadd.f32 %v6990_v25, %v5025_v27  ;;  %v6975_v27 = vld [vmem:[%s11865_s0 + $0x1] ss:$0 sm:$0xff] }
0x1b3b   :  { %v9847_v26 = vpack.c.bf16 %v5031_v58, %v5026_v22  ;;  %v8841_v28 = vpop.f32.mrb[122].mxu1 }
0x1b3c   :  { %v5041_v29 = vadd.f32 %v8841_v28, %v6990_v25  ;;  %v5035_v30 = vpop.f32.mrb[123].mxu1 }
0x1b3d   :  { %9849 = vmatprep.subr.msk.bf16.mxu1 %vm10560_vm2, %v9847_v26  ;;  %v5036_v5 = vadd.f32 %v6990_v25, %v5035_v30 }
0x1b3e   :  { %9852 = vmatpush3.bf16.xpose.msk.msra.mxu1 %vm10560_vm2, %v9847_v26 }
0x1b3f   :  { %v9853_v45 = vpack.c.bf16 %v5041_v29, %v5036_v5  ;;  %v8844_v15 = vpop.f32.mrb[124].mxu1  ;;  %v6976_v29 = vld [vmem:[%s11866_s5 + $0x1] ss:$0 sm:$0xff] }
0x1b40   :  { %v5051_v46 = vadd.f32 %v8844_v15, %v6990_v25  ;;  %v5045_v47 = vpop.f32.mrb[125].mxu1 }
0x1b41   :  { %9855 = vmatprep.subr.msk.bf16.mxu1 %vm10560_vm2, %v9853_v45  ;;  %v5046_v48 = vadd.f32 %v6990_v25, %v5045_v47 }
0x1b43   :  { %v9859_v51 = vpack.c.bf16 %v5051_v46, %v5046_v48  ;;  %v8847_v52 = vpop.f32.mrb[126].mxu1  ;;  %v7009_v46 = vld [vmem:[%s11867_s28 + $0x50] sm:$0xff]  ;;  %v7010_v48 = vld [vmem:[%s11867_s28 + $0x58] sm:$0xff] }
0x1b44   :  { %v5061_v23 = vadd.f32 %v8847_v52, %v6990_v25  ;;  %v5055_v54 = vpop.f32.mrb[127].mxu1  ;;  %v6982_v52 = vld [vmem:[%s11868_s1 + $0x2] ss:$0 sm:$0xff] }
0x1b45   :  { %v5056_v59 = vadd.f32 %v6990_v25, %v5055_v54 }
0x1b46   :  { %9858 = vmatpush3.bf16.xpose.msk.msra.mxu1 %vm10560_vm2, %v9853_v45 }
0x1b47   :  { %9861 = vmatprep.subr.msk.bf16.mxu1 %vm10560_vm2, %v9859_v51  ;;  %v9865_v60 = vpack.c.bf16 %v5061_v23, %v5056_v59  ;;  %v8850_v39 = vpop.f32.mrb[128].mxu1 }
0x1b48   :  { %v5071_v61 = vadd.f32 %v8850_v39, %v6990_v25  ;;  %v5065_v40 = vpop.f32.mrb[129].mxu1 }
0x1b49   :  { %v5066_v50 = vadd.f32 %v6990_v25, %v5065_v40 }
0x1b4b   :  { %v9871_v49 = vpack.c.bf16 %v5071_v61, %v5066_v50  ;;  %v8853_v62 = vpop.f32.mrb[130].mxu1  ;;  %v11599_v61 = vld [vmem:[%s11869_s2 + $0x2] ss:$0 sm:$0xff] }
0x1b4c   :  { %v5081_v0 = vadd.f32 %v8853_v62, %v6990_v25  ;;  %v5075_v32 = vpop.f32.mrb[131].mxu1 }
0x1b4d   :  { %v5076_v3 = vadd.f32 %v6990_v25, %v5075_v32 }
0x1b4e   :  { %9864 = vmatpush3.bf16.xpose.msk.msra.mxu1 %vm10560_vm2, %v9859_v51  ;;  %v9843_v51 = vpack.c.bf16 %v7010_v48, %v7009_v46 }
0x1b4f   :  { %9867 = vmatprep.subr.msk.bf16.mxu1 %vm10560_vm2, %v9865_v60  ;;  %v9877_v53 = vpack.c.bf16 %v5081_v0, %v5076_v3  ;;  %v8856_v43 = vpop.f32.mrb[132].mxu1 }
0x1b50   :  { %v5091_v44 = vadd.f32 %v8856_v43, %v6990_v25  ;;  %v5085_v2 = vpop.f32.mrb[133].mxu1 }
0x1b51   :  { %v5086_v1 = vadd.f32 %v6990_v25, %v5085_v2 }
0x1b53   :  { %v9883_v9 = vpack.c.bf16 %v5091_v44, %v5086_v1  ;;  %v8859_v10 = vpop.f32.mrb[134].mxu1 }
0x1b54   :  { %v5101_v11 = vadd.f32 %v8859_v10, %v6990_v25  ;;  %v5095_v13 = vpop.f32.mrb[135].mxu1 }
0x1b55   :  { %v5096_v16 = vadd.f32 %v6990_v25, %v5095_v13 }
0x1b56   :  { %9870 = vmatpush3.bf16.xpose.msk.msra.mxu1 %vm10560_vm2, %v9865_v60 }
0x1b57   :  { %9873 = vmatprep.subr.msk.bf16.mxu1 %vm10560_vm2, %v9871_v49  ;;  %v9889_v19 = vpack.c.bf16 %v5101_v11, %v5096_v16 }
0x1b5e   :  { %9876 = vmatpush3.bf16.xpose.msk.msra.mxu1 %vm10560_vm2, %v9871_v49 }
0x1b5f   :  { %9879 = vmatprep.subr.msk.bf16.mxu1 %vm10560_vm2, %v9877_v53 }
0x1b66   :  { %9882 = vmatpush3.bf16.xpose.msk.msra.mxu1 %vm10560_vm2, %v9877_v53 }
0x1b67   :  { %9885 = vmatprep.subr.msk.bf16.mxu1 %vm10560_vm2, %v9883_v9 }
0x1b6e   :  { %9888 = vmatpush3.bf16.xpose.msk.msra.mxu1 %vm10560_vm2, %v9883_v9 }
0x1b6f   :  { %9891 = vmatprep.subr.msk.bf16.mxu1 %vm10560_vm2, %v9889_v19 }
0x1b76   :  { %9894 = vmatpush3.bf16.xpose.msk.msra.mxu1 %vm10560_vm2, %v9889_v19 }
0x1b83   :  { %v4827_v63 = vpop.xlane.xlu1 %4826 }
0x1b84   :  { %v4829_v20 = vmul.f32 0.03125, %v4827_v63  ;;  %v4824_v21 = vpop.xlane.xlu0 %4823 }
0x1b85   :  { %v4828_v24 = vmul.f32 0.03125, %v4824_v21 }
0x1b86   :  { %v4831_v25 = vadd.f32 1e-05, %v4829_v20 }
0x1b87   :  { %v4830_v56 = vadd.f32 1e-05, %v4828_v24 }
0x1b88   :  { %10169 = vrsqrt.f32 %v4831_v25 }
0x1b89   :  { %10171 = vrsqrt.f32 %v4830_v56 }
0x1b92   :  { %v10170_v58 = vpop.eup %10169 }
0x1b93   :  { %v10172_v22 = vpop.eup %10171  ;;  %v4835_v26 = vmul.f32 %v10170_v58, %v11498_v55  ;;  %v7007_v55 = vld [vmem:[%s11867_s28 + $0x40] sm:$0xff] }
0x1b94   :  { %v4834_v28 = vmul.f32 %v10172_v22, %v11500_v57  ;;  %v7008_v57 = vld [vmem:[%s11867_s28 + $0x48] sm:$0xff] }
0x1b95   :  { %v4843_v30 = vmul.f32 %v6975_v27, %v4835_v26  ;;  %v9839_v47 = vpack.c.bf16 %v7008_v57, %v7007_v55 }
0x1b96   :  { %v4842_v5 = vmul.f32 %v6975_v27, %v4834_v28 }
0x1b97   :  { %v11551_v15 = vadd.f32 %v6976_v29, %v4843_v30  ;;  %9840 = vmatprep.subr.bf16.mxu0 %v9839_v47 }
0x1b98   :  { %v11549_v45 = vadd.f32 %v6976_v29, %v4842_v5 }
0x1b9a   :  { %8825 = vmatprep.mubr.msk.f32.mxu0 %vm166_vm0, %v11549_v45 }
0x1b9b   :  { %8826 = vmatmul.mubr.msk.f32.vlgmr.msra.gmra.mrb[118].mxu0 %vm166_vm0, %v11551_v15 }
0x1b9c   :  { %8868 = vmatprep.mubr.msk.f32.mxu0 %vm166_vm0, %v11384_v17  ;;  %9842 = vmatpush3.bf16.msra.mxu0 %v9839_v47  ;;  %v11616_v47 = vld [vmem:[%s11870_s7 + $0x8] sm:$0xff] }
0x1b9d   :  { %9844 = vmatprep.subr.bf16.mxu0 %v9843_v51 }
0x1ba0   :  { %9846 = vmatpush3.bf16.msra.mxu0 %v9843_v51 }
0x1ba3   :  { %8869 = vmatmul.mubr.msk.f32.vlgmr.msra.gmra.mrb[120].mxu0 %vm166_vm0, %v11424_v18 }
0x1ba4   :  { %8871 = vmatprep.mubr.msk.f32.mxu0 %vm166_vm0, %v11429_v4 }
0x1ba7   :  { %8872 = vmatmul.mubr.msk.f32.gmra.mrb[122].mxu0 %vm166_vm0, %v11434_v6 }
0x1ba8   :  { %8874 = vmatprep.mubr.msk.f32.mxu0 %vm166_vm0, %v11439_v7 }
0x1bab   :  { %8875 = vmatmul.mubr.msk.f32.gmra.mrb[124].mxu0 %vm166_vm0, %v11444_v8 }
0x1bac   :  { %8877 = vmatprep.mubr.msk.f32.mxu0 %vm166_vm0, %v11449_v34 }
0x1baf   :  { %8878 = vmatmul.mubr.msk.f32.gmra.mrb[126].mxu0 %vm166_vm0, %v11454_v35 }
0x1bb0   :  { %8880 = vmatprep.mubr.msk.f32.mxu0 %vm166_vm0, %v11459_v37 }
0x1bb3   :  { %8881 = vmatmul.mubr.msk.f32.gmra.mrb[128].mxu0 %vm166_vm0, %v11464_v36 }
0x1bb4   :  { %8883 = vmatprep.mubr.msk.f32.mxu0 %vm166_vm0, %v11469_v33 }
0x1bb7   :  { %8884 = vmatmul.mubr.msk.f32.gmra.mrb[130].mxu0 %vm166_vm0, %v11474_v12 }
0x1bb8   :  { %8886 = vmatprep.mubr.msk.f32.mxu0 %vm166_vm0, %v11479_v38 }
0x1bbb   :  { %8887 = vmatmul.mubr.msk.f32.gmra.mrb[132].mxu0 %vm166_vm0, %v11484_v14 }
0x1bbc   :  { %8889 = vmatprep.mubr.msk.f32.mxu0 %vm166_vm0, %v11489_v41 }
0x1bbf   :  { %8890 = vmatmul.mubr.msk.f32.gmra.mrb[134].mxu0 %vm166_vm0, %v11494_v42 }
0x1c6e   :  { %v8827_v23 = vpop.f32.mrb[118].mxu0 }
0x1c6f   :  { %v4937_v54 = vpop.f32.mrb[119].mxu0  ;;  %v4943_v60 = vadd.f32 %v8827_v23, %v6982_v52 }
0x1c70   :  { %v4938_v59 = vadd.f32 %v6982_v52, %v4937_v54  ;;  %v11620_v52 = vld [vmem:[%s11870_s7] sm:$0xff] }
0x1c72   :  { %8924 = vmatprep.mubr.msk.f32.mxu1 %vm563_vm1, %v4938_v59 }
0x1c73   :  { %8925 = vmatmul.mubr.msk.f32.vlgmr.msra.gmra.mrb[136].mxu1 %vm563_vm1, %v4943_v60 }
0x1c74   :  { %9013 = vmatprep.mubr.msk.f32.mxu1 %vm166_vm0, %v11384_v17 }
0x1c76   :  { %v8870_v39 = vpop.f32.mrb[120].mxu0 }
0x1c77   :  { %v5189_v40 = vadd.f32 %v8870_v39, %v11599_v61  ;;  %v5183_v50 = vpop.f32.mrb[121].mxu0 }
0x1c78   :  { %v5184_v49 = vadd.f32 %v11599_v61, %v5183_v50 }
0x1c7a   :  { %v8873_v62 = vpop.f32.mrb[122].mxu0  ;;  %v9895_v3 = vpack.c.bf16 %v5189_v40, %v5184_v49 }
0x1c7b   :  { %v5199_v0 = vadd.f32 %v8873_v62, %v11599_v61  ;;  %v5193_v32 = vpop.f32.mrb[123].mxu0 }
0x1c7c   :  { %v5194_v53 = vadd.f32 %v11599_v61, %v5193_v32  ;;  %9896 = vmatprep.subr.bf16.mxu0 %v9895_v3  ;;  %v7049_v32 = vld [vmem:[%s10403_s12 + $0x60] sm:$0xff] }
0x1c7d   :  { %9898 = vmatpush3.bf16.msra.mxu0 %v9895_v3  ;;  %v7050_v3 = vld [vmem:[%s10403_s12 + $0x68] sm:$0xff] }
0x1c7e   :  { %v8876_v43 = vpop.f32.mrb[124].mxu0  ;;  %v9899_v1 = vpack.c.bf16 %v5199_v0, %v5194_v53  ;;  %v9927_v53 = vpack.c.bf16 %v7050_v3, %v7049_v32 }
0x1c7f   :  { %v5209_v44 = vadd.f32 %v8876_v43, %v11599_v61  ;;  %v5203_v2 = vpop.f32.mrb[125].mxu0 }
0x1c80   :  { %v5204_v9 = vadd.f32 %v11599_v61, %v5203_v2  ;;  %9900 = vmatprep.subr.bf16.mxu0 %v9899_v1 }
0x1c81   :  { %9902 = vmatpush3.bf16.msra.mxu0 %v9899_v1  ;;  %v7051_v1 = vld [vmem:[%s10403_s12 + $0x70] sm:$0xff] }
0x1c82   :  { %v8879_v10 = vpop.f32.mrb[126].mxu0  ;;  %v9903_v16 = vpack.c.bf16 %v5209_v44, %v5204_v9  ;;  %v7052_v9 = vld [vmem:[%s10403_s12 + $0x78] sm:$0xff] }
0x1c83   :  { %v5219_v11 = vadd.f32 %v8879_v10, %v11599_v61  ;;  %v5213_v13 = vpop.f32.mrb[127].mxu0 }
0x1c84   :  { %v5214_v19 = vadd.f32 %v11599_v61, %v5213_v13  ;;  %9904 = vmatprep.subr.bf16.mxu0 %v9903_v16  ;;  %v9931_v13 = vpack.c.bf16 %v7052_v9, %v7051_v1 }
0x1c85   :  { %9906 = vmatpush3.bf16.msra.mxu0 %v9903_v16  ;;  %v7057_v16 = vld [vmem:[%s10413_s27 + $0x60] sm:$0xff] }
0x1c86   :  { %v9907_v63 = vpack.c.bf16 %v5219_v11, %v5214_v19  ;;  %v8882_v20 = vpop.f32.mrb[128].mxu0  ;;  %v7058_v19 = vld [vmem:[%s10413_s27 + $0x68] sm:$0xff] }
0x1c87   :  { %v5229_v21 = vadd.f32 %v8882_v20, %v11599_v61  ;;  %v5223_v24 = vpop.f32.mrb[129].mxu0  ;;  %v7059_v20 = vld [vmem:[%s10413_s27 + $0x70] sm:$0xff] }
0x1c88   :  { %v5224_v25 = vadd.f32 %v11599_v61, %v5223_v24  ;;  %9908 = vmatprep.subr.bf16.mxu0 %v9907_v63 }
0x1c89   :  { %9910 = vmatpush3.bf16.msra.mxu0 %v9907_v63  ;;  %v9935_v63 = vpack.c.bf16 %v7058_v19, %v7057_v16 }
0x1c8a   :  { %v9911_v56 = vpack.c.bf16 %v5229_v21, %v5224_v25  ;;  %v8885_v58 = vpop.f32.mrb[130].mxu0  ;;  %v7060_v21 = vld [vmem:[%s10413_s27 + $0x78] sm:$0xff]  ;;  %v7080_v25 = vld [vmem:[%s11867_s28 + $0x68] sm:$0xff] }
0x1c8b   :  { %v5239_v27 = vadd.f32 %v8885_v58, %v11599_v61  ;;  %v5233_v22 = vpop.f32.mrb[131].mxu0  ;;  %v9939_v24 = vpack.c.bf16 %v7060_v21, %v7059_v20 }
0x1c8c   :  { %v5234_v26 = vadd.f32 %v11599_v61, %v5233_v22  ;;  %9912 = vmatprep.subr.bf16.mxu0 %v9911_v56 }
0x1c8d   :  { %9914 = vmatpush3.bf16.msra.mxu0 %v9911_v56  ;;  %v7081_v56 = vld [vmem:[%s11867_s28 + $0x70] sm:$0xff] }
0x1c8e   :  { %v9915_v28 = vpack.c.bf16 %v5239_v27, %v5234_v26  ;;  %v8888_v29 = vpop.f32.mrb[132].mxu0  ;;  %v7082_v27 = vld [vmem:[%s11867_s28 + $0x78] sm:$0xff] }
0x1c8f   :  { %v5249_v30 = vadd.f32 %v8888_v29, %v11599_v61  ;;  %v5243_v5 = vpop.f32.mrb[133].mxu0  ;;  %v9947_v22 = vpack.c.bf16 %v7082_v27, %v7081_v56 }
0x1c90   :  { %v5244_v55 = vadd.f32 %v11599_v61, %v5243_v5  ;;  %9916 = vmatprep.subr.bf16.mxu0 %v9915_v28 }
0x1c91   :  { %9918 = vmatpush3.bf16.msra.mxu0 %v9915_v28 }
0x1c92   :  { %v9919_v57 = vpack.c.bf16 %v5249_v30, %v5244_v55  ;;  %v8891_v40 = vpop.f32.mrb[134].mxu0 }
0x1c93   :  { %v5253_v50 = vpop.f32.mrb[135].mxu0  ;;  %v5259_v49 = vadd.f32 %v8891_v40, %v11599_v61 }
0x1c94   :  { %9920 = vmatprep.subr.bf16.mxu0 %v9919_v57  ;;  %v5254_v62 = vadd.f32 %v11599_v61, %v5253_v50 }
0x1c95   :  { %9922 = vmatpush3.bf16.msra.mxu0 %v9919_v57 }
0x1c96   :  { %v9923_v0 = vpack.c.bf16 %v5259_v49, %v5254_v62 }
0x1c98   :  { %9924 = vmatprep.subr.bf16.mxu0 %v9923_v0 }
0x1c99   :  { %9926 = vmatpush3.bf16.msra.mxu0 %v9923_v0 }
0x1c9a   :  { %9928 = vmatprep.subr.bf16.mxu0 %v9927_v53 }
0x1d46   :  { %v8926_v46 = vpop.f32.mrb[136].mxu1 }
0x1d47   :  { %v5388_v48 = vadd.f32 %v11616_v47, %v8926_v46  ;;  %v5382_v51 = vpop.f32.mrb[137].mxu1 }
0x1d48   :  { %v5383_v23 = vadd.f32 %v11620_v52, %v5382_v51 }
0x1d49   :  { %v5393_v54 = vmul.f32 1.442695, %v5388_v48 }
0x1d4a   :  { %v5391_v59 = vmul.f32 1.442695, %v5383_v23 }
0x1d4b   :  { %10173 = vpow2.f32 %v5393_v54 }
0x1d4c   :  { %10175 = vpow2.f32 %v5391_v59 }
0x1d55   :  { %v10174_v60 = vpop.eup %10173 }
0x1d56   :  { %v10176_v39 = vpop.eup %10175  ;;  %5397 = vadd.xlane.f32.xlu1 %v10174_v60 }
0x1d57   :  { %5395 = vadd.xlane.f32.xlu0 %v10176_v39 }
0x1de3   :  { %v5398_v43 = vpop.xlane.xlu1 %5397 }
0x1de4   :  { %10177 = vrcp.f32 %v5398_v43  ;;  %v5396_v44 = vpop.xlane.xlu0 %5395 }
0x1de5   :  { %10179 = vrcp.f32 %v5396_v44 }
0x1dee   :  { %v10178_v2 = vpop.eup %10177 }
0x1def   :  { %v10180_v10 = vpop.eup %10179  ;;  %v5402_v61 = vmul.f32 %v10178_v2, %v10174_v60 }
0x1df0   :  { %v5401_v11 = vmul.f32 %v10180_v10, %v10176_v39 }
0x1df1   :  { %6571 = vst [vmem:[#allocation6 + $0x28] sm:$0xff] %v5402_v61 }
0x1df2   :  { %8959 = vmatprep.mubr.f32.mxu0 %v5401_v11  ;;  %6570 = vst [vmem:[#allocation6 + $0x20] sm:$0xff] %v5401_v11 }
0x1df3   :  { %8960 = vmatmul.mubr.f32.vlgmr.msra.gmra.mrb[136].mxu0 %v5402_v61 }
0x1df4   :  { %9930 = vmatpush3.bf16.msra.mxu0 %v9927_v53  ;;  %8970 = vmatprep.mubr.msk.f32.mxu0 %vm166_vm0, %v11549_v45 }
0x1df5   :  { %9932 = vmatprep.subr.bf16.mxu0 %v9931_v13 }
0x1df8   :  { %9934 = vmatpush3.bf16.msra.mxu0 %v9931_v13 }
0x1df9   :  { %9936 = vmatprep.subr.bf16.mxu0 %v9935_v63 }
0x1dfb   :  { %8971 = vmatmul.mubr.msk.f32.vlgmr.msra.gmra.mrb[138].mxu0 %vm166_vm0, %v11551_v15 }
0x1dfc   :  { %9938 = vmatpush3.bf16.msra.mxu0 %v9935_v63  ;;  %8981 = vmatprep.mubr.msk.f32.mxu0 %vm166_vm0, %v11384_v17  ;;  %v7079_v17 = vld [vmem:[%s11867_s28 + $0x60] sm:$0xff] }
0x1dfd   :  { %9940 = vmatprep.subr.bf16.mxu0 %v9939_v24  ;;  %v9943_v58 = vpack.c.bf16 %v7080_v25, %v7079_v17  ;;  %v11744_v63 = vld [vmem:[%s11869_s2 + $0x3] ss:$0 sm:$0xff] }
0x1dff   :  { %9944 = vmatprep.subr.bf16.mxu1 %v9943_v58 }
0x1e00   :  { %9942 = vmatpush3.bf16.msra.mxu0 %v9939_v24  ;;  %9946 = vmatpush3.bf16.msra.mxu1 %v9943_v58 }
0x1e01   :  { %9948 = vmatprep.subr.bf16.mxu1 %v9947_v22 }
0x1e03   :  { %8982 = vmatmul.mubr.msk.f32.vlgmr.msra.gmra.mrb[140].mxu0 %vm166_vm0, %v11424_v18 }
0x1e04   :  { %8984 = vmatprep.mubr.msk.f32.mxu0 %vm166_vm0, %v11429_v4  ;;  %9950 = vmatpush3.bf16.msra.mxu1 %v9947_v22 }
0x1e07   :  { %8985 = vmatmul.mubr.msk.f32.gmra.mrb[142].mxu0 %vm166_vm0, %v11434_v6  ;;  %9014 = vmatmul.mubr.msk.f32.vlgmr.msra.gmra.mrb[138].mxu1 %vm166_vm0, %v11424_v18 }
0x1e08   :  { %8987 = vmatprep.mubr.msk.f32.mxu0 %vm166_vm0, %v11439_v7  ;;  %9016 = vmatprep.mubr.msk.f32.mxu1 %vm166_vm0, %v11429_v4 }
0x1e0b   :  { %8988 = vmatmul.mubr.msk.f32.gmra.mrb[144].mxu0 %vm166_vm0, %v11444_v8  ;;  %9017 = vmatmul.mubr.msk.f32.gmra.mrb[140].mxu1 %vm166_vm0, %v11434_v6  ;;  %v7054_v6 = vld [vmem:[%s11868_s1 + $0x3] ss:$0 sm:$0xff] }
0x1e0c   :  { %8990 = vmatprep.mubr.msk.f32.mxu0 %vm166_vm0, %v11449_v34  ;;  %9019 = vmatprep.mubr.msk.f32.mxu1 %vm166_vm0, %v11439_v7 }
0x1e0f   :  { %8991 = vmatmul.mubr.msk.f32.gmra.mrb[146].mxu0 %vm166_vm0, %v11454_v35  ;;  %9020 = vmatmul.mubr.msk.f32.gmra.mrb[142].mxu1 %vm166_vm0, %v11444_v8 }
0x1e10   :  { %8993 = vmatprep.mubr.msk.f32.mxu0 %vm166_vm0, %v11459_v37  ;;  %9022 = vmatprep.mubr.msk.f32.mxu1 %vm166_vm0, %v11449_v34 }
0x1e13   :  { %8994 = vmatmul.mubr.msk.f32.gmra.mrb[148].mxu0 %vm166_vm0, %v11464_v36  ;;  %9023 = vmatmul.mubr.msk.f32.gmra.mrb[144].mxu1 %vm166_vm0, %v11454_v35 }
0x1e14   :  { %8996 = vmatprep.mubr.msk.f32.mxu0 %vm166_vm0, %v11469_v33  ;;  %9025 = vmatprep.mubr.msk.f32.mxu1 %vm166_vm0, %v11459_v37  ;;  %v7062_v37 = vld [vmem:[%s10418_s4 + $0x3] ss:$0 sm:$0xff] }
0x1e17   :  { %8997 = vmatmul.mubr.msk.f32.gmra.mrb[150].mxu0 %vm166_vm0, %v11474_v12  ;;  %9026 = vmatmul.mubr.msk.f32.gmra.mrb[146].mxu1 %vm166_vm0, %v11464_v36 }
0x1e18   :  { %8999 = vmatprep.mubr.msk.f32.mxu0 %vm166_vm0, %v11479_v38  ;;  %9028 = vmatprep.mubr.msk.f32.mxu1 %vm166_vm0, %v11469_v33 }
0x1e1b   :  { %9000 = vmatmul.mubr.msk.f32.gmra.mrb[152].mxu0 %vm166_vm0, %v11484_v14  ;;  %9029 = vmatmul.mubr.msk.f32.gmra.mrb[148].mxu1 %vm166_vm0, %v11474_v12 }
0x1e1c   :  { %9002 = vmatprep.mubr.msk.f32.mxu0 %vm166_vm0, %v11489_v41  ;;  %9031 = vmatprep.mubr.msk.f32.mxu1 %vm166_vm0, %v11479_v38 }
0x1e1f   :  { %9003 = vmatmul.mubr.msk.f32.gmra.mrb[154].mxu0 %vm166_vm0, %v11494_v42  ;;  %9032 = vmatmul.mubr.msk.f32.gmra.mrb[150].mxu1 %vm166_vm0, %v11484_v14 }
0x1e20   :  { %9034 = vmatprep.mubr.msk.f32.mxu1 %vm166_vm0, %v11489_v41 }
0x1e23   :  { %9035 = vmatmul.mubr.msk.f32.gmra.mrb[152].mxu1 %vm166_vm0, %v11494_v42 }
0x1ec6   :  { %v11703_v18 = vpop.f32.mrb[136].mxu0 }
0x1ec7   :  { %v11705_v4 = vpop.f32.mrb[137].mxu0 }
0x1ece   :  { %v8972_v7 = vpop.f32.mrb[138].mxu0 }
0x1ecf   :  { %v5566_v8 = vadd.f32 %v8972_v7, %v7054_v6  ;;  %v5560_v34 = vpop.f32.mrb[139].mxu0 }
0x1ed0   :  { %v5561_v35 = vadd.f32 %v7054_v6, %v5560_v34 }
0x1ed2   :  { %9069 = vmatprep.mubr.msk.f32.mxu0 %vm563_vm1, %v5561_v35 }
0x1ed6   :  { %v8983_v36 = vpop.f32.mrb[140].mxu0 }
0x1ed7   :  { %v5654_v33 = vadd.f32 %v8983_v36, %v7062_v37  ;;  %v5648_v12 = vpop.f32.mrb[141].mxu0 }
0x1ed8   :  { %v5649_v38 = vadd.f32 %v7062_v37, %v5648_v12 }
0x1eda   :  { %v9951_v14 = vpack.c.bf16 %v5654_v33, %v5649_v38  ;;  %v8986_v41 = vpop.f32.mrb[142].mxu0  ;;  %v9015_v19 = vpop.f32.mrb[138].mxu1 }
0x1edb   :  { %v5664_v26 = vadd.f32 %v8986_v41, %v7062_v37  ;;  %v5658_v42 = vpop.f32.mrb[143].mxu0  ;;  %v5812_v20 = vadd.f32 %v9015_v19, %v11744_v63  ;;  %v5806_v21 = vpop.f32.mrb[139].mxu1 }
0x1edc   :  { %9953 = vmatprep.subr.msk.bf16.mxu0 %vm10560_vm2, %v9951_v14  ;;  %v5659_v28 = vadd.f32 %v7062_v37, %v5658_v42  ;;  %v5807_v24 = vadd.f32 %v11744_v63, %v5806_v21  ;;  %v7126_v21 = vld [vmem:[%s11872_s11 + $0x1] ss:$0 sm:$0xff] }
0x1edd   :  { %9956 = vmatpush3.bf16.xpose.msk.msra.mxu0 %vm10560_vm2, %v9951_v14 }
0x1ede   :  { %v9957_v29 = vpack.c.bf16 %v5664_v26, %v5659_v28  ;;  %v8989_v30 = vpop.f32.mrb[144].mxu0  ;;  %v9018_v17 = vpop.f32.mrb[140].mxu1  ;;  %v9999_v58 = vpack.c.bf16 %v5812_v20, %v5807_v24 }
0x1edf   :  { %v5674_v5 = vadd.f32 %v8989_v30, %v7062_v37  ;;  %v5668_v55 = vpop.f32.mrb[145].mxu0  ;;  %v5822_v25 = vadd.f32 %v9018_v17, %v11744_v63  ;;  %v5816_v56 = vpop.f32.mrb[141].mxu1 }
0x1ee0   :  { %9959 = vmatprep.subr.msk.bf16.mxu0 %vm10560_vm2, %v9957_v29  ;;  %v5669_v57 = vadd.f32 %v7062_v37, %v5668_v55  ;;  %v5817_v27 = vadd.f32 %v11744_v63, %v5816_v56  ;;  %10000 = vmatprep.subr.bf16.mxu1 %v9999_v58 }
0x1ee1   :  { %10002 = vmatpush3.bf16.msra.mxu1 %v9999_v58 }
0x1ee2   :  { %v9963_v46 = vpack.c.bf16 %v5674_v5, %v5669_v57  ;;  %v8992_v48 = vpop.f32.mrb[146].mxu0  ;;  %v9021_v22 = vpop.f32.mrb[142].mxu1  ;;  %v10003_v7 = vpack.c.bf16 %v5822_v25, %v5817_v27 }
0x1ee3   :  { %v5684_v51 = vadd.f32 %v8992_v48, %v7062_v37  ;;  %v5678_v23 = vpop.f32.mrb[147].mxu0  ;;  %v5832_v31 = vadd.f32 %v9021_v22, %v11744_v63  ;;  %v5826_v6 = vpop.f32.mrb[143].mxu1 }
0x1ee4   :  { %v5679_v54 = vadd.f32 %v7062_v37, %v5678_v23  ;;  %10004 = vmatprep.subr.bf16.mxu1 %v10003_v7 }
0x1ee5   :  { %9962 = vmatpush3.bf16.xpose.msk.msra.mxu0 %vm10560_vm2, %v9957_v29  ;;  %10006 = vmatpush3.bf16.msra.mxu1 %v10003_v7 }
0x1ee6   :  { %9965 = vmatprep.subr.msk.bf16.mxu0 %vm10560_vm2, %v9963_v46  ;;  %v9969_v59 = vpack.c.bf16 %v5684_v51, %v5679_v54  ;;  %v8995_v60 = vpop.f32.mrb[148].mxu0  ;;  %v9024_v34 = vpop.f32.mrb[144].mxu1 }
0x1ee7   :  { %v5694_v39 = vadd.f32 %v8995_v60, %v7062_v37  ;;  %v5688_v40 = vpop.f32.mrb[149].mxu0  ;;  %v5842_v35 = vadd.f32 %v9024_v34, %v11744_v63 }
0x1ee8   :  { %v5689_v50 = vadd.f32 %v7062_v37, %v5688_v40 }
0x1eea   :  { %v9975_v49 = vpack.c.bf16 %v5694_v39, %v5689_v50  ;;  %v8998_v62 = vpop.f32.mrb[150].mxu0 }
0x1eeb   :  { %v5704_v0 = vadd.f32 %v8998_v62, %v7062_v37  ;;  %v5698_v32 = vpop.f32.mrb[151].mxu0 }
0x1eec   :  { %v5699_v3 = vadd.f32 %v7062_v37, %v5698_v32 }
0x1eed   :  { %9968 = vmatpush3.bf16.xpose.msk.msra.mxu0 %vm10560_vm2, %v9963_v46 }
0x1eee   :  { %9971 = vmatprep.subr.msk.bf16.mxu0 %vm10560_vm2, %v9969_v59  ;;  %v9981_v53 = vpack.c.bf16 %v5704_v0, %v5699_v3  ;;  %v9001_v43 = vpop.f32.mrb[152].mxu0 }
0x1eef   :  { %v5714_v44 = vadd.f32 %v9001_v43, %v7062_v37  ;;  %v5708_v2 = vpop.f32.mrb[153].mxu0  ;;  %v7120_v43 = vld [vmem:[%s11871_s10 + $0x38] sm:$0xff] }
0x1ef0   :  { %v5709_v1 = vadd.f32 %v7062_v37, %v5708_v2 }
0x1ef2   :  { %v9987_v9 = vpack.c.bf16 %v5714_v44, %v5709_v1  ;;  %v9004_v10 = vpop.f32.mrb[154].mxu0 }
0x1ef3   :  { %v5724_v61 = vadd.f32 %v9004_v10, %v7062_v37  ;;  %v5718_v11 = vpop.f32.mrb[155].mxu0 }
0x1ef4   :  { %v5719_v13 = vadd.f32 %v7062_v37, %v5718_v11  ;;  %v5836_v37 = vpop.f32.mrb[145].mxu1 }
0x1ef5   :  { %9974 = vmatpush3.bf16.xpose.msk.msra.mxu0 %vm10560_vm2, %v9969_v59  ;;  %v5837_v33 = vadd.f32 %v11744_v63, %v5836_v37  ;;  %v9027_v38 = vpop.f32.mrb[146].mxu1 }
0x1ef6   :  { %9977 = vmatprep.subr.msk.bf16.mxu0 %vm10560_vm2, %v9975_v49  ;;  %v9993_v16 = vpack.c.bf16 %v5724_v61, %v5719_v13  ;;  %v5852_v14 = vadd.f32 %v9027_v38, %v11744_v63  ;;  %v5846_v41 = vpop.f32.mrb[147].mxu1  ;;  %v7047_v13 = vld [vmem:[%s11871_s10 + $0x20] sm:$0xff]  ;;  %v7133_v38 = vld [vmem:[%s11873_s15 + $0x30] sm:$0xff] }
0x1ef7   :  { %v10011_v12 = vpack.c.bf16 %v5842_v35, %v5837_v33  ;;  %v5847_v26 = vadd.f32 %v11744_v63, %v5846_v41  ;;  %v9030_v28 = vpop.f32.mrb[148].mxu1  ;;  %v7132_v33 = vld [vmem:[%s11873_s15 + $0x28] sm:$0xff] }
0x1ef8   :  { %v5862_v29 = vadd.f32 %v9030_v28, %v11744_v63  ;;  %v5856_v30 = vpop.f32.mrb[149].mxu1  ;;  %v7141_v28 = vld [vmem:[%s11874_s16 + $0x50] sm:$0xff] }
0x1ef9   :  { %v10015_v42 = vpack.c.bf16 %v5852_v14, %v5847_v26  ;;  %v5857_v5 = vadd.f32 %v11744_v63, %v5856_v30  ;;  %v9033_v57 = vpop.f32.mrb[150].mxu1  ;;  %v7134_v14 = vld [vmem:[%s11873_s15 + $0x38] sm:$0xff]  ;;  %v7139_v26 = vld [vmem:[%s11874_s16 + $0x40] sm:$0xff] }
0x1efa   :  { %v5872_v46 = vadd.f32 %v9033_v57, %v11744_v63  ;;  %v5866_v48 = vpop.f32.mrb[151].mxu1  ;;  %v10043_v41 = vpack.c.bf16 %v7134_v14, %v7133_v38  ;;  %v7142_v30 = vld [vmem:[%s11874_s16 + $0x58] sm:$0xff]  ;;  %v7144_v57 = vld [vmem:[%s11874_s16 + $0x68] sm:$0xff] }
0x1efb   :  { %v10019_v55 = vpack.c.bf16 %v5862_v29, %v5857_v5  ;;  %v5867_v51 = vadd.f32 %v11744_v63, %v5866_v48  ;;  %v9036_v0 = vpop.f32.mrb[152].mxu1  ;;  %v10051_v5 = vpack.c.bf16 %v7142_v30, %v7141_v28 }
0x1efc   :  { %v5876_v32 = vpop.f32.mrb[153].mxu1  ;;  %v5882_v3 = vadd.f32 %v9036_v0, %v11744_v63  ;;  %v7130_v0 = vld [vmem:[%s11876_s22 + $0x1] ss:$0 sm:$0xff] }
0x1efd   :  { %9980 = vmatpush3.bf16.xpose.msk.msra.mxu0 %vm10560_vm2, %v9975_v49  ;;  %v10023_v23 = vpack.c.bf16 %v5872_v46, %v5867_v51 }
0x1efe   :  { %9983 = vmatprep.subr.msk.bf16.mxu0 %vm10560_vm2, %v9981_v53 }
0x1f05   :  { %9986 = vmatpush3.bf16.xpose.msk.msra.mxu0 %vm10560_vm2, %v9981_v53  ;;  %v5877_v53 = vadd.f32 %v11744_v63, %v5876_v32 }
0x1f06   :  { %9989 = vmatprep.subr.msk.bf16.mxu0 %vm10560_vm2, %v9987_v9 }
0x1f0d   :  { %9992 = vmatpush3.bf16.xpose.msk.msra.mxu0 %vm10560_vm2, %v9987_v9 }
0x1f0e   :  { %9995 = vmatprep.subr.msk.bf16.mxu0 %vm10560_vm2, %v9993_v16 }
0x1f15   :  { %9998 = vmatpush3.bf16.xpose.msk.msra.mxu0 %vm10560_vm2, %v9993_v16  ;;  %v7048_v16 = vld [vmem:[%s11871_s10 + $0x28] sm:$0xff] }
0x1f16   :  { %v10035_v19 = vpack.c.bf16 %v7048_v16, %v7047_v13  ;;  %v7148_v16 = vld [vmem:[%s11878_s26 + $0x1] ss:$0 sm:$0xff] }
0x1f1c   :  { %9070 = vmatmul.mubr.msk.f32.vlgmr.msra.gmra.mrb[156].mxu0 %vm563_vm1, %v5566_v8  ;;  %v5827_v8 = vadd.f32 %v11744_v63, %v5826_v6 }
0x1f1e   :  { %v10007_v36 = vpack.c.bf16 %v5832_v31, %v5827_v8 }
0x1f20   :  { %10008 = vmatprep.subr.bf16.mxu1 %v10007_v36 }
0x1f21   :  { %10010 = vmatpush3.bf16.msra.mxu1 %v10007_v36  ;;  %v7131_v36 = vld [vmem:[%s11873_s15 + $0x20] sm:$0xff] }
0x1f22   :  { %10012 = vmatprep.subr.bf16.mxu1 %v10011_v12 }
0x1f25   :  { %10014 = vmatpush3.bf16.msra.mxu1 %v10011_v12  ;;  %v10039_v12 = vpack.c.bf16 %v7132_v33, %v7131_v36 }
0x1f26   :  { %10016 = vmatprep.subr.bf16.mxu1 %v10015_v42 }
0x1f29   :  { %10018 = vmatpush3.bf16.msra.mxu1 %v10015_v42  ;;  %v7140_v42 = vld [vmem:[%s11874_s16 + $0x48] sm:$0xff] }
0x1f2a   :  { %10020 = vmatprep.subr.bf16.mxu1 %v10019_v55  ;;  %v10047_v29 = vpack.c.bf16 %v7140_v42, %v7139_v26 }
0x1f2c   :  { %10048 = vmatprep.subr.bf16.mxu0 %v10047_v29 }
0x1f2d   :  { %10022 = vmatpush3.bf16.msra.mxu1 %v10019_v55  ;;  %v7143_v55 = vld [vmem:[%s11874_s16 + $0x60] sm:$0xff]  ;;  %10050 = vmatpush3.bf16.msra.mxu0 %v10047_v29 }
0x1f2e   :  { %10024 = vmatprep.subr.bf16.mxu1 %v10023_v23  ;;  %10052 = vmatprep.subr.bf16.mxu0 %v10051_v5  ;;  %v10055_v46 = vpack.c.bf16 %v7144_v57, %v7143_v55 }
0x1f31   :  { %10026 = vmatpush3.bf16.msra.mxu1 %v10023_v23  ;;  %10054 = vmatpush3.bf16.msra.mxu0 %v10051_v5 }
0x1f32   :  { %10056 = vmatprep.subr.bf16.mxu0 %v10055_v46 }
0x1f35   :  { %10058 = vmatpush3.bf16.msra.mxu0 %v10055_v46 }
0x1fef   :  { %v9071_v54 = vpop.f32.mrb[156].mxu0 }
0x1ff0   :  { %v6011_v59 = vadd.f32 %v11616_v47, %v9071_v54  ;;  %v6005_v60 = vpop.f32.mrb[157].mxu0  ;;  %v10027_v47 = vpack.c.bf16 %v5882_v3, %v5877_v53 }
0x1ff1   :  { %v6006_v39 = vadd.f32 %v11620_v52, %v6005_v60  ;;  %v7119_v52 = vld [vmem:[%s11871_s10 + $0x30] sm:$0xff] }
0x1ff2   :  { %v6016_v40 = vmul.f32 1.442695, %v6011_v59  ;;  %10028 = vmatprep.subr.bf16.mxu1 %v10027_v47  ;;  %v10031_v44 = vpack.c.bf16 %v7120_v43, %v7119_v52  ;;  %v7145_v52 = vld [vmem:[%s11874_s16 + $0x70] sm:$0xff]  ;;  %v7146_v43 = vld [vmem:[%s11874_s16 + $0x78] sm:$0xff] }
0x1ff3   :  { %v6014_v50 = vmul.f32 1.442695, %v6006_v39  ;;  %10030 = vmatpush3.bf16.msra.mxu1 %v10027_v47 }
0x1ff4   :  { %10181 = vpow2.f32 %v6016_v40  ;;  %10032 = vmatprep.subr.bf16.mxu1 %v10031_v44  ;;  %v7129_v40 = vld [vmem:[%s11875_s18 + $0x1] ss:$0 sm:$0xff] }
0x1ff5   :  { %10183 = vpow2.f32 %v6014_v50 }
0x1ffe   :  { %v10182_v49 = vpop.eup %10181 }
0x1fff   :  { %v10184_v62 = vpop.eup %10183  ;;  %6020 = vadd.xlane.f32.xlu1 %v10182_v49 }
0x2000   :  { %6018 = vadd.xlane.f32.xlu0 %v10184_v62 }
0x208c   :  { %v6021_v2 = vpop.xlane.xlu1 %6020 }
0x208d   :  { %10185 = vrcp.f32 %v6021_v2  ;;  %v6019_v1 = vpop.xlane.xlu0 %6018  ;;  %v7136_v2 = vld [vmem:[%s11877_s23 + $0x1] ss:$0 sm:$0xff] }
0x208e   :  { %10187 = vrcp.f32 %v6019_v1 }
0x2097   :  { %v10186_v9 = vpop.eup %10185 }
0x2098   :  { %v10188_v10 = vpop.eup %10187  ;;  %v6025_v61 = vmul.f32 %v10186_v9, %v10182_v49 }
0x2099   :  { %v6024_v11 = vmul.f32 %v10188_v10, %v10184_v62 }
0x209a   :  { %6577 = vst [vmem:[#allocation6 + $0x38] sm:$0xff] %v6025_v61 }
0x209b   :  { %9104 = vmatprep.mubr.f32.mxu1 %v6024_v11  ;;  %6576 = vst [vmem:[#allocation6 + $0x30] sm:$0xff] %v6024_v11 }
0x209c   :  { %9105 = vmatmul.mubr.f32.vlgmr.msra.gmra.mrb[154].mxu1 %v6025_v61 }
0x209d   :  { %10034 = vmatpush3.bf16.msra.mxu1 %v10031_v44  ;;  %v10059_v44 = vpack.c.bf16 %v7146_v43, %v7145_v52 }
0x209e   :  { %10036 = vmatprep.subr.bf16.mxu1 %v10035_v19 }
0x209f   :  { %10060 = vmatprep.subr.bf16.mxu0 %v10059_v44 }
0x20a0   :  { %10062 = vmatpush3.bf16.msra.mxu0 %v10059_v44 }
0x216f   :  { %v9106_v63 = vpop.f32.mrb[154].mxu1 }
0x2170   :  { %v6092_v20 = vpop.f32.mrb[155].mxu1 }
0x2171   :  { %9111 = vmatprep.mubr.msk.f32.mxu1 %vm563_vm1, %v6092_v20 }
0x2172   :  { %9112 = vmatmul.mubr.msk.f32.vlgmr.msra.gmra.mrb[156].mxu1 %vm563_vm1, %v9106_v63 }
0x2173   :  { %10038 = vmatpush3.bf16.msra.mxu1 %v10035_v19  ;;  %9118 = vmatprep.mubr.msk.f32.mxu1 %vm563_vm1, %v11705_v4 }
0x2174   :  { %10040 = vmatprep.subr.bf16.mxu1 %v10039_v12 }
0x217a   :  { %9119 = vmatmul.mubr.msk.f32.vlgmr.msra.gmra.mrb[156].mxu1 %vm563_vm1, %v11703_v18 }
0x217b   :  { %10042 = vmatpush3.bf16.msra.mxu1 %v10039_v12 }
0x217c   :  { %10044 = vmatprep.subr.bf16.mxu1 %v10043_v41 }
0x217f   :  { %10046 = vmatpush3.bf16.msra.mxu1 %v10043_v41 }
0x224d   :  { %v9120_v24 = vpop.f32.mrb[156].mxu1 }
0x224e   :  { %v6275_v17 = vadd.f32 %v9120_v24, %v7126_v21  ;;  %v6257_v25 = vpop.f32.mrb[157].mxu1 }
0x224f   :  { %v6274_v56 = vadd.f32 %v7126_v21, %v6257_v25 }
0x2250   :  { %v6277_v58 = vadd.f32 %v6275_v17, %v11551_v15 }
0x2251   :  { %v6276_v27 = vadd.f32 %v6274_v56, %v11549_v45 }
0x2252   :  { %v6285_v22 = vsel %vm166_vm0, %v6277_v58, 0.0 }
0x2253   :  { %6286 = vadd.xlane.f32.xlu1 %v6285_v22  ;;  %v6282_v31 = vsel %vm166_vm0, %v6276_v27, 0.0 }
0x2254   :  { %6283 = vadd.xlane.f32.xlu0 %v6282_v31 }
0x22e0   :  { %v6287_v4 = vpop.xlane.xlu1 %6286 }
0x22e1   :  { %v6289_v18 = vmul.f32 0.03125, %v6287_v4  ;;  %v6284_v6 = vpop.xlane.xlu0 %6283 }
0x22e2   :  { %v6288_v7 = vmul.f32 0.03125, %v6284_v6 }
0x22e3   :  { %v6291_v8 = vsub.f32 %v6277_v58, %v6289_v18 }
0x22e4   :  { %v6290_v34 = vsub.f32 %v6276_v27, %v6288_v7 }
0x22e5   :  { %v6293_v35 = vmul.f32 %v6291_v8, %v6291_v8 }
0x22e6   :  { %v6292_v15 = vmul.f32 %v6290_v34, %v6290_v34 }
0x22e7   :  { %v6297_v45 = vsel %vm166_vm0, %v6293_v35, 0.0 }
0x22e8   :  { %6298 = vadd.xlane.f32.xlu1 %v6297_v45  ;;  %v6294_v37 = vsel %vm166_vm0, %v6292_v15, 0.0 }
0x22e9   :  { %6295 = vadd.xlane.f32.xlu0 %v6294_v37 }
0x2375   :  { %v6299_v48 = vpop.xlane.xlu1 %6298 }
0x2376   :  { %v6301_v51 = vmul.f32 0.03125, %v6299_v48  ;;  %v6296_v23 = vpop.xlane.xlu0 %6295 }
0x2377   :  { %v6300_v54 = vmul.f32 0.03125, %v6296_v23 }
0x2378   :  { %v6303_v59 = vadd.f32 1e-05, %v6301_v51 }
0x2379   :  { %v6302_v60 = vadd.f32 1e-05, %v6300_v54 }
0x237a   :  { %10189 = vrsqrt.f32 %v6303_v59 }
0x237b   :  { %10191 = vrsqrt.f32 %v6302_v60 }
0x2384   :  { %v10190_v39 = vpop.eup %10189 }
0x2385   :  { %v10192_v50 = vpop.eup %10191  ;;  %v6307_v49 = vmul.f32 %v10190_v39, %v6291_v8 }
0x2386   :  { %v6306_v62 = vmul.f32 %v10192_v50, %v6290_v34 }
0x2387   :  { %v6315_v32 = vmul.f32 %v7129_v40, %v6307_v49 }
0x2388   :  { %v6314_v3 = vmul.f32 %v7129_v40, %v6306_v62 }
0x2389   :  { %v6323_v47 = vadd.f32 %v7130_v0, %v6315_v32 }
0x238a   :  { %v6322_v53 = vadd.f32 %v7130_v0, %v6314_v3 }
0x238c   :  { %9129 = vmatprep.mubr.msk.f32.mxu1 %vm166_vm0, %v6322_v53 }
0x238d   :  { %9130 = vmatmul.mubr.msk.f32.vlgmr.msra.gmra.mrb[158].mxu1 %vm166_vm0, %v6323_v47 }
0x2460   :  { %v9131_v1 = vpop.f32.mrb[158].mxu1 }
0x2461   :  { %v6415_v9 = vadd.f32 %v9131_v1, %v7136_v2  ;;  %v6409_v10 = vpop.f32.mrb[159].mxu1 }
0x2462   :  { %v6410_v61 = vadd.f32 %v7136_v2, %v6409_v10 }
0x2463   :  { %v6419_v13 = vmax.f32 %v6415_v9, 0.0 }
0x2464   :  { %v6418_v11 = vmax.f32 %v6410_v61, 0.0 }
0x2466   :  { %9148 = vmatprep.mubr.msk.f32.mxu0 %vm3242_vm3, %v6418_v11 }
0x2467   :  { %9149 = vmatmul.mubr.msk.f32.vlgmr.msra.gmra.mrb[158].mxu0 %vm3242_vm3, %v6419_v13 }
0x253a   :  { %v9150_v19 = vpop.f32.mrb[158].mxu0 }
0x253b   :  { %v6515_v63 = vadd.f32 %v9150_v19, %v7148_v16  ;;  %v6509_v20 = vpop.f32.mrb[159].mxu0 }
0x253c   :  { %v6510_v21 = vadd.f32 %v7148_v16, %v6509_v20 }
0x253d   :  { %v6519_v24 = vadd.f32 %v6515_v63, %v6323_v47 }
0x253e   :  { %v6518_v17 = vadd.f32 %v6510_v21, %v6322_v53 }
0x253f   :  { %v6527_v25 = vsel %vm166_vm0, %v6519_v24, 0.0 }
0x2540   :  { %6528 = vadd.xlane.f32.xlu1 %v6527_v25  ;;  %v6524_v56 = vsel %vm166_vm0, %v6518_v17, 0.0 }
0x2541   :  { %6525 = vadd.xlane.f32.xlu0 %v6524_v56 }
0x25cd   :  { %v6529_v58 = vpop.xlane.xlu1 %6528 }
0x25ce   :  { %v6531_v27 = vmul.f32 0.03125, %v6529_v58  ;;  %v6526_v22 = vpop.xlane.xlu0 %6525 }
0x25cf   :  { %v6530_v31 = vmul.f32 0.03125, %v6526_v22 }
0x25d0   :  { %v6533_v4 = vsub.f32 %v6519_v24, %v6531_v27 }
0x25d1   :  { %v6532_v18 = vsub.f32 %v6518_v17, %v6530_v31 }
0x25d2   :  { %v6535_v6 = vmul.f32 %v6533_v4, %v6533_v4 }
0x25d3   :  { %v6534_v7 = vmul.f32 %v6532_v18, %v6532_v18 }
0x25d4   :  { %v6539_v8 = vsel %vm166_vm0, %v6535_v6, 0.0 }
0x25d5   :  { %6540 = vadd.xlane.f32.xlu1 %v6539_v8  ;;  %v6536_v34 = vsel %vm166_vm0, %v6534_v7, 0.0 }
0x25d6   :  { %6537 = vadd.xlane.f32.xlu0 %v6536_v34 }
0x25d7   :  { %10228 = shalt.err (!%p10225_p4)
}
0x25d8   :  { %s10229_s25 = scalar_lea.hbm %s10488_s20, 1024 }
0x25d9   :  { %p10230_p5 = scmp.ne.s32.totalorder %s10488_s20, %s10229_s25  ;;  %p10233_p6 = scmp.lt.u32.totalorder %s10229_s25, %s10488_s20 }
0x25db   :  { %p10235_p7 = pnand %p10233_p6, %p10230_p5 }
0x25dd   :  { %10238 = shalt.err (!%p10235_p7)
}
0x25de   :  { %s10321_s29 = smov 128   ;;  %s10322_s3 = smov 8  }
0x25df   :  { %6603 = dma.vmem_to_hbm [thread:$0]  %s6598_s13, 1024, %s10488_s20, [#allocation5], %s10321_s29, %s10321_s29, %s10322_s3  }
0x25e0   :  { %s10323_s8 = smov [#allocation6]  }
0x25e1   :  { %s6609_s14 = sshll.u32 %s10323_s8, 4  ;;  %s6610_s14 = int_to_ptr.vmem [resolvable:$true] %s6609_s14 }
0x25e2   :  { %s10239_s19 = scalar_lea.vmem %s6610_s14, 1024  ;;  %p10244_p9 = scmp.lt.s32.totalorder %s6610_s14, %s6610_s14 }
0x25e3   :  { %p10240_p8 = scmp.ne.s32.totalorder %s6610_s14, %s10239_s19  ;;  %p10245_p10 = scmp.lt.s32.totalorder %s10239_s19, %s10239_s19 }
0x25e5   :  { %p10246_p11 = por %p10245_p10, %p10244_p9 }
0x25e7   :  { %p10247_p12 = pnand %p10246_p11, %p10240_p8 }
0x25e9   :  { %10250 = shalt.err (!%p10247_p12)
}
0x25ea   :  { %s10251_s24 = scalar_lea.hbm %s10493_s6, 1024 }
0x25eb   :  { %p10252_p13 = scmp.ne.s32.totalorder %s10493_s6, %s10251_s24  ;;  %p10255_p0 = scmp.lt.u32.totalorder %s10251_s24, %s10493_s6 }
0x25ed   :  { %p10257_p1 = pnand %p10255_p0, %p10252_p13 }
0x25ef   :  { %10260 = shalt.err (!%p10257_p1)
}
0x25f0   :  { %6615 = dma.vmem_to_hbm [thread:$0]  %s6610_s14, 1024, %s10493_s6, [#allocation5], %s10321_s29, %s10321_s29, %s10322_s3  }
0x25f1   :  { %v7153_v38 = vld [vmem:[%s11879_s17 + $0x1] ss:$0 sm:$0xff]  ;;  %s10324_s12 = smov [#allocation2]  }
0x25f2   :  { %v7154_v26 = vld [vmem:[%s10478_s30 + $0x1] ss:$0 sm:$0xff]  ;;  %s6585_s20 = sshll.u32 %s10324_s12, 4  ;;  %s6586_s20 = int_to_ptr.vmem [resolvable:$true] %s6585_s20 }
0x25f3   :  { %s10261_s6 = scalar_lea.vmem %s6586_s20, 256  ;;  %p10266_p3 = scmp.lt.s32.totalorder %s6586_s20, %s6586_s20 }
0x25f4   :  { %p10262_p2 = scmp.ne.s32.totalorder %s6586_s20, %s10261_s6  ;;  %p10267_p4 = scmp.lt.s32.totalorder %s10261_s6, %s10261_s6 }
0x25f6   :  { %p10268_p5 = por %p10267_p4, %p10266_p3 }
0x25f8   :  { %p10269_p6 = pnand %p10268_p5, %p10262_p2 }
0x2662   :  { %v6541_v35 = vpop.xlane.xlu1 %6540 }
0x2663   :  { %v6543_v15 = vmul.f32 0.03125, %v6541_v35  ;;  %v6538_v45 = vpop.xlane.xlu0 %6537 }
0x2664   :  { %v6542_v37 = vmul.f32 0.03125, %v6538_v45 }
0x2665   :  { %v6545_v36 = vadd.f32 1e-05, %v6543_v15 }
0x2666   :  { %v6544_v33 = vadd.f32 1e-05, %v6542_v37 }
0x2667   :  { %10193 = vrsqrt.f32 %v6545_v36 }
0x2668   :  { %10195 = vrsqrt.f32 %v6544_v33 }
0x2671   :  { %v10194_v12 = vpop.eup %10193 }
0x2672   :  { %v10196_v14 = vpop.eup %10195  ;;  %v6549_v41 = vmul.f32 %v10194_v12, %v6533_v4 }
0x2673   :  { %v6548_v42 = vmul.f32 %v10196_v14, %v6532_v18 }
0x2674   :  { %v6557_v28 = vmul.f32 %v7153_v38, %v6549_v41 }
0x2675   :  { %v6556_v29 = vmul.f32 %v7153_v38, %v6548_v42 }
0x2676   :  { %v6565_v30 = vadd.f32 %v7154_v26, %v6557_v28 }
0x2677   :  { %v6564_v5 = vadd.f32 %v7154_v26, %v6556_v29 }
0x2678   :  { %6579 = vst.msk [vmem:[#allocation2 + $0x8] sm:$0xff] %vm166_vm0, %v6565_v30 }
0x2679   :  { %6578 = vst.msk [vmem:[#allocation2] sm:$0xff] %vm166_vm0, %v6564_v5 }
0x267a   :  { %10272 = shalt.err (!%p10269_p6)
}
0x267b   :  { %s11880_s17 = sld [smem:[#allocation24_spill]] }
0x2681   :  { %s10273_s30 = scalar_lea.hbm %s11880_s17, 256 }
0x2682   :  { %p10274_p7 = scmp.ne.s32.totalorder %s11880_s17, %s10273_s30  ;;  %p10277_p8 = scmp.lt.u32.totalorder %s10273_s30, %s11880_s17 }
0x2684   :  { %p10279_p9 = pnand %p10277_p8, %p10274_p7 }
0x2686   :  { %10282 = shalt.err (!%p10279_p9)
}
0x2687   :  { %6591 = dma.vmem_to_hbm [thread:$0]  %s6586_s20, 256, %s11880_s17, [#allocation3], %s10321_s29, %s10321_s29, %s10322_s3  }
0x2688   :  { %10283 = dma.done.wait [#allocation3], 256  }
0x2689   :  { %10284 = vsyncadd [#allocation3], 4294967040 }
0x268a   :  { %10285 = dma.done.wait [#allocation5], 2048  }
0x268b   :  { %10286 = vsyncadd [#allocation5], 4294965248 }
0x268c   :  { %6625 = vsyncpa [#allocation3], 1 }
0x268d   :  { %6626 = vsyncpa [#allocation5], 1 }

</bundles_post_ra>
